<compile_context>
chip_gen: v5e
topology: v5e:2x2
jax: 0.10.0
libtpu: 0.0.40
codegen_flags: <defaults>
</compile_context>

<pallas_src>
import math
import functools

import jax
import jax.numpy as jnp
from jax.experimental import pallas as pl
from jax.experimental.pallas import tpu as pltpu


def _get_relative_bias_index(window_size):
    """JAX port of SwinMSA._get_relative_bias_index (torch.meshgrid default = 'ij')."""
    coords = jnp.stack(
        jnp.meshgrid(jnp.arange(window_size), jnp.arange(window_size), indexing="ij")
    )                                                # (2, ws, ws)
    coords_flatten = coords.reshape(2, -1)           # (2, N)
    rel = coords_flatten[:, :, None] - coords_flatten[:, None, :]   # (2, N, N)
    rel = jnp.transpose(rel, (1, 2, 0))              # (N, N, 2)
    rel = rel.at[:, :, 0].add(window_size - 1)
    rel = rel.at[:, :, 1].add(window_size - 1)
    rel = rel.at[:, :, 0].multiply(2 * window_size - 1)
    return rel.sum(-1)                               # (N, N)


def _residual_swin_msa_kernel(x_ref, wqkv_ref, bqkv_ref, bias_ref, wp_ref, bp_ref,
                              o_ref, *, B, N, num_heads, head_dim):
    """Single grid step: all B windows at once, residual add fused."""
    C = num_heads * head_dim
    x = x_ref[...]                                                    # (B*N, C)

    # QKV projection: one (B*N, C) @ (C, 3C) matmul; bias added once.
    # Wq / bq are pre-scaled host-side by (head_dim**-0.5 / sqrt(32)).
    qkv = jnp.dot(x, wqkv_ref[...], preferred_element_type=jnp.float32) + bqkv_ref[...]
    qkv = qkv.reshape(B, N, 3 * C)                                    # per-window view (free reshape)

    head_outs = []
    for h in range(num_heads):                                        # static unroll (tiny H)
        q = qkv[:, :, h * head_dim:(h + 1) * head_dim]                # (B, N, hd), pre-scaled
        k = qkv[:, :, C + h * head_dim:C + (h + 1) * head_dim]        # (B, N, hd)
        v = qkv[:, :, 2 * C + h * head_dim:2 * C + (h + 1) * head_dim]

        # scores batched over all windows; bias already divided by sqrt(32) host-side
        s = jnp.einsum("bqd,bkd->bqk", q, k, preferred_element_type=jnp.float32)
        s = s + bias_ref[h]                                           # broadcast over B

        # numerically-stable softmax; normalization via EUP approx reciprocal
        s = s - jnp.max(s, axis=-1, keepdims=True)
        p = jnp.exp(s)
        p = p * pl.reciprocal(jnp.sum(p, axis=-1, keepdims=True), approx=True)

        head_outs.append(
            jnp.einsum("bqk,bkd->bqd", p, v, preferred_element_type=jnp.float32))

    attn = jnp.concatenate(head_outs, axis=-1).reshape(B * N, C)      # (B*N, C)

    # output projection + fused residual add (ResidualAdd: x + block(x))
    out = jnp.dot(attn, wp_ref[...], preferred_element_type=jnp.float32) + bp_ref[...]
    o_ref[...] = (x + out).astype(o_ref.dtype)


def residual_swin_msa_pallas(x, wqkv_t, bqkv, rel_bias_hqk, wp_t, bp, *, num_heads):
    B, N, C = x.shape
    head_dim = C // num_heads
    scale = head_dim ** (-0.5)
    query_value = math.sqrt(32.0)

    # Host-side algebraic folds (free): (q@k^T * scale + bias) / qv
    #   == (x@(Wq*c) + bq*c) @ k^T + bias/qv   with c = scale/qv.
    q_scale = scale / query_value
    wqkv_f = wqkv_t.at[:, :C].multiply(q_scale)
    bqkv_f = bqkv.at[:C].multiply(q_scale)
    bias_f = rel_bias_hqk / query_value

    x2d = x.reshape(B * N, C)
    bqkv2 = bqkv_f.reshape(1, 3 * C)
    bp2 = bp.reshape(1, C)

    kernel = functools.partial(
        _residual_swin_msa_kernel, B=B, N=N, num_heads=num_heads, head_dim=head_dim)

    out2d = pl.pallas_call(
        kernel,
        out_shape=jax.ShapeDtypeStruct((B * N, C), x.dtype),
        # Whole problem in VMEM, no grid: every operand is a full-array VMEM block.
        in_specs=[pl.BlockSpec(memory_space=pltpu.MemorySpace.VMEM)] * 6,
        out_specs=pl.BlockSpec(memory_space=pltpu.MemorySpace.VMEM),
    )(x2d, wqkv_f, bqkv2, bias_f, wp_t, bp2)
    return out2d.reshape(B, N, C)


def residual_swin_msa_reference(x, wqkv_t, bqkv, rel_bias_hqk, wp_t, bp, *, num_heads):
    """Pure-JAX reference mirroring the PyTorch forward: x + SwinMSA(x)."""
    B, N, C = x.shape
    hd = C // num_heads
    scale = hd ** (-0.5)
    query_value = math.sqrt(32.0)

    qkv = x @ wqkv_t + bqkv                                   # (B, N, 3C)
    qkv = qkv.reshape(B, N, 3, num_heads, hd).transpose(2, 0, 1, 3, 4)
    q, k, v = qkv[0], qkv[1], qkv[2]                          # (B, N, H, hd)

    e = jnp.einsum("bqhe,bkhe->bqhk", q, k) * scale
    e = e + jnp.transpose(rel_bias_hqk, (1, 0, 2))            # bias as (q, h, k)
    e = e / query_value
    p = jax.nn.softmax(e, axis=-1)
    attn = jnp.einsum("bihv,bvhd->bihd", p, v).reshape(B, N, C)
    return x + (attn @ wp_t + bp)


if __name__ == "__main__":
    # Small, module-consistent shapes.
    embed_dim = 32
    num_heads = 4
    window_size = 4
    N = window_size * window_size        # tokens per window = 16
    B = 8                                # (batch * num_windows)

    key = jax.random.PRNGKey(0)
    kx, k1, k2, k3, k4, k5 = jax.random.split(key, 6)

    x = jax.random.normal(kx, (B, N, embed_dim), dtype=jnp.float32)

    # Deterministic synthetic parameters (PyTorch Linear weights pre-transposed: x @ W^T).
    wqkv_t = 0.05 * jax.random.normal(k1, (embed_dim, 3 * embed_dim), dtype=jnp.float32)
    bqkv = 0.05 * jax.random.normal(k2, (3 * embed_dim,), dtype=jnp.float32)
    wp_t = 0.05 * jax.random.normal(k3, (embed_dim, embed_dim), dtype=jnp.float32)
    bp = 0.05 * jax.random.normal(k4, (embed_dim,), dtype=jnp.float32)
    # relative_position_bias_table: ((2*ws-1)^2, num_heads); torch inits to zeros,
    # use small random values so the bias path is actually exercised.
    rel_table = 0.02 * jax.random.normal(
        k5, ((2 * window_size - 1) * (2 * window_size - 1), num_heads), dtype=jnp.float32
    )

    # Gather + permute the bias exactly like the PyTorch forward, then lay out as (H, N, N).
    rel_idx = _get_relative_bias_index(window_size)                      # (N, N)
    rel_bias = rel_table[rel_idx.reshape(-1)].reshape(N, N, num_heads)   # (q, k, h)
    rel_bias = jnp.transpose(rel_bias, (0, 2, 1))                        # (q, h, k)  [torch permute(0,2,1)]
    rel_bias_hqk = jnp.transpose(rel_bias, (1, 0, 2))                    # (h, q, k)  kernel layout

    out = residual_swin_msa_pallas(x, wqkv_t, bqkv, rel_bias_hqk, wp_t, bp,
                                   num_heads=num_heads)
    out = jax.block_until_ready(out)

    ref = residual_swin_msa_reference(x, wqkv_t, bqkv, rel_bias_hqk, wp_t, bp,
                                      num_heads=num_heads)
    assert out.shape == (B, N, embed_dim)
    # Tolerance slightly loosened because the kernel uses the EUP approximate
    # reciprocal for the softmax normalization.
    assert jnp.allclose(out, ref, atol=2e-3, rtol=2e-3), "mismatch vs reference"

    print("KERNEL_OK")
</pallas_src>

<mosaic_0001>
module attributes {stable_mosaic.version = 11 : i64} {
  func.func @_residual_swin_msa_kernel(%arg0: memref<128x32xf32, #tpu.memory_space<vmem>>, %arg1: memref<32x96xf32, #tpu.memory_space<vmem>>, %arg2: memref<1x96xf32, #tpu.memory_space<vmem>>, %arg3: memref<4x16x16xf32, #tpu.memory_space<vmem>>, %arg4: memref<32x32xf32, #tpu.memory_space<vmem>>, %arg5: memref<1x32xf32, #tpu.memory_space<vmem>>, %arg6: memref<128x32xf32, #tpu.memory_space<vmem>>) attributes {dimension_semantics = [], scalar_prefetch = 0 : i64, scratch_operands = 0 : i64, tpu.core_type = #tpu.core_type<tc>} {
    %c0 = arith.constant 0 : index
    %c0_0 = arith.constant 0 : index
    %0 = vector.load %arg0[%c0, %c0_0] : memref<128x32xf32, #tpu.memory_space<vmem>>, vector<128x32xf32>
    %c0_1 = arith.constant 0 : index
    %c0_2 = arith.constant 0 : index
    %1 = vector.load %arg1[%c0_1, %c0_2] : memref<32x96xf32, #tpu.memory_space<vmem>>, vector<32x96xf32>
    %cst = arith.constant dense<0.000000e+00> : vector<128x96xf32>
    %2 = tpu.matmul %0, %1, %cst {dimension_numbers = #tpu.dot_dimension_numbers<[1], [0], [0], [1], [0, 0, 1, 1], [], []>} : vector<128x32xf32>, vector<32x96xf32>, vector<128x96xf32> -> vector<128x96xf32>
    %c0_3 = arith.constant 0 : index
    %c0_4 = arith.constant 0 : index
    %3 = vector.load %arg2[%c0_3, %c0_4] : memref<1x96xf32, #tpu.memory_space<vmem>>, vector<1x96xf32>
    %4 = vector.broadcast %3 : vector<1x96xf32> to vector<128x96xf32>
    %5 = arith.addf %2, %4 : vector<128x96xf32>
    %6 = vector.shape_cast %5 : vector<128x96xf32> to vector<8x16x96xf32>
    %7 = vector.extract_strided_slice %6 {offsets = [0, 0, 0], sizes = [8, 16, 8], strides = [1, 1, 1]} : vector<8x16x96xf32> to vector<8x16x8xf32>
    %8 = vector.extract_strided_slice %6 {offsets = [0, 0, 32], sizes = [8, 16, 8], strides = [1, 1, 1]} : vector<8x16x96xf32> to vector<8x16x8xf32>
    %9 = vector.extract_strided_slice %6 {offsets = [0, 0, 64], sizes = [8, 16, 8], strides = [1, 1, 1]} : vector<8x16x96xf32> to vector<8x16x8xf32>
    "tpu.trace_start"() <{level = 10 : i32, message = "bqd,bkd->bqk"}> : () -> ()
    %cst_5 = arith.constant dense<0.000000e+00> : vector<8x16x16xf32>
    %10 = tpu.matmul %7, %8, %cst_5 {dimension_numbers = #tpu.dot_dimension_numbers<[2], [2], [1], [1], [0, 0, 0, 1, 1, 1], [0], [0]>} : vector<8x16x8xf32>, vector<8x16x8xf32>, vector<8x16x16xf32> -> vector<8x16x16xf32>
    "tpu.trace_stop"() : () -> ()
    %c0_6 = arith.constant 0 : index
    %c0_7 = arith.constant 0 : index
    %c0_8 = arith.constant 0 : index
    %11 = vector.load %arg3[%c0_6, %c0_7, %c0_8] : memref<4x16x16xf32, #tpu.memory_space<vmem>>, vector<1x16x16xf32>
    %12 = vector.shape_cast %11 : vector<1x16x16xf32> to vector<16x16xf32>
    %13 = vector.shape_cast %12 : vector<16x16xf32> to vector<1x16x16xf32>
    %14 = vector.broadcast %13 : vector<1x16x16xf32> to vector<8x16x16xf32>
    %15 = arith.addf %10, %14 : vector<8x16x16xf32>
    %cst_9 = arith.constant dense<0xFF800000> : vector<8x16xf32>
    %16 = vector.multi_reduction <maximumf>, %15, %cst_9 [2] : vector<8x16x16xf32> to vector<8x16xf32>
    %17 = vector.shape_cast %16 : vector<8x16xf32> to vector<8x16x1xf32>
    %18 = vector.broadcast %17 : vector<8x16x1xf32> to vector<8x16x16xf32>
    %19 = arith.subf %15, %18 : vector<8x16x16xf32>
    %20 = math.exp %19 : vector<8x16x16xf32>
    %cst_10 = arith.constant dense<0.000000e+00> : vector<8x16xf32>
    %21 = vector.multi_reduction <add>, %20, %cst_10 [2] : vector<8x16x16xf32> to vector<8x16xf32>
    %22 = vector.shape_cast %21 : vector<8x16xf32> to vector<8x16x1xf32>
    %23 = tpu.reciprocal %22 {approx = true} : vector<8x16x1xf32> -> vector<8x16x1xf32>
    %24 = vector.broadcast %23 : vector<8x16x1xf32> to vector<8x16x16xf32>
    %25 = arith.mulf %20, %24 : vector<8x16x16xf32>
    "tpu.trace_start"() <{level = 10 : i32, message = "bqk,bkd->bqd"}> : () -> ()
    %cst_11 = arith.constant dense<0.000000e+00> : vector<8x16x8xf32>
    %26 = tpu.matmul %25, %9, %cst_11 {dimension_numbers = #tpu.dot_dimension_numbers<[2], [1], [1], [2], [0, 0, 0, 1, 1, 2], [0], [0]>} : vector<8x16x16xf32>, vector<8x16x8xf32>, vector<8x16x8xf32> -> vector<8x16x8xf32>
    "tpu.trace_stop"() : () -> ()
    %27 = vector.extract_strided_slice %6 {offsets = [0, 0, 8], sizes = [8, 16, 8], strides = [1, 1, 1]} : vector<8x16x96xf32> to vector<8x16x8xf32>
    %28 = vector.extract_strided_slice %6 {offsets = [0, 0, 40], sizes = [8, 16, 8], strides = [1, 1, 1]} : vector<8x16x96xf32> to vector<8x16x8xf32>
    %29 = vector.extract_strided_slice %6 {offsets = [0, 0, 72], sizes = [8, 16, 8], strides = [1, 1, 1]} : vector<8x16x96xf32> to vector<8x16x8xf32>
    "tpu.trace_start"() <{level = 10 : i32, message = "bqd,bkd->bqk"}> : () -> ()
    %cst_12 = arith.constant dense<0.000000e+00> : vector<8x16x16xf32>
    %30 = tpu.matmul %27, %28, %cst_12 {dimension_numbers = #tpu.dot_dimension_numbers<[2], [2], [1], [1], [0, 0, 0, 1, 1, 1], [0], [0]>} : vector<8x16x8xf32>, vector<8x16x8xf32>, vector<8x16x16xf32> -> vector<8x16x16xf32>
    "tpu.trace_stop"() : () -> ()
    %c1 = arith.constant 1 : index
    %c0_13 = arith.constant 0 : index
    %c0_14 = arith.constant 0 : index
    %31 = vector.load %arg3[%c1, %c0_13, %c0_14] : memref<4x16x16xf32, #tpu.memory_space<vmem>>, vector<1x16x16xf32>
    %32 = vector.shape_cast %31 : vector<1x16x16xf32> to vector<16x16xf32>
    %33 = vector.shape_cast %32 : vector<16x16xf32> to vector<1x16x16xf32>
    %34 = vector.broadcast %33 : vector<1x16x16xf32> to vector<8x16x16xf32>
    %35 = arith.addf %30, %34 : vector<8x16x16xf32>
    %cst_15 = arith.constant dense<0xFF800000> : vector<8x16xf32>
    %36 = vector.multi_reduction <maximumf>, %35, %cst_15 [2] : vector<8x16x16xf32> to vector<8x16xf32>
    %37 = vector.shape_cast %36 : vector<8x16xf32> to vector<8x16x1xf32>
    %38 = vector.broadcast %37 : vector<8x16x1xf32> to vector<8x16x16xf32>
    %39 = arith.subf %35, %38 : vector<8x16x16xf32>
    %40 = math.exp %39 : vector<8x16x16xf32>
    %cst_16 = arith.constant dense<0.000000e+00> : vector<8x16xf32>
    %41 = vector.multi_reduction <add>, %40, %cst_16 [2] : vector<8x16x16xf32> to vector<8x16xf32>
    %42 = vector.shape_cast %41 : vector<8x16xf32> to vector<8x16x1xf32>
    %43 = tpu.reciprocal %42 {approx = true} : vector<8x16x1xf32> -> vector<8x16x1xf32>
    %44 = vector.broadcast %43 : vector<8x16x1xf32> to vector<8x16x16xf32>
    %45 = arith.mulf %40, %44 : vector<8x16x16xf32>
    "tpu.trace_start"() <{level = 10 : i32, message = "bqk,bkd->bqd"}> : () -> ()
    %cst_17 = arith.constant dense<0.000000e+00> : vector<8x16x8xf32>
    %46 = tpu.matmul %45, %29, %cst_17 {dimension_numbers = #tpu.dot_dimension_numbers<[2], [1], [1], [2], [0, 0, 0, 1, 1, 2], [0], [0]>} : vector<8x16x16xf32>, vector<8x16x8xf32>, vector<8x16x8xf32> -> vector<8x16x8xf32>
    "tpu.trace_stop"() : () -> ()
    %47 = vector.extract_strided_slice %6 {offsets = [0, 0, 16], sizes = [8, 16, 8], strides = [1, 1, 1]} : vector<8x16x96xf32> to vector<8x16x8xf32>
    %48 = vector.extract_strided_slice %6 {offsets = [0, 0, 48], sizes = [8, 16, 8], strides = [1, 1, 1]} : vector<8x16x96xf32> to vector<8x16x8xf32>
    %49 = vector.extract_strided_slice %6 {offsets = [0, 0, 80], sizes = [8, 16, 8], strides = [1, 1, 1]} : vector<8x16x96xf32> to vector<8x16x8xf32>
    "tpu.trace_start"() <{level = 10 : i32, message = "bqd,bkd->bqk"}> : () -> ()
    %cst_18 = arith.constant dense<0.000000e+00> : vector<8x16x16xf32>
    %50 = tpu.matmul %47, %48, %cst_18 {dimension_numbers = #tpu.dot_dimension_numbers<[2], [2], [1], [1], [0, 0, 0, 1, 1, 1], [0], [0]>} : vector<8x16x8xf32>, vector<8x16x8xf32>, vector<8x16x16xf32> -> vector<8x16x16xf32>
    "tpu.trace_stop"() : () -> ()
    %c2 = arith.constant 2 : index
    %c0_19 = arith.constant 0 : index
    %c0_20 = arith.constant 0 : index
    %51 = vector.load %arg3[%c2, %c0_19, %c0_20] : memref<4x16x16xf32, #tpu.memory_space<vmem>>, vector<1x16x16xf32>
    %52 = vector.shape_cast %51 : vector<1x16x16xf32> to vector<16x16xf32>
    %53 = vector.shape_cast %52 : vector<16x16xf32> to vector<1x16x16xf32>
    %54 = vector.broadcast %53 : vector<1x16x16xf32> to vector<8x16x16xf32>
    %55 = arith.addf %50, %54 : vector<8x16x16xf32>
    %cst_21 = arith.constant dense<0xFF800000> : vector<8x16xf32>
    %56 = vector.multi_reduction <maximumf>, %55, %cst_21 [2] : vector<8x16x16xf32> to vector<8x16xf32>
    %57 = vector.shape_cast %56 : vector<8x16xf32> to vector<8x16x1xf32>
    %58 = vector.broadcast %57 : vector<8x16x1xf32> to vector<8x16x16xf32>
    %59 = arith.subf %55, %58 : vector<8x16x16xf32>
    %60 = math.exp %59 : vector<8x16x16xf32>
    %cst_22 = arith.constant dense<0.000000e+00> : vector<8x16xf32>
    %61 = vector.multi_reduction <add>, %60, %cst_22 [2] : vector<8x16x16xf32> to vector<8x16xf32>
    %62 = vector.shape_cast %61 : vector<8x16xf32> to vector<8x16x1xf32>
    %63 = tpu.reciprocal %62 {approx = true} : vector<8x16x1xf32> -> vector<8x16x1xf32>
    %64 = vector.broadcast %63 : vector<8x16x1xf32> to vector<8x16x16xf32>
    %65 = arith.mulf %60, %64 : vector<8x16x16xf32>
    "tpu.trace_start"() <{level = 10 : i32, message = "bqk,bkd->bqd"}> : () -> ()
    %cst_23 = arith.constant dense<0.000000e+00> : vector<8x16x8xf32>
    %66 = tpu.matmul %65, %49, %cst_23 {dimension_numbers = #tpu.dot_dimension_numbers<[2], [1], [1], [2], [0, 0, 0, 1, 1, 2], [0], [0]>} : vector<8x16x16xf32>, vector<8x16x8xf32>, vector<8x16x8xf32> -> vector<8x16x8xf32>
    "tpu.trace_stop"() : () -> ()
    %67 = vector.extract_strided_slice %6 {offsets = [0, 0, 24], sizes = [8, 16, 8], strides = [1, 1, 1]} : vector<8x16x96xf32> to vector<8x16x8xf32>
    %68 = vector.extract_strided_slice %6 {offsets = [0, 0, 56], sizes = [8, 16, 8], strides = [1, 1, 1]} : vector<8x16x96xf32> to vector<8x16x8xf32>
    %69 = vector.extract_strided_slice %6 {offsets = [0, 0, 88], sizes = [8, 16, 8], strides = [1, 1, 1]} : vector<8x16x96xf32> to vector<8x16x8xf32>
    "tpu.trace_start"() <{level = 10 : i32, message = "bqd,bkd->bqk"}> : () -> ()
    %cst_24 = arith.constant dense<0.000000e+00> : vector<8x16x16xf32>
    %70 = tpu.matmul %67, %68, %cst_24 {dimension_numbers = #tpu.dot_dimension_numbers<[2], [2], [1], [1], [0, 0, 0, 1, 1, 1], [0], [0]>} : vector<8x16x8xf32>, vector<8x16x8xf32>, vector<8x16x16xf32> -> vector<8x16x16xf32>
    "tpu.trace_stop"() : () -> ()
    %c3 = arith.constant 3 : index
    %c0_25 = arith.constant 0 : index
    %c0_26 = arith.constant 0 : index
    %71 = vector.load %arg3[%c3, %c0_25, %c0_26] : memref<4x16x16xf32, #tpu.memory_space<vmem>>, vector<1x16x16xf32>
    %72 = vector.shape_cast %71 : vector<1x16x16xf32> to vector<16x16xf32>
    %73 = vector.shape_cast %72 : vector<16x16xf32> to vector<1x16x16xf32>
    %74 = vector.broadcast %73 : vector<1x16x16xf32> to vector<8x16x16xf32>
    %75 = arith.addf %70, %74 : vector<8x16x16xf32>
    %cst_27 = arith.constant dense<0xFF800000> : vector<8x16xf32>
    %76 = vector.multi_reduction <maximumf>, %75, %cst_27 [2] : vector<8x16x16xf32> to vector<8x16xf32>
    %77 = vector.shape_cast %76 : vector<8x16xf32> to vector<8x16x1xf32>
    %78 = vector.broadcast %77 : vector<8x16x1xf32> to vector<8x16x16xf32>
    %79 = arith.subf %75, %78 : vector<8x16x16xf32>
    %80 = math.exp %79 : vector<8x16x16xf32>
    %cst_28 = arith.constant dense<0.000000e+00> : vector<8x16xf32>
    %81 = vector.multi_reduction <add>, %80, %cst_28 [2] : vector<8x16x16xf32> to vector<8x16xf32>
    %82 = vector.shape_cast %81 : vector<8x16xf32> to vector<8x16x1xf32>
    %83 = tpu.reciprocal %82 {approx = true} : vector<8x16x1xf32> -> vector<8x16x1xf32>
    %84 = vector.broadcast %83 : vector<8x16x1xf32> to vector<8x16x16xf32>
    %85 = arith.mulf %80, %84 : vector<8x16x16xf32>
    "tpu.trace_start"() <{level = 10 : i32, message = "bqk,bkd->bqd"}> : () -> ()
    %cst_29 = arith.constant dense<0.000000e+00> : vector<8x16x8xf32>
    %86 = tpu.matmul %85, %69, %cst_29 {dimension_numbers = #tpu.dot_dimension_numbers<[2], [1], [1], [2], [0, 0, 0, 1, 1, 2], [0], [0]>} : vector<8x16x16xf32>, vector<8x16x8xf32>, vector<8x16x8xf32> -> vector<8x16x8xf32>
    "tpu.trace_stop"() : () -> ()
    %87 = tpu.concatenate %26, %46, %66, %86 in 2 : vector<8x16x8xf32>, vector<8x16x8xf32>, vector<8x16x8xf32>, vector<8x16x8xf32> -> vector<8x16x32xf32>
    %88 = vector.shape_cast %87 : vector<8x16x32xf32> to vector<128x32xf32>
    %c0_30 = arith.constant 0 : index
    %c0_31 = arith.constant 0 : index
    %89 = vector.load %arg4[%c0_30, %c0_31] : memref<32x32xf32, #tpu.memory_space<vmem>>, vector<32x32xf32>
    %cst_32 = arith.constant dense<0.000000e+00> : vector<128x32xf32>
    %90 = tpu.matmul %88, %89, %cst_32 {dimension_numbers = #tpu.dot_dimension_numbers<[1], [0], [0], [1], [0, 0, 1, 1], [], []>} : vector<128x32xf32>, vector<32x32xf32>, vector<128x32xf32> -> vector<128x32xf32>
    %c0_33 = arith.constant 0 : index
    %c0_34 = arith.constant 0 : index
    %91 = vector.load %arg5[%c0_33, %c0_34] : memref<1x32xf32, #tpu.memory_space<vmem>>, vector<1x32xf32>
    %92 = vector.broadcast %91 : vector<1x32xf32> to vector<128x32xf32>
    %93 = arith.addf %90, %92 : vector<128x32xf32>
    %94 = arith.addf %0, %93 : vector<128x32xf32>
    %c0_35 = arith.constant 0 : index
    %c0_36 = arith.constant 0 : index
    %95 = vector.load %arg6[%c0_35, %c0_36] : memref<128x32xf32, #tpu.memory_space<vmem>>, vector<128x32xf32>
    tpu.vector_store %arg6[%c0_35, %c0_36], %94 {strides = array<i32>} : memref<128x32xf32, #tpu.memory_space<vmem>>, vector<128x32xf32>,
    return
  }
}

</mosaic_0001>

<bundles_post_ra>
// kernel: tpu_custom_call.1
= control target key start
LH: loop header
LB: loop body
LE: loop exit
PB: predicated region body
PF: predicated region fallthrough
CT: control target
= control target key end

     0   :  { %vm47_vm0 = vcmask 261120   ;;  %s4318_s13 = smov 96   ;;  %s4320_s14 = smov 64   ;;  %vm169_vm1 = vcmask 64512   ;;  %vm460_vm2 = vcmask 130048   ;;  %vm3454_vm3 = vcmask 195584   ;;  %s6365_s1 = inlined_call_operand.vmem [shape: f32[32,96], index: 1, kind: input, shape index: {}]   ;;  %s6366_s0 = inlined_call_operand.vmem [shape: f32[128,32], index: 0, kind: input, shape index: {}]   ;;  %s6367_s2 = inlined_call_operand.vmem [shape: f32[1,96], index: 2, kind: input, shape index: {}]   ;;  %s6368_s3 = inlined_call_operand.vmem [shape: f32[4,16,16], index: 3, kind: input, shape index: {}]   ;;  %s6369_s4 = inlined_call_operand.vmem [shape: f32[32,32], index: 4, kind: input, shape index: {}]   ;;  %s6370_s5 = inlined_call_operand.vmem [shape: f32[1,32], index: 5, kind: input, shape index: {}]   ;;  %s6371_s6 = inlined_call_operand.vmem [shape: f32[128,32], index: 6, kind: output, shape index: {}]  }
   0x1   :  { %v42_v0 = vld [vmem:[%s6365_s1 + $0x18] sm:$0xff]  ;;  %v41_v1 = vld [vmem:[%s6365_s1 + $0x10] sm:$0xff]  ;;  %v40_v2 = vld [vmem:[%s6365_s1 + $0x8] sm:$0xff]  ;;  %s4321_s15 = smov 88   ;;  %s4322_s20 = smov 56  }
   0x2   :  { %108 = vmatpush.msra.mxu0 %v42_v0  ;;  %3858 = vmatpush.msra.mxu1 %v42_v0  ;;  %v39_v3 = vld [vmem:[%s6365_s1] sm:$0xff]  ;;  %v24_v8 = vld [vmem:[%s6366_s0 + $0x8] sm:$0xff]  ;;  %v25_v12 = vld [vmem:[%s6366_s0 + $0x10] sm:$0xff]  ;;  %s4323_s21 = smov 80   ;;  %s4324_s22 = smov 112  }
   0x3   :  { %3859 = vmatpush.msra.mxu2 %v42_v0  ;;  %3860 = vmatpush.msra.mxu3 %v42_v0  ;;  %v23_v4 = vld [vmem:[%s6366_s0] sm:$0xff]  ;;  %v28_v9 = vld [vmem:[%s6366_s0 + $0x28] sm:$0xff]  ;;  %v29_v13 = vld [vmem:[%s6366_s0 + $0x30] sm:$0xff]  ;;  %s4325_s27 = smov 48   ;;  %s4326_s28 = smov 72  }
   0x4   :  { %109 = vmatpush.msra.mxu0 %v41_v1  ;;  %3861 = vmatpush.msra.mxu1 %v41_v1  ;;  %v27_v5 = vld [vmem:[%s6366_s0 + $0x20] sm:$0xff]  ;;  %v32_v10 = vld [vmem:[%s6366_s0 + $0x48] sm:$0xff]  ;;  %v33_v14 = vld [vmem:[%s6366_s0 + $0x50] sm:$0xff]  ;;  %s4327_s29 = smov 104   ;;  %s4328_s10 = smov 40  }
   0x5   :  { %3862 = vmatpush.msra.mxu2 %v41_v1  ;;  %3863 = vmatpush.msra.mxu3 %v41_v1  ;;  %v31_v6 = vld [vmem:[%s6366_s0 + $0x40] sm:$0xff]  ;;  %v36_v11 = vld [vmem:[%s6366_s0 + $0x68] sm:$0xff]  ;;  %v37_v15 = vld [vmem:[%s6366_s0 + $0x70] sm:$0xff] }
   0x6   :  { %110 = vmatpush.msra.mxu0 %v40_v2  ;;  %3864 = vmatpush.msra.mxu1 %v40_v2  ;;  %v35_v7 = vld [vmem:[%s6366_s0 + $0x60] sm:$0xff]  ;;  %v26_v16 = vld [vmem:[%s6366_s0 + $0x18] sm:$0xff] }
   0x7   :  { %3865 = vmatpush.msra.mxu2 %v40_v2  ;;  %3866 = vmatpush.msra.mxu3 %v40_v2  ;;  %v30_v17 = vld [vmem:[%s6366_s0 + $0x38] sm:$0xff]  ;;  %v4446_v20 = vld [vmem:[%s6367_s2] ss:$0 sm:$0xff]  ;;  %s4319_s2 = smov 120  }
   0x8   :  { %111 = vmatpush.msra.mxu0 %v39_v3  ;;  %3867 = vmatpush.msra.mxu1 %v39_v3  ;;  %v34_v18 = vld [vmem:[%s6366_s0 + $0x58] sm:$0xff] }
   0x9   :  { %3868 = vmatpush.msra.mxu2 %v39_v3  ;;  %3869 = vmatpush.msra.mxu3 %v39_v3  ;;  %v38_v19 = vld [vmem:[%s6366_s0 + $0x78] sm:$0xff] }
   0xa   :  { %3628 = vmatmul.msk.f32.vlgmr.msra.gmra.mxu0 %vm47_vm0, %v23_v4  ;;  %3632 = vmatmul.msk.f32.vlgmr.msra.gmra.mxu1 %vm47_vm0, %v27_v5 }
   0xb   :  { %3636 = vmatmul.msk.f32.vlgmr.msra.gmra.mxu2 %vm47_vm0, %v31_v6  ;;  %3640 = vmatmul.msk.f32.vlgmr.msra.gmra.mxu3 %vm47_vm0, %v35_v7 }
  0x12   :  { %3629 = vmatmul.msk.f32.gmra.mxu0 %vm47_vm0, %v24_v8  ;;  %3633 = vmatmul.msk.f32.gmra.mxu1 %vm47_vm0, %v28_v9 }
  0x13   :  { %3637 = vmatmul.msk.f32.gmra.mxu2 %vm47_vm0, %v32_v10  ;;  %3641 = vmatmul.msk.f32.gmra.mxu3 %vm47_vm0, %v36_v11 }
  0x1a   :  { %3630 = vmatmul.msk.f32.gmra.mxu0 %vm47_vm0, %v25_v12  ;;  %3634 = vmatmul.msk.f32.gmra.mxu1 %vm47_vm0, %v29_v13 }
  0x1b   :  { %3638 = vmatmul.msk.f32.gmra.mxu2 %vm47_vm0, %v33_v14  ;;  %3642 = vmatmul.msk.f32.gmra.mxu3 %vm47_vm0, %v37_v15 }
  0x22   :  { %3631 = vmatmul.msk.f32.gmra.mxu0 %vm47_vm0, %v26_v16  ;;  %3635 = vmatmul.msk.f32.gmra.mxu1 %vm47_vm0, %v30_v17 }
  0x23   :  { %3639 = vmatmul.msk.f32.gmra.mxu2 %vm47_vm0, %v34_v18  ;;  %3643 = vmatmul.msk.f32.gmra.mxu3 %vm47_vm0, %v38_v19 }
  0x87   :  { %v113_v21 = vpop.f32.mrf.mxu0  ;;  %v125_v22 = vpop.f32.mrf.mxu1 }
  0x88   :  { %v4449_v23 = vadd.f32 %v4446_v20, %v125_v22  ;;  %v4467_v33 = vadd.f32 %v4446_v20, %v113_v21 }
  0x8a   :  { %6390 = vst [vmem:[#allocation2_spill] sm:$0xff] %v4449_v23  ;;  %240 = vrot.lane.b32.xlu1 %v4449_v23, %s4318_s13 }
  0x8e   :  { %v137_v24 = vpop.f32.mrf.mxu2  ;;  %v149_v25 = vpop.f32.mrf.mxu3 }
  0x8f   :  { %v116_v26 = vpop.f32.mrf.mxu0  ;;  %v128_v27 = vpop.f32.mrf.mxu1  ;;  %v4491_v40 = vadd.f32 %v4446_v20, %v137_v24  ;;  %v4494_v41 = vadd.f32 %v4446_v20, %v149_v25 }
  0x90   :  { %v4454_v28 = vadd.f32 %v4446_v20, %v116_v26  ;;  %v4457_v29 = vadd.f32 %v4446_v20, %v128_v27 }
  0x91   :  { %6392 = vst [vmem:[#allocation4_spill] sm:$0xff] %v4491_v40 }
  0x92   :  { %242 = vrot.lane.b32.xlu1 %v4457_v29, %s4318_s13  ;;  %167 = vrot.lane.b32.xlu0 %v4454_v28, %s4318_s13  ;;  %v4510_v45 = vpack.i.bf16 %v4467_v33, %v4454_v28  ;;  %v4540_v52 = vpack.i.bf16 %v4449_v23, %v4457_v29 }
  0x94   :  { %6396 = vst [vmem:[#allocation8_spill] sm:$0xff] %v4540_v52 }
  0x96   :  { %v140_v30 = vpop.f32.mrf.mxu2  ;;  %v152_v31 = vpop.f32.mrf.mxu3 }
  0x97   :  { %v4464_v32 = vadd.f32 %v4446_v20, %v152_v31  ;;  %v4470_v34 = vadd.f32 %v4446_v20, %v140_v30  ;;  %v119_v35 = vpop.f32.mrf.mxu0  ;;  %v131_v37 = vpop.f32.mrf.mxu1 }
  0x98   :  { %v4479_v36 = vadd.f32 %v4446_v20, %v119_v35  ;;  %v4482_v38 = vadd.f32 %v4446_v20, %v131_v37 }
  0x99   :  { %6391 = vst [vmem:[#allocation3_spill] sm:$0xff] %v4464_v32  ;;  %390 = vrot.lane.b32.xlu2 %v4464_v32, %s4318_s13  ;;  %v4526_v50 = vpack.i.bf16 %v4494_v41, %v4464_v32  ;;  %v4554_v54 = vpack.i.bf16 %v4491_v40, %v4470_v34 }
  0x9a   :  { %316 = vrot.lane.b32.xlu1 %v4470_v34, %s4318_s13  ;;  %165 = vrot.lane.b32.xlu0 %v4467_v33, %s4318_s13 }
  0x9b   :  { %6394 = vst [vmem:[#allocation6_spill] sm:$0xff] %v4526_v50 }
  0x9c   :  { %6398 = vst [vmem:[#allocation10_spill] sm:$0xff] %v4554_v54 }
  0x9e   :  { %v143_v39 = vpop.f32.mrf.mxu2  ;;  %v155_v46 = vpop.f32.mrf.mxu3 }
  0x9f   :  { %v4497_v42 = vadd.f32 %v4446_v20, %v143_v39  ;;  %v122_v43 = vpop.f32.mrf.mxu0  ;;  %v134_v47 = vpop.f32.mrf.mxu1  ;;  %v4519_v48 = vadd.f32 %v4446_v20, %v155_v46 }
  0xa0   :  { %v4506_v44 = vadd.f32 %v4446_v20, %v122_v43  ;;  %v4522_v49 = vadd.f32 %v4446_v20, %v134_v47 }
  0xa1   :  { %959 = vrot.lane.b32.xlu2 %v4479_v36, %s4319_s2 }
  0xa2   :  { %277 = vrot.lane.b32.xlu1 %v4482_v38, %s4318_s13  ;;  %203 = vrot.lane.b32.xlu0 %v4479_v36, %s4318_s13  ;;  %6393 = vst [vmem:[#allocation5_spill] sm:$0xff] %v4522_v49  ;;  %v4536_v51 = vpack.i.bf16 %v4482_v38, %v4522_v49  ;;  %v4550_v53 = vpack.i.bf16 %v4479_v36, %v4506_v44 }
  0xa4   :  { %6395 = vst [vmem:[#allocation7_spill] sm:$0xff] %v4536_v51 }
  0xa5   :  { %6397 = vst [vmem:[#allocation9_spill] sm:$0xff] %v4550_v53 }
  0xa6   :  { %v146_v55 = vpop.f32.mrf.mxu2  ;;  %v158_v57 = vpop.f32.mrf.mxu3 }
  0xa7   :  { %v4569_v56 = vadd.f32 %v4446_v20, %v146_v55  ;;  %v4578_v58 = vadd.f32 %v4446_v20, %v158_v57 }
  0xa9   :  { %1076 = vrot.lane.b32.xlu2 %v4491_v40, %s4319_s2  ;;  %v4596_v60 = vpack.i.bf16 %v4497_v42, %v4569_v56  ;;  %v4614_v2 = vpack.i.bf16 %v4519_v48, %v4578_v58 }
  0xaa   :  { %388 = vrot.lane.b32.xlu1 %v4494_v41, %s4318_s13  ;;  %351 = vrot.lane.b32.xlu0 %v4497_v42, %s4318_s13 }
  0xab   :  { %6399 = vst [vmem:[#allocation11_spill] sm:$0xff] %v4596_v60 }
  0xac   :  { %6401 = vst [vmem:[#allocation13_spill] sm:$0xff] %v4614_v2 }
  0xb1   :  { %205 = vrot.lane.b32.xlu2 %v4506_v44, %s4318_s13 }
  0xb2   :  { %3885 = vrot.lane.b32.xlu1 %v4510_v45, %s4320_s14  ;;  %314 = vrot.lane.b32.xlu0 %v4491_v40, %s4318_s13 }
  0xb9   :  { %279 = vrot.lane.b32.xlu2 %v4522_v49, %s4318_s13 }
  0xba   :  { %3895 = vrot.lane.b32.xlu1 %v4526_v50, %s4320_s14  ;;  %425 = vrot.lane.b32.xlu0 %v4519_v48, %s4318_s13 }
  0xc1   :  { %3905 = vrot.lane.b32.xlu2 %v4536_v51, %s4320_s14 }
  0xc2   :  { %924 = vrot.lane.b32.xlu1 %v4467_v33, %s4321_s15  ;;  %3890 = vrot.lane.b32.xlu0 %v4540_v52, %s4320_s14 }
  0xc9   :  { %3910 = vrot.lane.b32.xlu2 %v4550_v53, %s4320_s14 }
  0xca   :  { %963 = vrot.lane.b32.xlu1 %v4479_v36, %s4321_s15  ;;  %3900 = vrot.lane.b32.xlu0 %v4554_v54, %s4320_s14 }
  0xd1   :  { %965 = vrot.lane.b32.xlu2 %v4506_v44, %s4321_s15 }
  0xd2   :  { %920 = vrot.lane.b32.xlu1 %v4467_v33, %s4319_s2  ;;  %926 = vrot.lane.b32.xlu0 %v4454_v28, %s4321_s15 }
  0xd9   :  { %353 = vrot.lane.b32.xlu2 %v4569_v56, %s4318_s13 }
  0xda   :  { %922 = vrot.lane.b32.xlu1 %v4454_v28, %s4319_s2  ;;  %1004 = vrot.lane.b32.xlu0 %v4457_v29, %s4321_s15 }
  0xe1   :  { %427 = vrot.lane.b32.xlu2 %v4578_v58, %s4318_s13 }
  0xe2   :  { %1082 = vrot.lane.b32.xlu1 %v4470_v34, %s4321_s15  ;;  %1037 = vrot.lane.b32.xlu0 %v4482_v38, %s4319_s2 }
  0xea   :  { %1041 = vrot.lane.b32.xlu1 %v4482_v38, %s4321_s15  ;;  %998 = vrot.lane.b32.xlu0 %v4449_v23, %s4319_s2 }
  0xf2   :  { %1080 = vrot.lane.b32.xlu1 %v4491_v40, %s4321_s15  ;;  %1043 = vrot.lane.b32.xlu0 %v4522_v49, %s4321_s15 }
  0xf3   :  { %v391_v59 = vpop.permute.xlu2 %390 }
  0xfa   :  { %1002 = vrot.lane.b32.xlu1 %v4449_v23, %s4321_s15  ;;  %3915 = vrot.lane.b32.xlu0 %v4596_v60, %s4320_s14 }
  0xfb   :  { %v4602_v61 = vpop.permute.xlu2 %959 }
  0xfc   :  { %v241_v62 = vpop.permute.xlu1 %240 }
 0x102   :  { %961 = vrot.lane.b32.xlu1 %v4506_v44, %s4319_s2  ;;  %1160 = vrot.lane.b32.xlu0 %v4464_v32, %s4321_s15 }
 0x103   :  { %v4608_v63 = vpop.permute.xlu2 %1076 }
 0x104   :  { %6400 = vst [vmem:[#allocation12_spill] sm:$0xff] %v4608_v63  ;;  %v243_v0 = vpop.permute.xlu1 %242  ;;  %v168_v1 = vpop.permute.xlu0 %167 }
 0x105   :  { %3652 = vmatpush.xpose.msk.msrb.mxu3 %vm169_vm1, %v243_v0  ;;  %3644 = vmatpush.xpose.msk.msrb.mxu1 %vm169_vm1, %v168_v1  ;;  %v4685_v1 = vld [vmem:[%s6368_s3] sm:$0xff] }
 0x109   :  { %3653 = vmatpush.xpose.msk.msrb.mxu3 %vm169_vm1, %v241_v62 }
 0x10a   :  { %3920 = vrot.lane.b32.xlu1 %v4614_v2, %s4320_s14  ;;  %s4331_s14 = smov 24  }
 0x10b   :  { %v206_v3 = vpop.permute.xlu2 %205 }
 0x10c   :  { %3654 = vmatmul.msk.f32.vlgmr.msrb.gmra.mxu3 %vm169_vm1, %v4449_v23  ;;  %v317_v4 = vpop.permute.xlu1 %316  ;;  %v166_v5 = vpop.permute.xlu0 %165  ;;  %3648 = vmatpush.xpose.msk.msrb.mxu2 %vm169_vm1, %v206_v3 }
 0x10d   :  { %3645 = vmatpush.xpose.msk.msrb.mxu1 %vm169_vm1, %v166_v5 }
 0x110   :  { %3646 = vmatmul.msk.f32.vlgmr.msrb.gmra.mxu1 %vm169_vm1, %v4467_v33 }
 0x112   :  { %1039 = vrot.lane.b32.xlu1 %v4522_v49, %s4319_s2 }
 0x113   :  { %v280_v6 = vpop.permute.xlu2 %279 }
 0x114   :  { %3656 = vmatpush.xpose.msk.msra.mxu1 %vm169_vm1, %v280_v6  ;;  %3655 = vmatmul.msk.f32.gmra.mxu3 %vm169_vm1, %v4457_v29  ;;  %v278_v7 = vpop.permute.xlu1 %277  ;;  %v204_v8 = vpop.permute.xlu0 %203 }
 0x115   :  { %3649 = vmatpush.xpose.msk.msrb.mxu2 %vm169_vm1, %v204_v8 }
 0x118   :  { %3657 = vmatpush.xpose.msk.msra.mxu1 %vm169_vm1, %v278_v7  ;;  %3650 = vmatmul.msk.f32.vlgmr.msrb.gmra.mxu2 %vm169_vm1, %v4479_v36 }
 0x119   :  { %3660 = vmatpush.xpose.msk.msra.mxu2 %vm169_vm1, %v317_v4  ;;  %3647 = vmatmul.msk.f32.gmra.mxu1 %vm169_vm1, %v4454_v28 }
 0x11a   :  { %1078 = vrot.lane.b32.xlu1 %v4470_v34, %s4319_s2 }
 0x11b   :  { %v3906_v9 = vpop.permute.xlu2 %3905 }
 0x11c   :  { %3668 = vmatpush.xpose.msk.msrb.mxu1 %vm169_vm1, %v391_v59  ;;  %v389_v10 = vpop.permute.xlu1 %388  ;;  %v352_v11 = vpop.permute.xlu0 %351  ;;  %v3907_v24 = vunpack.i.l.bf16 %v3906_v9  ;;  %v3908_v27 = vunpack.i.h.bf16 %v3906_v9 }
 0x120   :  { %3669 = vmatpush.xpose.msk.msrb.mxu1 %vm169_vm1, %v389_v10  ;;  %3651 = vmatmul.msk.f32.gmra.mxu2 %vm169_vm1, %v4506_v44  ;;  %v162_v10 = vld [vmem:[%s6368_s3 + $0x8] sm:$0xff] }
 0x121   :  { %3658 = vmatmul.msk.f32.vlgmr.msra.gmra.mxu1 %vm169_vm1, %v4482_v38 }
 0x123   :  { %v3911_v12 = vpop.permute.xlu2 %3910 }
 0x124   :  { %v3912_v13 = vunpack.i.l.bf16 %v3911_v12  ;;  %v315_v14 = vpop.permute.xlu0 %314  ;;  %v3913_v15 = vunpack.i.h.bf16 %v3911_v12  ;;  %v3886_v19 = vpop.permute.xlu1 %3885 }
 0x125   :  { %3661 = vmatpush.xpose.msk.msra.mxu2 %vm169_vm1, %v315_v14  ;;  %v3887_v21 = vunpack.i.l.bf16 %v3886_v19  ;;  %v3888_v22 = vunpack.i.h.bf16 %v3886_v19 }
 0x126   :  { %698 = vmatpush.msra.mxu1 %v3912_v13 }
 0x128   :  { %699 = vmatpush.msra.mxu1 %v3913_v15  ;;  %3662 = vmatmul.msk.f32.vlgmr.msra.gmra.mxu2 %vm169_vm1, %v4491_v40 }
 0x129   :  { %3659 = vmatmul.msk.f32.gmra.mxu1 %vm169_vm1, %v4522_v49 }
 0x12b   :  { %v4650_v16 = vpop.permute.xlu2 %965 }
 0x12c   :  { %v426_v17 = vpop.permute.xlu0 %425  ;;  %v4680_v0 = vpop.permute.xlu1 %3895 }
 0x130   :  { %3663 = vmatmul.msk.f32.gmra.mxu2 %vm169_vm1, %v4470_v34 }
 0x131   :  { %3670 = vmatmul.msk.f32.vlgmr.msrb.gmra.mxu1 %vm169_vm1, %v4494_v41 }
 0x133   :  { %v354_v18 = vpop.permute.xlu2 %353 }
 0x134   :  { %3664 = vmatpush.xpose.msk.msra.mxu3 %vm169_vm1, %v354_v18  ;;  %v3891_v20 = vpop.permute.xlu0 %3890  ;;  %v4687_v4 = vpop.permute.xlu1 %924 }
 0x135   :  { %v3892_v31 = vunpack.i.l.bf16 %v3891_v20  ;;  %v3893_v37 = vunpack.i.h.bf16 %v3891_v20 }
 0x138   :  { %3665 = vmatpush.xpose.msk.msra.mxu3 %vm169_vm1, %v352_v11 }
 0x139   :  { %3671 = vmatmul.msk.f32.gmra.mxu1 %vm169_vm1, %v4464_v32 }
 0x13b   :  { %v428_v25 = vpop.permute.xlu2 %427  ;;  %3666 = vmatmul.msk.f32.vlgmr.msra.gmra.mxu3 %vm169_vm1, %v4497_v42 }
 0x13c   :  { %663 = vmatpush.msrb.mxu3 %v3887_v21  ;;  %3672 = vmatpush.xpose.msk.msrb.mxu2 %vm169_vm1, %v428_v25  ;;  %v3901_v26 = vpop.permute.xlu0 %3900  ;;  %v4704_v13 = vpop.permute.xlu1 %963 }
 0x13d   :  { %v3902_v30 = vunpack.i.l.bf16 %v3901_v26  ;;  %v3903_v35 = vunpack.i.h.bf16 %v3901_v26 }
 0x13e   :  { %664 = vmatpush.msrb.mxu3 %v3888_v22 }
 0x13f   :  { %803 = vmatpush.msrb.mxu1 %v3902_v30 }
 0x140   :  { %768 = vmatpush.msra.mxu3 %v3907_v24  ;;  %3673 = vmatpush.xpose.msk.msrb.mxu2 %vm169_vm1, %v426_v17 }
 0x141   :  { %804 = vmatpush.msrb.mxu1 %v3903_v35 }
 0x142   :  { %769 = vmatpush.msra.mxu3 %v3908_v27 }
 0x143   :  { %3667 = vmatmul.msk.f32.gmra.mxu3 %vm169_vm1, %v4569_v56  ;;  %3674 = vmatmul.msk.f32.vlgmr.msrb.gmra.mxu2 %vm169_vm1, %v4519_v48 }
 0x144   :  { %733 = vmatpush.msra.mxu2 %v3892_v31  ;;  %v4668_v39 = vpop.permute.xlu0 %926  ;;  %v4717_v24 = vpop.permute.xlu1 %920 }
 0x146   :  { %734 = vmatpush.msra.mxu2 %v3893_v37 }
 0x14b   :  { %3675 = vmatmul.msk.f32.gmra.mxu2 %vm169_vm1, %v4578_v58 }
 0x14c   :  { %v4672_v43 = vpop.permute.xlu0 %1004 }
 0x154   :  { %v4674_v46 = vpop.permute.xlu0 %1037 }
 0x155   :  { %6402 = vst [vmem:[#allocation14_spill] sm:$0xff] %v4674_v46 }
 0x15c   :  { %v4676_v47 = vpop.permute.xlu0 %998 }
 0x15d   :  { %6403 = vst [vmem:[#allocation15_spill] sm:$0xff] %v4676_v47 }
 0x164   :  { %v4678_v55 = vpop.permute.xlu0 %1043 }
 0x16c   :  { %v3916_v57 = vpop.permute.xlu0 %3915 }
 0x16d   :  { %v3917_v59 = vunpack.i.l.bf16 %v3916_v57  ;;  %v3918_v62 = vunpack.i.h.bf16 %v3916_v57 }
 0x16f   :  { %838 = vmatpush.msrb.mxu2 %v3917_v59 }
 0x171   :  { %839 = vmatpush.msrb.mxu2 %v3918_v62  ;;  %v4732_v62 = vpop.permute.xlu1 %922 }
 0x172   :  { %6404 = vst [vmem:[#allocation16_spill] sm:$0xff] %v4732_v62 }
 0x18d   :  { %v195_v3 = vpop.f32.mrf.mxu1 }
 0x18e   :  { %v4690_v5 = vadd.f32 %v195_v3, %v4685_v1 }
 0x18f   :  { %v269_v6 = vpop.f32.mrf.mxu3 }
 0x190   :  { %v4693_v7 = vadd.f32 %v269_v6, %v4685_v1  ;;  %v461_v8 = vsel %vm460_vm2, %v4690_v5, -inf }
 0x191   :  { %462 = vmax.xlane.f32.xlu1 %v461_v8 }
 0x192   :  { %v473_v9 = vsel %vm460_vm2, %v4693_v7, -inf }
 0x193   :  { %474 = vmax.xlane.f32.xlu0 %v473_v9 }
 0x196   :  { %v198_v11 = vpop.f32.mrf.mxu1 }
 0x197   :  { %v4702_v12 = vadd.f32 %v198_v11, %v162_v10  ;;  %v272_v15 = vpop.f32.mrf.mxu3 }
 0x198   :  { %v4711_v19 = vadd.f32 %v272_v15, %v162_v10 }
 0x199   :  { %v464_v14 = vsel %vm460_vm2, %v4702_v12, -inf }
 0x19a   :  { %465 = vmax.xlane.f32.xlu2 %v464_v14  ;;  %v476_v22 = vsel %vm460_vm2, %v4711_v19, -inf }
 0x19b   :  { %v232_v17 = vpop.f32.mrf.mxu2 }
 0x19c   :  { %v4709_v18 = vadd.f32 %v232_v17, %v4685_v1  ;;  %v4746_v17 = vpop.permute.xlu1 %1082 }
 0x19e   :  { %v306_v20 = vpop.f32.mrf.mxu1  ;;  %v467_v21 = vsel %vm460_vm2, %v4709_v18, -inf }
 0x19f   :  { %468 = vmax.xlane.f32.xlu1 %v467_v21  ;;  %v4722_v27 = vadd.f32 %v306_v20, %v4685_v1 }
 0x1a1   :  { %v479_v57 = vsel %vm460_vm2, %v4722_v27, -inf }
 0x1a2   :  { %477 = vmax.xlane.f32.xlu2 %v476_v22 }
 0x1a3   :  { %v235_v25 = vpop.f32.mrf.mxu2 }
 0x1a4   :  { %v4719_v26 = vadd.f32 %v235_v25, %v162_v10 }
 0x1a6   :  { %v309_v30 = vpop.f32.mrf.mxu1  ;;  %v470_v31 = vsel %vm460_vm2, %v4719_v26, -inf }
 0x1a7   :  { %v4726_v35 = vadd.f32 %v309_v30, %v162_v10  ;;  %471 = vmax.xlane.f32.xlu1 %v470_v31 }
 0x1a9   :  { %v482_v37 = vsel %vm460_vm2, %v4726_v35, -inf }
 0x1aa   :  { %483 = vmax.xlane.f32.xlu0 %v482_v37  ;;  %480 = vmax.xlane.f32.xlu2 %v479_v57  ;;  %v4757_v37 = vpop.permute.xlu1 %1041 }
 0x1ab   :  { %v343_v59 = vpop.f32.mrf.mxu2 }
 0x1ac   :  { %v4735_v3 = vadd.f32 %v343_v59, %v4685_v1 }
 0x1ae   :  { %v417_v6 = vpop.f32.mrf.mxu1  ;;  %v485_v8 = vsel %vm460_vm2, %v4735_v3, -inf }
 0x1af   :  { %v4740_v9 = vadd.f32 %v417_v6, %v4685_v1  ;;  %486 = vmax.xlane.f32.xlu1 %v485_v8 }
 0x1b1   :  { %v497_v11 = vsel %vm460_vm2, %v4740_v9, -inf }
 0x1b2   :  { %498 = vmax.xlane.f32.xlu0 %v497_v11 }
 0x1b3   :  { %v346_v14 = vpop.f32.mrf.mxu2 }
 0x1b4   :  { %v4744_v15 = vadd.f32 %v346_v14, %v162_v10  ;;  %v4765_v14 = vpop.permute.xlu1 %1080 }
 0x1b6   :  { %v420_v20 = vpop.f32.mrf.mxu1  ;;  %v488_v21 = vsel %vm460_vm2, %v4744_v15, -inf }
 0x1b7   :  { %v4750_v22 = vadd.f32 %v420_v20, %v162_v10  ;;  %489 = vmax.xlane.f32.xlu1 %v488_v21 }
 0x1b9   :  { %v500_v25 = vsel %vm460_vm2, %v4750_v22, -inf }
 0x1ba   :  { %501 = vmax.xlane.f32.xlu0 %v500_v25 }
 0x1be   :  { %v380_v30 = vpop.f32.mrf.mxu3 }
 0x1bf   :  { %v4755_v31 = vadd.f32 %v380_v30, %v4685_v1  ;;  %v4772_v30 = vpop.permute.xlu1 %1002 }
 0x1c0   :  { %6405 = vst [vmem:[#allocation17_spill] sm:$0xff] %v4772_v30 }
 0x1c1   :  { %v491_v57 = vsel %vm460_vm2, %v4755_v31, -inf }
 0x1c2   :  { %492 = vmax.xlane.f32.xlu2 %v491_v57 }
 0x1c6   :  { %v383_v59 = vpop.f32.mrf.mxu3  ;;  %v454_v8 = vpop.f32.mrf.mxu2 }
 0x1c7   :  { %v4761_v6 = vadd.f32 %v383_v59, %v162_v10  ;;  %v4768_v20 = vadd.f32 %v454_v8, %v4685_v1  ;;  %v4778_v50 = vpop.permute.xlu1 %961  ;;  %v4786_v8 = vpop.permute.xlu0 %1160 }
 0x1c8   :  { %6406 = vst [vmem:[#allocation18_spill] sm:$0xff] %v4778_v50 }
 0x1c9   :  { %v494_v11 = vsel %vm460_vm2, %v4761_v6, -inf  ;;  %v503_v21 = vsel %vm460_vm2, %v4768_v20, -inf }
 0x1ca   :  { %495 = vmax.xlane.f32.xlu2 %v494_v11 }
 0x1ce   :  { %v457_v25 = vpop.f32.mrf.mxu2 }
 0x1cf   :  { %v4774_v57 = vadd.f32 %v457_v25, %v162_v10  ;;  %v4780_v54 = vpop.permute.xlu1 %3920 }
 0x1d1   :  { %v506_v59 = vsel %vm460_vm2, %v4774_v57, -inf }
 0x1d2   :  { %504 = vmax.xlane.f32.xlu2 %v503_v21 }
 0x1d7   :  { %v4782_v11 = vpop.permute.xlu1 %1039 }
 0x1d8   :  { %6407 = vst [vmem:[#allocation19_spill] sm:$0xff] %v4782_v11 }
 0x1da   :  { %507 = vmax.xlane.f32.xlu2 %v506_v59 }
 0x1df   :  { %v4784_v1 = vpop.permute.xlu1 %1078 }
 0x1e0   :  { %6408 = vst [vmem:[#allocation20_spill] sm:$0xff] %v4784_v1 }
 0x204   :  { %v463_v51 = vpop.xlane.xlu1 %462 }
 0x205   :  { %v509_v21 = vsub.f32 %v4690_v5, %v463_v51 }
 0x206   :  { %v475_v53 = vpop.xlane.xlu0 %474 }
 0x207   :  { %v525_v10 = vmul.f32 1.442695, %v509_v21  ;;  %v513_v25 = vsub.f32 %v4693_v7, %v475_v53 }
 0x209   :  { %4046 = vpow2.f32 %v525_v10  ;;  %v533_v60 = vmul.f32 1.442695, %v513_v25 }
 0x20b   :  { %4048 = vpow2.f32 %v533_v60 }
 0x20d   :  { %v466_v59 = vpop.xlane.xlu2 %465 }
 0x20e   :  { %v510_v52 = vsub.f32 %v4702_v12, %v466_v59 }
 0x20f   :  { %v4791_v47 = vpop.eup %4046 }
 0x210   :  { %v527_v11 = vmul.f32 1.442695, %v510_v52  ;;  %v557_v1 = vsel %vm460_vm2, %v4791_v47, 0.0 }
 0x211   :  { %v4795_v63 = vpop.eup %4048  ;;  %558 = vadd.xlane.f32.xlu0 %v557_v1 }
 0x212   :  { %4050 = vpow2.f32 %v527_v11  ;;  %v469_v51 = vpop.xlane.xlu1 %468  ;;  %v569_v53 = vsel %vm460_vm2, %v4795_v63, 0.0 }
 0x213   :  { %v511_v5 = vsub.f32 %v4709_v18, %v469_v51  ;;  %570 = vadd.xlane.f32.xlu2 %v569_v53 }
 0x215   :  { %v529_v60 = vmul.f32 1.442695, %v511_v5  ;;  %v478_v7 = vpop.xlane.xlu2 %477 }
 0x216   :  { %v514_v12 = vsub.f32 %v4711_v19, %v478_v7 }
 0x217   :  { %4052 = vpow2.f32 %v529_v60 }
 0x218   :  { %v4801_v52 = vpop.eup %4050  ;;  %v535_v21 = vmul.f32 1.442695, %v514_v12 }
 0x219   :  { %v560_v10 = vsel %vm460_vm2, %v4801_v52, 0.0 }
 0x21a   :  { %4054 = vpow2.f32 %v535_v21  ;;  %561 = vadd.xlane.f32.xlu0 %v560_v10 }
 0x21d   :  { %v4805_v11 = vpop.eup %4052  ;;  %v481_v1 = vpop.xlane.xlu2 %480 }
 0x21e   :  { %v484_v25 = vpop.xlane.xlu0 %483  ;;  %v515_v18 = vsub.f32 %v4722_v27, %v481_v1  ;;  %v563_v59 = vsel %vm460_vm2, %v4805_v11, 0.0 }
 0x21f   :  { %564 = vadd.xlane.f32.xlu2 %v563_v59  ;;  %v516_v53 = vsub.f32 %v4726_v35, %v484_v25  ;;  %v472_v35 = vpop.xlane.xlu1 %471 }
 0x220   :  { %v4810_v19 = vpop.eup %4054  ;;  %v537_v51 = vmul.f32 1.442695, %v515_v18  ;;  %v512_v25 = vsub.f32 %v4719_v26, %v472_v35 }
 0x221   :  { %v572_v5 = vsel %vm460_vm2, %v4810_v19, 0.0  ;;  %v539_v60 = vmul.f32 1.442695, %v516_v53 }
 0x222   :  { %4056 = vpow2.f32 %v537_v51  ;;  %573 = vadd.xlane.f32.xlu1 %v572_v5  ;;  %v531_v51 = vmul.f32 1.442695, %v512_v25 }
 0x223   :  { %4058 = vpow2.f32 %v539_v60 }
 0x224   :  { %4060 = vpow2.f32 %v531_v51 }
 0x226   :  { %v499_v1 = vpop.xlane.xlu0 %498 }
 0x227   :  { %v487_v18 = vpop.xlane.xlu1 %486  ;;  %v521_v50 = vsub.f32 %v4740_v9, %v499_v1 }
 0x228   :  { %v4815_v7 = vpop.eup %4056 }
 0x229   :  { %v575_v27 = vsel %vm460_vm2, %v4815_v7, 0.0  ;;  %v4819_v12 = vpop.eup %4058  ;;  %v549_v25 = vmul.f32 1.442695, %v521_v50 }
 0x22a   :  { %576 = vadd.xlane.f32.xlu0 %v575_v27  ;;  %v578_v21 = vsel %vm460_vm2, %v4819_v12, 0.0  ;;  %v4833_v30 = vpop.eup %4060 }
 0x22e   :  { %v502_v53 = vpop.xlane.xlu0 %501 }
 0x22f   :  { %v522_v60 = vsub.f32 %v4750_v22, %v502_v53  ;;  %v517_v53 = vsub.f32 %v4735_v3, %v487_v18 }
 0x231   :  { %v551_v46 = vmul.f32 1.442695, %v522_v60 }
 0x232   :  { %579 = vadd.xlane.f32.xlu0 %v578_v21  ;;  %v490_v21 = vpop.xlane.xlu1 %489 }
 0x233   :  { %v518_v26 = vsub.f32 %v4744_v15, %v490_v21 }
 0x235   :  { %v493_v10 = vpop.xlane.xlu2 %492 }
 0x236   :  { %v519_v5 = vsub.f32 %v4755_v31, %v493_v10  ;;  %v566_v31 = vsel %vm460_vm2, %v4833_v30, 0.0  ;;  %v543_v10 = vmul.f32 1.442695, %v518_v26 }
 0x237   :  { %1000 = vrot.lane.b32.xlu2 %v4457_v29, %s4319_s2 }
 0x238   :  { %v545_v27 = vmul.f32 1.442695, %v519_v5  ;;  %v541_v5 = vmul.f32 1.442695, %v517_v53  ;;  %v3898_v53 = vunpack.i.h.bf16 %v4680_v0 }
 0x23a   :  { %4062 = vpow2.f32 %v545_v27 }
 0x23b   :  { %1154 = vrot.lane.b32.xlu1 %v4494_v41, %s4319_s2  ;;  %4064 = vpow2.f32 %v551_v46 }
 0x23c   :  { %4066 = vpow2.f32 %v549_v25 }
 0x23d   :  { %v496_v59 = vpop.xlane.xlu2 %495  ;;  %4068 = vpow2.f32 %v543_v10 }
 0x23e   :  { %v520_v9 = vsub.f32 %v4761_v6, %v496_v59 }
 0x240   :  { %v4839_v22 = vpop.eup %4062  ;;  %v547_v50 = vmul.f32 1.442695, %v520_v9 }
 0x241   :  { %v4842_v1 = vpop.eup %4064  ;;  %v587_v15 = vsel %vm460_vm2, %v4839_v22, 0.0 }
 0x242   :  { %v596_v46 = vsel %vm460_vm2, %v4842_v1, 0.0 }
 0x245   :  { %v505_v62 = vpop.xlane.xlu2 %504 }
 0x246   :  { %1158 = vrot.lane.b32.xlu0 %v4494_v41, %s4321_s15  ;;  %v523_v35 = vsub.f32 %v4768_v20, %v505_v62  ;;  %v4848_v62 = vpop.eup %4066 }
 0x247   :  { %v4850_v20 = vpop.eup %4068  ;;  %v593_v59 = vsel %vm460_vm2, %v4848_v62, 0.0 }
 0x248   :  { %v553_v51 = vmul.f32 1.442695, %v523_v35  ;;  %v584_v27 = vsel %vm460_vm2, %v4850_v20, 0.0 }
 0x24a   :  { %4070 = vpow2.f32 %v553_v51 }
 0x24b   :  { %4072 = vpow2.f32 %v547_v50 }
 0x24c   :  { %4074 = vpow2.f32 %v541_v5 }
 0x24d   :  { %v4869_v35 = vpop.xlane.xlu2 %507 }
 0x250   :  { %v4853_v6 = vpop.eup %4070 }
 0x251   :  { %v599_v60 = vsel %vm460_vm2, %v4853_v6, 0.0  ;;  %v4861_v21 = vpop.eup %4072 }
 0x252   :  { %v590_v3 = vsel %vm460_vm2, %v4861_v21, 0.0  ;;  %v4865_v18 = vpop.eup %4074 }
 0x253   :  { %v581_v26 = vsel %vm460_vm2, %v4865_v18, 0.0 }
 0x260   :  { %567 = vadd.xlane.f32.xlu2 %v566_v31 }
 0x265   :  { %588 = vadd.xlane.f32.xlu1 %v587_v15  ;;  %v3897_v15 = vunpack.i.l.bf16 %v4680_v0 }
 0x268   :  { %597 = vadd.xlane.f32.xlu2 %v596_v46 }
 0x26d   :  { %594 = vadd.xlane.f32.xlu1 %v593_v59 }
 0x270   :  { %600 = vadd.xlane.f32.xlu0 %v599_v60  ;;  %585 = vadd.xlane.f32.xlu2 %v584_v27  ;;  %v3929_v60 = vpack.i.bf16 %v4506_v44, %v4457_v29  ;;  %v3922_v27 = vunpack.i.l.bf16 %v4780_v54 }
 0x275   :  { %591 = vadd.xlane.f32.xlu1 %v590_v3 }
 0x27d   :  { %582 = vadd.xlane.f32.xlu1 %v581_v26 }
 0x284   :  { %1121 = vrot.lane.b32.xlu0 %v4569_v56, %s4321_s15  ;;  %v559_v25 = vpop.xlane.xlu0 %558 }
 0x285   :  { %4076 = vrcp.f32 %v559_v25 }
 0x286   :  { %v571_v31 = vpop.xlane.xlu2 %570 }
 0x287   :  { %4078 = vrcp.f32 %v571_v31  ;;  %v3954_v31 = vpack.i.bf16 %v4497_v42, %v4494_v41 }
 0x288   :  { %1119 = vrot.lane.b32.xlu2 %v4497_v42, %s4321_s15 }
 0x28b   :  { %v4077_v10 = vpop.eup %4076 }
 0x28c   :  { %v621_v51 = vmul.f32 %v4077_v10, %v4791_v47  ;;  %1156 = vrot.lane.b32.xlu0 %v4464_v32, %s4319_s2 }
 0x28d   :  { %v4079_v9 = vpop.eup %4078  ;;  %v562_v50 = vpop.xlane.xlu0 %561 }
 0x28e   :  { %v625_v46 = vmul.f32 %v4079_v9, %v4795_v63  ;;  %4080 = vrcp.f32 %v562_v50  ;;  %3676 = vmatmul.msk.f32.vlgmr.msrb.gmra.mxu3 %vm460_vm2, %v621_v51  ;;  %v524_v51 = vsub.f32 %v4774_v57, %v4869_v35 }
 0x28f   :  { %873 = vmatpush.msrb.mxu3 %v3897_v15 }
 0x290   :  { %1199 = vrot.lane.b32.xlu2 %v4578_v58, %s4321_s15  ;;  %3680 = vmatmul.msk.f32.vlgmr.msra.gmra.mxu2 %vm460_vm2, %v625_v46  ;;  %v555_v9 = vmul.f32 1.442695, %v524_v51 }
 0x291   :  { %874 = vmatpush.msrb.mxu3 %v3898_v53  ;;  %3694 = vmatpush.xpose.msk.msra.mxu2 %vm169_vm1, %v4668_v39 }
 0x292   :  { %v565_v47 = vpop.xlane.xlu2 %564 }
 0x293   :  { %4082 = vrcp.f32 %v565_v47 }
 0x294   :  { %v4081_v59 = vpop.eup %4080  ;;  %1117 = vrot.lane.b32.xlu0 %v4569_v56, %s4319_s2 }
 0x295   :  { %v574_v63 = vpop.xlane.xlu1 %573  ;;  %3695 = vmatpush.xpose.msk.msra.mxu2 %vm169_vm1, %v4687_v4  ;;  %v622_v0 = vmul.f32 %v4081_v59, %v4801_v52  ;;  %v3923_v52 = vunpack.i.h.bf16 %v4780_v54 }
 0x296   :  { %4084 = vrcp.f32 %v574_v63  ;;  %1115 = vrot.lane.b32.xlu1 %v4497_v42, %s4319_s2 }
 0x297   :  { %3677 = vmatmul.msk.f32.gmra.mxu3 %vm460_vm2, %v622_v0 }
 0x298   :  { %1193 = vrot.lane.b32.xlu2 %v4519_v48, %s4319_s2 }
 0x299   :  { %v4083_v39 = vpop.eup %4082 }
 0x29a   :  { %v623_v5 = vmul.f32 %v4083_v39, %v4805_v11  ;;  %v4909_v11 = vpack.i.bf16 %v4491_v40, %v4479_v36  ;;  %v4955_v15 = vpop.permute.xlu2 %1000 }
 0x29c   :  { %v4085_v4 = vpop.eup %4084  ;;  %3930 = vrot.lane.b32.xlu0 %v3929_v60, %s4322_s20  ;;  %3678 = vmatmul.msk.f32.vlgmr.msra.gmra.mxu1 %vm460_vm2, %v623_v5 }
 0x29d   :  { %v577_v3 = vpop.xlane.xlu0 %576  ;;  %908 = vmatpush.msra.mxu1 %v3922_v27  ;;  %v626_v26 = vmul.f32 %v4085_v4, %v4810_v19 }
 0x29e   :  { %4086 = vrcp.f32 %v577_v3  ;;  %1197 = vrot.lane.b32.xlu1 %v4519_v48, %s4321_s15 }
 0x29f   :  { %3681 = vmatmul.msk.f32.gmra.mxu2 %vm460_vm2, %v626_v26  ;;  %909 = vmatpush.msra.mxu1 %v3923_v52 }
 0x2a0   :  { %3940 = vrot.lane.b32.xlu2 %v4909_v11, %s4322_s20 }
 0x2a4   :  { %v4087_v25 = vpop.eup %4086  ;;  %1697 = vrot.lane.b32.xlu0 %v4454_v28, %s4323_s21 }
 0x2a5   :  { %v627_v54 = vmul.f32 %v4087_v25, %v4815_v7  ;;  %v580_v19 = vpop.xlane.xlu0 %579 }
 0x2a6   :  { %4088 = vrcp.f32 %v580_v19  ;;  %1195 = vrot.lane.b32.xlu1 %v4578_v58, %s4319_s2  ;;  %v6409_v19 = vld [vmem:[#allocation17_spill] sm:$0xff]  ;;  %s4330_s2 = smov 8  }
 0x2a7   :  { %3682 = vmatmul.msk.f32.vlgmr.msra.gmra.mxu3 %vm460_vm2, %v627_v54  ;;  %4090 = vpow2.f32 %v555_v9  ;;  %v6414_v9 = vld [vmem:[#allocation19_spill] sm:$0xff] }
 0x2a8   :  { %3698 = vmatpush.xpose.msk.msra.mxu3 %vm169_vm1, %v4650_v16  ;;  %3955 = vrot.lane.b32.xlu2 %v3954_v31, %s4322_s20  ;;  %v3934_v16 = vpack.i.bf16 %v4470_v34, %v4449_v23 }
 0x2ac   :  { %v4089_v10 = vpop.eup %4088  ;;  %3699 = vmatpush.xpose.msk.msra.mxu3 %vm169_vm1, %v4704_v13  ;;  %1775 = vrot.lane.b32.xlu0 %v4457_v29, %s4323_s21  ;;  %v4944_v13 = vpack.i.bf16 %v4464_v32, %v4522_v49 }
 0x2ad   :  { %v628_v7 = vmul.f32 %v4089_v10, %v4819_v12  ;;  %v3949_v12 = vpack.i.bf16 %v4569_v56, %v4482_v38  ;;  %v4961_v50 = vpop.permute.xlu1 %1154  ;;  %v4965_v53 = vpop.eup %4090 }
 0x2ae   :  { %3925 = vrot.lane.b32.xlu1 %v4510_v45, %s4322_s20  ;;  %v602_v35 = vsel %vm460_vm2, %v4965_v53, 0.0 }
 0x2af   :  { %3683 = vmatmul.msk.f32.gmra.mxu3 %vm460_vm2, %v628_v7  ;;  %v6412_v7 = vld [vmem:[#allocation14_spill] sm:$0xff] }
 0x2b0   :  { %1691 = vrot.lane.b32.xlu2 %v4467_v33, %s4324_s22 }
 0x2b4   :  { %1693 = vrot.lane.b32.xlu0 %v4454_v28, %s4324_s22 }
 0x2b6   :  { %3935 = vrot.lane.b32.xlu1 %v3934_v16, %s4322_s20  ;;  %v6413_v16 = vld [vmem:[#allocation12_spill] sm:$0xff] }
 0x2b8   :  { %v1159_v60 = vpop.permute.xlu0 %1158 }
 0x2bc   :  { %1853 = vrot.lane.b32.xlu0 %v4470_v34, %s4323_s21 }
 0x2be   :  { %3945 = vrot.lane.b32.xlu1 %v4944_v13, %s4322_s20 }
 0x2c4   :  { %3960 = vrot.lane.b32.xlu0 %v4614_v2, %s4322_s20 }
 0x2c6   :  { %3950 = vrot.lane.b32.xlu1 %v3949_v12, %s4322_s20 }
 0x2cc   :  { %1732 = vrot.lane.b32.xlu0 %v4506_v44, %s4324_s22 }
 0x2ce   :  { %1695 = vrot.lane.b32.xlu1 %v4467_v33, %s4323_s21 }
 0x2d3   :  { %v568_v46 = vpop.xlane.xlu2 %567 }
 0x2d4   :  { %4092 = vrcp.f32 %v568_v46  ;;  %1925 = vrot.lane.b32.xlu0 %v4494_v41, %s4324_s22  ;;  %v6415_v46 = vld [vmem:[#allocation20_spill] sm:$0xff] }
 0x2d6   :  { %1736 = vrot.lane.b32.xlu1 %v4506_v44, %s4323_s21 }
 0x2d8   :  { %v589_v57 = vpop.xlane.xlu1 %588 }
 0x2d9   :  { %4094 = vrcp.f32 %v589_v57  ;;  %603 = vadd.xlane.f32.xlu2 %v602_v35 }
 0x2da   :  { %v4093_v47 = vpop.eup %4092 }
 0x2db   :  { %v624_v59 = vmul.f32 %v4093_v47, %v4833_v30  ;;  %v598_v63 = vpop.xlane.xlu2 %597 }
 0x2dd   :  { %3679 = vmatmul.msk.f32.gmra.mxu1 %vm460_vm2, %v624_v59 }
 0x2de   :  { %1734 = vrot.lane.b32.xlu1 %v4479_v36, %s4323_s21 }
 0x2df   :  { %v4095_v0 = vpop.eup %4094 }
 0x2e0   :  { %v631_v39 = vmul.f32 %v4095_v0, %v4839_v22  ;;  %v595_v5 = vpop.xlane.xlu1 %594 }
 0x2e1   :  { %4096 = vrcp.f32 %v595_v5 }
 0x2e2   :  { %3686 = vmatmul.msk.f32.vlgmr.msrb.gmra.mxu2 %vm460_vm2, %v631_v39  ;;  %4098 = vrcp.f32 %v598_v63 }
 0x2e3   :  { %3706 = vmatpush.xpose.msk.msrb.mxu2 %vm169_vm1, %v4678_v55  ;;  %v586_v27 = vpop.xlane.xlu2 %585  ;;  %v601_v52 = vpop.xlane.xlu0 %600 }
 0x2e6   :  { %1851 = vrot.lane.b32.xlu1 %v4491_v40, %s4323_s21 }
 0x2e7   :  { %v4097_v30 = vpop.eup %4096  ;;  %3707 = vmatpush.xpose.msk.msrb.mxu2 %vm169_vm1, %v4757_v37 }
 0x2e8   :  { %v633_v4 = vmul.f32 %v4097_v30, %v4848_v62  ;;  %v592_v22 = vpop.xlane.xlu1 %591  ;;  %v4099_v55 = vpop.eup %4098 }
 0x2e9   :  { %4100 = vrcp.f32 %v592_v22  ;;  %v634_v62 = vmul.f32 %v4099_v55, %v4842_v1 }
 0x2ea   :  { %3688 = vmatmul.msk.f32.vlgmr.msrb.gmra.mxu3 %vm460_vm2, %v633_v4 }
 0x2eb   :  { %3710 = vmatpush.xpose.msk.msrb.mxu3 %vm169_vm1, %v4746_v17  ;;  %v1120_v25 = vpop.permute.xlu2 %1119 }
 0x2ee   :  { %1730 = vrot.lane.b32.xlu1 %v4479_v36, %s4324_s22 }
 0x2ef   :  { %v4101_v3 = vpop.eup %4100  ;;  %3711 = vmatpush.xpose.msk.msrb.mxu3 %vm169_vm1, %v4765_v14 }
 0x2f0   :  { %v583_v26 = vpop.xlane.xlu1 %582  ;;  %v632_v37 = vmul.f32 %v4101_v3, %v4861_v21 }
 0x2f1   :  { %4102 = vrcp.f32 %v583_v26  ;;  %1773 = vrot.lane.b32.xlu2 %v4449_v23, %s4323_s21 }
 0x2f2   :  { %3687 = vmatmul.msk.f32.gmra.mxu2 %vm460_vm2, %v632_v37  ;;  %3689 = vmatmul.msk.f32.gmra.mxu3 %vm460_vm2, %v634_v62  ;;  %4104 = vrcp.f32 %v586_v27 }
 0x2f3   :  { %v1200_v1 = vpop.permute.xlu2 %1199  ;;  %4106 = vrcp.f32 %v601_v52 }
 0x2f6   :  { %1771 = vrot.lane.b32.xlu1 %v4457_v29, %s4324_s22  ;;  %v1122_v17 = vpop.permute.xlu0 %1121 }
 0x2f7   :  { %v4103_v54 = vpop.eup %4102 }
 0x2f8   :  { %v629_v14 = vmul.f32 %v4103_v54, %v4865_v18  ;;  %v4105_v21 = vpop.eup %4104 }
 0x2f9   :  { %1769 = vrot.lane.b32.xlu2 %v4449_v23, %s4324_s22 }
 0x2fa   :  { %3684 = vmatmul.msk.f32.vlgmr.msrb.gmra.mxu1 %vm460_vm2, %v629_v14  ;;  %3696 = vmatmul.msk.f32.vlgmr.msra.gmra.mxu2 %vm169_vm1, %v4717_v24  ;;  %v6411_v24 = vld [vmem:[#allocation18_spill] sm:$0xff] }
 0x2fb   :  { %3700 = vmatmul.msk.f32.vlgmr.msra.gmra.mxu3 %vm169_vm1, %v4602_v61  ;;  %3702 = vmatpush.xpose.msk.msrb.mxu1 %vm169_vm1, %v4672_v43  ;;  %v630_v61 = vmul.f32 %v4105_v21, %v4850_v20  ;;  %v6410_v43 = vld [vmem:[#allocation16_spill] sm:$0xff]  ;;  %v1194_v47 = vpop.permute.xlu2 %1193 }
 0x2fc   :  { %3718 = vmatpush.xpose.msk.msra.mxu2 %vm169_vm1, %v4786_v8  ;;  %3722 = vmatpush.xpose.msk.msra.mxu3 %vm169_vm1, %v1200_v1  ;;  %v4107_v8 = vpop.eup %4106 }
 0x2fd   :  { %v635_v10 = vmul.f32 %v4107_v8, %v4853_v6 }
 0x2fe   :  { %1931 = vrot.lane.b32.xlu1 %v4464_v32, %s4323_s21  ;;  %v1157_v18 = vpop.permute.xlu0 %1156 }
 0x2ff   :  { %3703 = vmatpush.xpose.msk.msrb.mxu1 %vm169_vm1, %v6409_v19 }
 0x300   :  { %3719 = vmatpush.xpose.msk.msra.mxu2 %vm169_vm1, %v1159_v60 }
 0x301   :  { %1847 = vrot.lane.b32.xlu2 %v4491_v40, %s4324_s22 }
 0x302   :  { %3685 = vmatmul.msk.f32.gmra.mxu1 %vm460_vm2, %v630_v61  ;;  %3697 = vmatmul.msk.f32.gmra.mxu2 %vm169_vm1, %v6410_v43 }
 0x303   :  { %3701 = vmatmul.msk.f32.gmra.mxu3 %vm169_vm1, %v6411_v24  ;;  %v3941_v5 = vpop.permute.xlu2 %3940 }
 0x304   :  { %v3943_v4 = vunpack.i.h.bf16 %v3941_v5 }
 0x306   :  { %1892 = vrot.lane.b32.xlu1 %v4569_v56, %s4323_s21  ;;  %v5027_v31 = vpop.permute.xlu0 %1117 }
 0x308   :  { %v5030_v20 = vpop.permute.xlu1 %1115 }
 0x309   :  { %1814 = vrot.lane.b32.xlu2 %v4522_v49, %s4323_s21 }
 0x30a   :  { %3690 = vmatmul.msk.f32.vlgmr.msra.gmra.mxu1 %vm460_vm2, %v635_v10  ;;  %3708 = vmatmul.msk.f32.vlgmr.msrb.gmra.mxu2 %vm169_vm1, %v6412_v7  ;;  %v6420_v7 = vld [vmem:[#allocation15_spill] sm:$0xff] }
 0x30b   :  { %3712 = vmatmul.msk.f32.vlgmr.msrb.gmra.mxu3 %vm169_vm1, %v6413_v16  ;;  %3714 = vmatpush.xpose.msk.msra.mxu1 %vm169_vm1, %v1122_v17  ;;  %v3956_v55 = vpop.permute.xlu2 %3955  ;;  %v3942_v16 = vunpack.i.l.bf16 %v3941_v5  ;;  %v5118_v5 = vld [vmem:[%s6368_s3 + $0x18] sm:$0xff] }
 0x30c   :  { %v3957_v37 = vunpack.i.l.bf16 %v3956_v55 }
 0x30e   :  { %1929 = vrot.lane.b32.xlu1 %v4494_v41, %s4323_s21  ;;  %v5042_v12 = vpop.permute.xlu0 %3930 }
 0x30f   :  { %v3932_v6 = vunpack.i.l.bf16 %v5042_v12  ;;  %3715 = vmatpush.xpose.msk.msra.mxu1 %vm169_vm1, %v1120_v25  ;;  %v3933_v8 = vunpack.i.h.bf16 %v5042_v12  ;;  %v3958_v12 = vunpack.i.h.bf16 %v3956_v55 }
 0x310   :  { %v1198_v51 = vpop.permute.xlu1 %1197 }
 0x311   :  { %3723 = vmatpush.xpose.msk.msra.mxu3 %vm169_vm1, %v1198_v51  ;;  %1504 = vmatpush.msrb.mxu2 %v3932_v6  ;;  %v5074_v21 = vpop.f32.mrf.mxu3 }
 0x312   :  { %1849 = vrot.lane.b32.xlu2 %v4470_v34, %s4324_s22  ;;  %3709 = vmatmul.msk.f32.gmra.mxu2 %vm169_vm1, %v6414_v9  ;;  %6416 = vst [vmem:[#allocation17_spill] sm:$0xff] %v5074_v21 }
 0x313   :  { %3713 = vmatmul.msk.f32.gmra.mxu3 %vm169_vm1, %v6415_v46  ;;  %v5072_v1 = vpop.permute.xlu2 %1691  ;;  %v5083_v10 = vpop.f32.mrf.mxu2 }
 0x314   :  { %6419 = vst [vmem:[#allocation14_spill] sm:$0xff] %v5083_v10 }
 0x316   :  { %1808 = vrot.lane.b32.xlu1 %v4482_v38, %s4324_s22  ;;  %v5055_v57 = vpop.permute.xlu0 %1697 }
 0x318   :  { %v1196_v35 = vpop.permute.xlu1 %1195 }
 0x31a   :  { %1812 = vrot.lane.b32.xlu2 %v4482_v38, %s4323_s21  ;;  %3720 = vmatmul.msk.f32.vlgmr.msra.gmra.mxu2 %vm169_vm1, %v4961_v50  ;;  %v5076_v61 = vpop.f32.mrf.mxu3 }
 0x31b   :  { %3724 = vmatmul.msk.f32.vlgmr.msra.gmra.mxu3 %vm169_vm1, %v1194_v47  ;;  %6417 = vst [vmem:[#allocation16_spill] sm:$0xff] %v5076_v61 }
 0x31e   :  { %v5062_v59 = vpop.permute.xlu0 %1775 }
 0x320   :  { %v3926_v63 = vpop.permute.xlu1 %3925 }
 0x321   :  { %v3927_v0 = vunpack.i.l.bf16 %v3926_v63  ;;  %v3928_v39 = vunpack.i.h.bf16 %v3926_v63 }
 0x322   :  { %1890 = vrot.lane.b32.xlu2 %v4497_v42, %s4323_s21  ;;  %3721 = vmatmul.msk.f32.gmra.mxu2 %vm169_vm1, %v1157_v18  ;;  %v5087_v6 = vpop.f32.mrf.mxu2 }
 0x323   :  { %3725 = vmatmul.msk.f32.gmra.mxu3 %vm169_vm1, %v1196_v35  ;;  %1434 = vmatpush.msrb.mxu0 %v3927_v0  ;;  %6421 = vst [vmem:[#allocation12_spill] sm:$0xff] %v5087_v6 }
 0x325   :  { %1435 = vmatpush.msrb.mxu0 %v3928_v39 }
 0x326   :  { %v5068_v60 = vpop.permute.xlu0 %1693 }
 0x328   :  { %v3936_v50 = vpop.permute.xlu1 %3935 }
 0x329   :  { %v3938_v30 = vunpack.i.h.bf16 %v3936_v50  ;;  %v3937_v27 = vunpack.i.l.bf16 %v3936_v50 }
 0x32a   :  { %v5080_v24 = vpop.f32.mrf.mxu3 }
 0x32b   :  { %1505 = vmatpush.msrb.mxu2 %v3937_v27  ;;  %1574 = vmatpush.msra.mxu0 %v3938_v30  ;;  %6418 = vst [vmem:[#allocation18_spill] sm:$0xff] %v5080_v24 }
 0x32d   :  { %1575 = vmatpush.msra.mxu0 %v3943_v4 }
 0x32e   :  { %v5070_v22 = vpop.permute.xlu0 %1853 }
 0x330   :  { %v3946_v52 = vpop.permute.xlu1 %3945 }
 0x331   :  { %v3948_v3 = vunpack.i.h.bf16 %v3946_v52  ;;  %v3947_v26 = vunpack.i.l.bf16 %v3946_v52 }
 0x332   :  { %v5089_v51 = vpop.f32.mrf.mxu3 }
 0x333   :  { %1539 = vmatpush.msrb.mxu3 %v3947_v26  ;;  %1644 = vmatpush.msra.mxu2 %v3948_v3  ;;  %6422 = vst [vmem:[#allocation19_spill] sm:$0xff] %v5089_v51 }
 0x335   :  { %1645 = vmatpush.msra.mxu2 %v3957_v37 }
 0x336   :  { %v3961_v62 = vpop.permute.xlu0 %3960 }
 0x337   :  { %v3962_v54 = vunpack.i.l.bf16 %v3961_v62  ;;  %v3963_v14 = vunpack.i.h.bf16 %v3961_v62 }
 0x338   :  { %v3951_v25 = vpop.permute.xlu1 %3950 }
 0x339   :  { %v3952_v17 = vunpack.i.l.bf16 %v3951_v25 }
 0x33b   :  { %1540 = vmatpush.msrb.mxu3 %v3952_v17 }
 0x33d   :  { %1679 = vmatpush.msra.mxu3 %v3962_v54 }
 0x33f   :  { %1680 = vmatpush.msra.mxu3 %v3963_v14 }
 0x34c   :  { %v604_v18 = vpop.xlane.xlu2 %603 }
 0x34d   :  { %4108 = vrcp.f32 %v604_v18 }
 0x353   :  { %v4109_v19 = vpop.eup %4108 }
 0x354   :  { %v636_v43 = vmul.f32 %v4109_v19, %v4965_v53  ;;  %v3953_v53 = vunpack.i.h.bf16 %v3951_v25 }
 0x356   :  { %3691 = vmatmul.msk.f32.gmra.mxu1 %vm460_vm2, %v636_v43 }
 0x35e   :  { %3704 = vmatmul.msk.f32.vlgmr.msrb.gmra.mxu1 %vm169_vm1, %v6420_v7 }
 0x35f   :  { %1469 = vmatpush.msrb.mxu1 %v3933_v8 }
 0x361   :  { %1470 = vmatpush.msrb.mxu1 %v3942_v16 }
 0x365   :  { %v5093_v9 = vpop.f32.mrf.mxu2 }
 0x366   :  { %3705 = vmatmul.msk.f32.gmra.mxu1 %vm169_vm1, %v4955_v15  ;;  %6423 = vst [vmem:[#allocation20_spill] sm:$0xff] %v5093_v9  ;;  %v5108_v15 = vld [vmem:[%s6368_s3 + $0x10] sm:$0xff] }
 0x36d   :  { %v5095_v46 = vpop.f32.mrf.mxu3 }
 0x36e   :  { %6424 = vst [vmem:[#allocation15_spill] sm:$0xff] %v5095_v46  ;;  %3716 = vmatmul.msk.f32.vlgmr.msra.gmra.mxu1 %vm169_vm1, %v5030_v20 }
 0x36f   :  { %1609 = vmatpush.msra.mxu1 %v3953_v53  ;;  %v5155_v53 = vpop.permute.xlu1 %1695 }
 0x371   :  { %1610 = vmatpush.msra.mxu1 %v3958_v12 }
 0x375   :  { %v5099_v35 = vpop.f32.mrf.mxu2  ;;  %v5101_v47 = vpop.f32.mrf.mxu3 }
 0x376   :  { %6425 = vst [vmem:[#allocation21_spill] sm:$0xff] %v5099_v35  ;;  %3717 = vmatmul.msk.f32.gmra.mxu1 %vm169_vm1, %v5027_v31 }
 0x377   :  { %6426 = vst [vmem:[#allocation22_spill] sm:$0xff] %v5101_v47 }
 0x37d   :  { %v953_v63 = vpop.f32.mrf.mxu2 }
 0x37e   :  { %v5111_v0 = vadd.f32 %v5108_v15, %v953_v63  ;;  %v992_v20 = vpop.f32.mrf.mxu3 }
 0x37f   :  { %v5121_v31 = vadd.f32 %v5108_v15, %v992_v20  ;;  %v5160_v20 = vpop.f32.mrf.mxu1 }
 0x380   :  { %v1232_v39 = vsel %vm460_vm2, %v5111_v0, -inf  ;;  %6427 = vst [vmem:[#allocation23_spill] sm:$0xff] %v5160_v20 }
 0x381   :  { %1233 = vmax.xlane.f32.xlu0 %v1232_v39  ;;  %v1238_v55 = vsel %vm460_vm2, %v5121_v31, -inf }
 0x385   :  { %v956_v50 = vpop.f32.mrf.mxu2 }
 0x386   :  { %v5124_v30 = vadd.f32 %v5118_v5, %v956_v50  ;;  %v995_v27 = vpop.f32.mrf.mxu3  ;;  %v5164_v50 = vpop.permute.xlu1 %1736 }
 0x387   :  { %v5131_v52 = vadd.f32 %v5118_v5, %v995_v27  ;;  %v5166_v27 = vpop.f32.mrf.mxu1 }
 0x388   :  { %v1235_v4 = vsel %vm460_vm2, %v5124_v30, -inf  ;;  %6428 = vst [vmem:[#allocation24_spill] sm:$0xff] %v5166_v27 }
 0x389   :  { %1236 = vmax.xlane.f32.xlu2 %v1235_v4  ;;  %1239 = vmax.xlane.f32.xlu0 %v1238_v55  ;;  %v1241_v17 = vsel %vm460_vm2, %v5131_v52, -inf }
 0x38d   :  { %v1070_v3 = vpop.f32.mrf.mxu2 }
 0x38e   :  { %v5134_v26 = vadd.f32 %v5108_v15, %v1070_v3  ;;  %v1109_v37 = vpop.f32.mrf.mxu3  ;;  %v5168_v4 = vpop.permute.xlu1 %1734 }
 0x38f   :  { %v5137_v62 = vadd.f32 %v5108_v15, %v1109_v37  ;;  %v5170_v55 = vpop.f32.mrf.mxu1  ;;  %v5172_v3 = vpop.permute.xlu2 %1773 }
 0x390   :  { %v1250_v25 = vsel %vm460_vm2, %v5134_v26, -inf  ;;  %6429 = vst [vmem:[#allocation25_spill] sm:$0xff] %v5170_v55 }
 0x391   :  { %1251 = vmax.xlane.f32.xlu1 %v1250_v25  ;;  %v1256_v54 = vsel %vm460_vm2, %v5137_v62, -inf  ;;  %1242 = vmax.xlane.f32.xlu0 %v1241_v17 }
 0x392   :  { %1257 = vmax.xlane.f32.xlu2 %v1256_v54 }
 0x395   :  { %v1073_v14 = vpop.f32.mrf.mxu2 }
 0x396   :  { %v1112_v18 = vpop.f32.mrf.mxu3  ;;  %v5174_v37 = vpop.permute.xlu1 %1851 }
 0x397   :  { %v5146_v19 = vadd.f32 %v5118_v5, %v1112_v18  ;;  %v5176_v25 = vpop.f32.mrf.mxu1  ;;  %v5178_v17 = vpop.permute.xlu2 %1769 }
 0x398   :  { %6430 = vst [vmem:[#allocation26_spill] sm:$0xff] %v5176_v25 }
 0x399   :  { %v1259_v43 = vsel %vm460_vm2, %v5146_v19, -inf  ;;  %6431 = vst [vmem:[#allocation27_spill] sm:$0xff] %v5178_v17 }
 0x39a   :  { %1260 = vmax.xlane.f32.xlu2 %v1259_v43 }
 0x39d   :  { %v1187_v8 = vpop.f32.mrf.mxu2 }
 0x39e   :  { %v5151_v7 = vadd.f32 %v5108_v15, %v1187_v8  ;;  %v5180_v54 = vpop.permute.xlu1 %1730 }
 0x39f   :  { %v5182_v18 = vpop.f32.mrf.mxu1  ;;  %v5184_v43 = vpop.permute.xlu2 %1847 }
 0x3a0   :  { %v1268_v16 = vsel %vm460_vm2, %v5151_v7, -inf  ;;  %6432 = vst [vmem:[#allocation28_spill] sm:$0xff] %v5182_v18  ;;  %v5201_v18 = vpop.permute.xlu0 %1732 }
 0x3a1   :  { %1269 = vmax.xlane.f32.xlu0 %v1268_v16 }
 0x3a5   :  { %v1190_v12 = vpop.f32.mrf.mxu2 }
 0x3a6   :  { %v5158_v63 = vadd.f32 %v5118_v5, %v1190_v12  ;;  %v5188_v16 = vpop.permute.xlu1 %1771 }
 0x3a7   :  { %6434 = vst [vmem:[#allocation30_spill] sm:$0xff] %v5188_v16  ;;  %v5190_v12 = vpop.permute.xlu2 %1814 }
 0x3a8   :  { %v1271_v39 = vsel %vm460_vm2, %v5158_v63, -inf  ;;  %v5215_v6 = vpop.permute.xlu0 %1925 }
 0x3a9   :  { %1272 = vmax.xlane.f32.xlu0 %v1271_v39  ;;  %6436 = vst [vmem:[#allocation32_spill] sm:$0xff] %v5215_v6 }
 0x3ae   :  { %v5197_v35 = vpop.permute.xlu1 %1931 }
 0x3af   :  { %v5199_v9 = vpop.permute.xlu2 %1849 }
 0x3b0   :  { %6435 = vst [vmem:[#allocation31_spill] sm:$0xff] %v5199_v9 }
 0x3b7   :  { %v5210_v51 = vpop.permute.xlu2 %1812 }
 0x3bf   :  { %v5229_v21 = vpop.permute.xlu2 %1890 }
 0x3d3   :  { %v5186_v8 = vpop.f32.mrf.mxu1 }
 0x3d4   :  { %6433 = vst [vmem:[#allocation29_spill] sm:$0xff] %v5186_v8  ;;  %v5204_v8 = vadd.f32 %v5118_v5, %v1073_v14  ;;  %v1226_v14 = vpop.f32.mrf.mxu3 }
 0x3d5   :  { %v5225_v20 = vadd.f32 %v5108_v15, %v1226_v14 }
 0x3d6   :  { %v1253_v55 = vsel %vm460_vm2, %v5204_v8, -inf }
 0x3d7   :  { %v1274_v23 = vsel %vm460_vm2, %v5225_v20, -inf }
 0x3db   :  { %v1031_v39 = vpop.f32.mrf.mxu1 }
 0x3dc   :  { %v5193_v47 = vadd.f32 %v5108_v15, %v1031_v39  ;;  %v5208_v39 = vpop.permute.xlu1 %1892 }
 0x3de   :  { %v1244_v46 = vsel %vm460_vm2, %v5193_v47, -inf }
 0x3df   :  { %1245 = vmax.xlane.f32.xlu1 %v1244_v46 }
 0x3e3   :  { %v1034_v25 = vpop.f32.mrf.mxu1 }
 0x3e4   :  { %v5213_v24 = vadd.f32 %v5118_v5, %v1034_v25  ;;  %v5227_v25 = vpop.permute.xlu1 %1929 }
 0x3e6   :  { %v1247_v27 = vsel %vm460_vm2, %v5213_v24, -inf }
 0x3e7   :  { %1254 = vmax.xlane.f32.xlu1 %v1253_v55 }
 0x3eb   :  { %v1148_v46 = vpop.f32.mrf.mxu1 }
 0x3ec   :  { %v5218_v10 = vadd.f32 %v5108_v15, %v1148_v46  ;;  %v5242_v16 = vpop.permute.xlu1 %1808 }
 0x3ed   :  { %6437 = vst [vmem:[#allocation33_spill] sm:$0xff] %v5242_v16 }
 0x3ee   :  { %v1262_v55 = vsel %vm460_vm2, %v5218_v10, -inf }
 0x3ef   :  { %1248 = vmax.xlane.f32.xlu1 %v1247_v27  ;;  %1263 = vmax.xlane.f32.xlu2 %v1262_v55  ;;  %v1229_v55 = vpop.f32.mrf.mxu3 }
 0x3f0   :  { %v5240_v14 = vadd.f32 %v5118_v5, %v1229_v55 }
 0x3f3   :  { %v1151_v61 = vpop.f32.mrf.mxu1 }
 0x3f4   :  { %v5232_v46 = vadd.f32 %v5118_v5, %v1151_v61  ;;  %v1234_v40 = vpop.xlane.xlu0 %1233 }
 0x3f5   :  { %v1280_v2 = vsub.f32 %v5111_v0, %v1234_v40  ;;  %v1277_v0 = vsel %vm460_vm2, %v5240_v14, -inf }
 0x3f6   :  { %v1265_v27 = vsel %vm460_vm2, %v5232_v46, -inf }
 0x3f7   :  { %v1296_v15 = vmul.f32 1.442695, %v1280_v2  ;;  %1275 = vmax.xlane.f32.xlu1 %v1274_v23  ;;  %1266 = vmax.xlane.f32.xlu2 %v1265_v27 }
 0x3f9   :  { %4110 = vpow2.f32 %v1296_v15 }
 0x3fc   :  { %v1237_v6 = vpop.xlane.xlu2 %1236  ;;  %v1240_v61 = vpop.xlane.xlu0 %1239 }
 0x3fd   :  { %v1282_v40 = vsub.f32 %v5121_v31, %v1240_v61  ;;  %v1281_v23 = vsub.f32 %v5124_v30, %v1237_v6 }
 0x3ff   :  { %v5247_v9 = vpop.eup %4110  ;;  %v1300_v17 = vmul.f32 1.442695, %v1282_v40  ;;  %1278 = vmax.xlane.f32.xlu2 %v1277_v0  ;;  %v1298_v5 = vmul.f32 1.442695, %v1281_v23 }
 0x400   :  { %v1328_v2 = vsel %vm460_vm2, %v5247_v9, 0.0 }
 0x401   :  { %1329 = vadd.xlane.f32.xlu0 %v1328_v2  ;;  %4112 = vpow2.f32 %v1300_v17 }
 0x402   :  { %4114 = vpow2.f32 %v1298_v5 }
 0x404   :  { %v1243_v27 = vpop.xlane.xlu0 %1242  ;;  %v1252_v55 = vpop.xlane.xlu1 %1251 }
 0x405   :  { %v1258_v15 = vpop.xlane.xlu2 %1257  ;;  %v1283_v31 = vsub.f32 %v5131_v52, %v1243_v27  ;;  %v1286_v40 = vsub.f32 %v5134_v26, %v1252_v55 }
 0x407   :  { %v1302_v61 = vmul.f32 1.442695, %v1283_v31  ;;  %v5253_v16 = vpop.eup %4112  ;;  %v1308_v30 = vmul.f32 1.442695, %v1286_v40 }
 0x408   :  { %v1334_v6 = vsel %vm460_vm2, %v5253_v16, 0.0  ;;  %v5258_v17 = vpop.eup %4114 }
 0x409   :  { %1335 = vadd.xlane.f32.xlu0 %v1334_v6  ;;  %4116 = vpow2.f32 %v1302_v61  ;;  %v1331_v5 = vsel %vm460_vm2, %v5258_v17, 0.0 }
 0x40a   :  { %4118 = vpow2.f32 %v1308_v30 }
 0x40d   :  { %v1261_v0 = vpop.xlane.xlu2 %1260 }
 0x40e   :  { %v1289_v23 = vsub.f32 %v5146_v19, %v1261_v0 }
 0x40f   :  { %v5261_v52 = vpop.eup %4116 }
 0x410   :  { %v1314_v2 = vmul.f32 1.442695, %v1289_v23  ;;  %v1337_v26 = vsel %vm460_vm2, %v5261_v52, 0.0  ;;  %v5267_v27 = vpop.eup %4118 }
 0x411   :  { %1332 = vadd.xlane.f32.xlu0 %v1331_v5  ;;  %1338 = vadd.xlane.f32.xlu2 %v1337_v26  ;;  %v1346_v31 = vsel %vm460_vm2, %v5267_v27, 0.0  ;;  %v1288_v5 = vsub.f32 %v5137_v62, %v1258_v15 }
 0x412   :  { %4120 = vpow2.f32 %v1314_v2 }
 0x414   :  { %v1270_v61 = vpop.xlane.xlu0 %1269 }
 0x418   :  { %v5269_v55 = vpop.eup %4120 }
 0x419   :  { %v1355_v19 = vsel %vm460_vm2, %v5269_v55, 0.0  ;;  %1347 = vadd.xlane.f32.xlu0 %v1346_v31  ;;  %v1312_v31 = vmul.f32 1.442695, %v1288_v5 }
 0x41a   :  { %1356 = vadd.xlane.f32.xlu1 %v1355_v19 }
 0x41c   :  { %v1273_v40 = vpop.xlane.xlu0 %1272 }
 0x41d   :  { %v1293_v6 = vsub.f32 %v5158_v63, %v1273_v40 }
 0x41f   :  { %v1322_v30 = vmul.f32 1.442695, %v1293_v6 }
 0x421   :  { %4122 = vpow2.f32 %v1322_v30 }
 0x427   :  { %v5281_v2 = vpop.eup %4122 }
 0x428   :  { %v1367_v19 = vsel %vm460_vm2, %v5281_v2, 0.0 }
 0x42d   :  { %1927 = vrot.lane.b32.xlu0 %v4464_v32, %s4324_s22 }
 0x433   :  { %1810 = vrot.lane.b32.xlu1 %v4522_v49, %s4324_s22 }
 0x452   :  { %v1246_v0 = vpop.xlane.xlu1 %1245 }
 0x453   :  { %v1284_v23 = vsub.f32 %v5193_v47, %v1246_v0 }
 0x455   :  { %v1304_v26 = vmul.f32 1.442695, %v1284_v23 }
 0x457   :  { %4124 = vpow2.f32 %v1304_v26  ;;  %1368 = vadd.xlane.f32.xlu0 %v1367_v19 }
 0x458   :  { %4126 = vpow2.f32 %v1312_v31  ;;  %v1292_v31 = vsub.f32 %v5151_v7, %v1270_v61 }
 0x45a   :  { %v1255_v32 = vpop.xlane.xlu1 %1254 }
 0x45b   :  { %v1287_v63 = vsub.f32 %v5204_v8, %v1255_v32 }
 0x45d   :  { %v5286_v49 = vpop.eup %4124  ;;  %v1310_v40 = vmul.f32 1.442695, %v1287_v63 }
 0x45e   :  { %v1340_v47 = vsel %vm460_vm2, %v5286_v49, 0.0  ;;  %v5291_v15 = vpop.eup %4126 }
 0x45f   :  { %1341 = vadd.xlane.f32.xlu2 %v1340_v47  ;;  %4128 = vpow2.f32 %v1310_v40  ;;  %v1352_v5 = vsel %vm460_vm2, %v5291_v15, 0.0  ;;  %v1320_v40 = vmul.f32 1.442695, %v1292_v31 }
 0x462   :  { %v1249_v6 = vpop.xlane.xlu1 %1248  ;;  %v1264_v62 = vpop.xlane.xlu2 %1263 }
 0x463   :  { %v1290_v30 = vsub.f32 %v5218_v10, %v1264_v62  ;;  %v1285_v0 = vsub.f32 %v5213_v24, %v1249_v6 }
 0x465   :  { %v1316_v23 = vmul.f32 1.442695, %v1290_v30  ;;  %v1306_v32 = vmul.f32 1.442695, %v1285_v0  ;;  %v5297_v26 = vpop.eup %4128 }
 0x466   :  { %v1349_v24 = vsel %vm460_vm2, %v5297_v26, 0.0 }
 0x467   :  { %1353 = vadd.xlane.f32.xlu2 %v1352_v5  ;;  %4130 = vpow2.f32 %v1316_v23 }
 0x468   :  { %4132 = vpow2.f32 %v1306_v32 }
 0x46a   :  { %v1267_v8 = vpop.xlane.xlu2 %1266 }
 0x46b   :  { %v1291_v19 = vsub.f32 %v5232_v46, %v1267_v8 }
 0x46d   :  { %v1318_v63 = vmul.f32 1.442695, %v1291_v19  ;;  %v5301_v10 = vpop.eup %4130 }
 0x46e   :  { %v1358_v47 = vsel %vm460_vm2, %v5301_v10, 0.0  ;;  %v5307_v62 = vpop.eup %4132 }
 0x46f   :  { %1350 = vadd.xlane.f32.xlu2 %v1349_v24  ;;  %4134 = vpow2.f32 %v1318_v63  ;;  %1359 = vadd.xlane.f32.xlu1 %v1358_v47  ;;  %v1343_v0 = vsel %vm460_vm2, %v5307_v62, 0.0 }
 0x470   :  { %4136 = vpow2.f32 %v1320_v40 }
 0x472   :  { %v1279_v6 = vpop.xlane.xlu2 %1278 }
 0x473   :  { %v1295_v46 = vsub.f32 %v5240_v14, %v1279_v6 }
 0x474   :  { %v1330_v7 = vpop.xlane.xlu0 %1329 }
 0x475   :  { %v1326_v61 = vmul.f32 1.442695, %v1295_v46  ;;  %4138 = vrcp.f32 %v1330_v7  ;;  %v5310_v30 = vpop.eup %4134 }
 0x476   :  { %v1361_v23 = vsel %vm460_vm2, %v5310_v30, 0.0  ;;  %v5316_v5 = vpop.eup %4136 }
 0x477   :  { %4140 = vpow2.f32 %v1326_v61  ;;  %1344 = vadd.xlane.f32.xlu2 %v1343_v0  ;;  %1362 = vadd.xlane.f32.xlu1 %v1361_v23  ;;  %v1364_v31 = vsel %vm460_vm2, %v5316_v5, 0.0 }
 0x47b   :  { %v4139_v32 = vpop.eup %4138 }
 0x47c   :  { %v1392_v14 = vmul.f32 %v4139_v32, %v5247_v9  ;;  %v1336_v19 = vpop.xlane.xlu0 %1335 }
 0x47d   :  { %v5319_v8 = vpop.eup %4140  ;;  %4142 = vrcp.f32 %v1336_v19 }
 0x47e   :  { %3726 = vmatmul.msk.f32.vlgmr.msrb.gmra.mxu0 %vm460_vm2, %v1392_v14  ;;  %v1373_v63 = vsel %vm460_vm2, %v5319_v8, 0.0 }
 0x47f   :  { %3744 = vmatpush.xpose.msk.msrb.mxu0 %vm169_vm1, %v5055_v57  ;;  %1365 = vadd.xlane.f32.xlu2 %v1364_v31 }
 0x480   :  { %1374 = vadd.xlane.f32.xlu0 %v1373_v63 }
 0x483   :  { %3745 = vmatpush.xpose.msk.msrb.mxu0 %vm169_vm1, %v5155_v53  ;;  %v4143_v9 = vpop.eup %4142 }
 0x484   :  { %v1394_v24 = vmul.f32 %v4143_v9, %v5253_v16  ;;  %v1333_v47 = vpop.xlane.xlu0 %1332  ;;  %v1339_v40 = vpop.xlane.xlu2 %1338  ;;  %v3969_v16 = vpack.i.bf16 %v4470_v34, %v4506_v44 }
 0x485   :  { %4144 = vrcp.f32 %v1333_v47 }
 0x486   :  { %4146 = vrcp.f32 %v1339_v40  ;;  %3728 = vmatmul.msk.f32.vlgmr.msrb.gmra.mxu1 %vm460_vm2, %v1394_v24 }
 0x487   :  { %3748 = vmatpush.xpose.msk.msrb.mxu1 %vm169_vm1, %v5164_v50 }
 0x48b   :  { %v4145_v6 = vpop.eup %4144  ;;  %3749 = vmatpush.xpose.msk.msrb.mxu1 %vm169_vm1, %v5168_v4 }
 0x48c   :  { %v4147_v57 = vpop.eup %4146  ;;  %v1348_v46 = vpop.xlane.xlu0 %1347  ;;  %v1393_v53 = vmul.f32 %v4145_v6, %v5258_v17  ;;  %v6438_v17 = vld [vmem:[#allocation8_spill] sm:$0xff] }
 0x48d   :  { %v1395_v7 = vmul.f32 %v4147_v57, %v5261_v52  ;;  %4148 = vrcp.f32 %v1348_v46  ;;  %v6439_v52 = vld [vmem:[#allocation11_spill] sm:$0xff] }
 0x48e   :  { %3727 = vmatmul.msk.f32.gmra.mxu0 %vm460_vm2, %v1393_v53 }
 0x48f   :  { %3729 = vmatmul.msk.f32.gmra.mxu1 %vm460_vm2, %v1395_v7  ;;  %v6442_v7 = vld [vmem:[#allocation30_spill] sm:$0xff] }
 0x490   :  { %1888 = vrot.lane.b32.xlu1 %v4569_v56, %s4324_s22 }
 0x493   :  { %v4149_v50 = vpop.eup %4148 }
 0x494   :  { %1968 = vrot.lane.b32.xlu0 %v4519_v48, %s4323_s21  ;;  %v1398_v4 = vmul.f32 %v4149_v50, %v5267_v27 }
 0x496   :  { %3732 = vmatmul.msk.f32.vlgmr.msrb.gmra.mxu3 %vm460_vm2, %v1398_v4 }
 0x497   :  { %1886 = vrot.lane.b32.xlu2 %v4497_v42, %s4324_s22  ;;  %3756 = vmatpush.xpose.msk.msrb.mxu3 %vm169_vm1, %v5190_v12  ;;  %v1276_v12 = vpop.xlane.xlu1 %1275 }
 0x498   :  { %1966 = vrot.lane.b32.xlu1 %v4578_v58, %s4324_s22  ;;  %v1294_v27 = vsub.f32 %v5225_v20, %v1276_v12 }
 0x49b   :  { %3757 = vmatpush.xpose.msk.msrb.mxu3 %vm169_vm1, %v5210_v51  ;;  %v1324_v51 = vmul.f32 1.442695, %v1294_v27 }
 0x49c   :  { %3970 = vrot.lane.b32.xlu0 %v3969_v16, %s4325_s27  ;;  %v6443_v16 = vld [vmem:[#allocation32_spill] sm:$0xff] }
 0x49d   :  { %4150 = vpow2.f32 %v1324_v51 }
 0x49f   :  { %v1357_v0 = vpop.xlane.xlu1 %1356 }
 0x4a0   :  { %3975 = vrot.lane.b32.xlu1 %v4909_v11, %s4325_s27  ;;  %v3994_v11 = vpack.i.bf16 %v4494_v41, %v4482_v38 }
 0x4a3   :  { %v5373_v61 = vpop.eup %4150 }
 0x4a4   :  { %3980 = vrot.lane.b32.xlu0 %v6438_v17, %s4325_s27  ;;  %v1370_v20 = vsel %vm460_vm2, %v5373_v61, 0.0 }
 0x4a7   :  { %v5386_v19 = vpop.permute.xlu1 %1810 }
 0x4a8   :  { %2466 = vrot.lane.b32.xlu1 %v4467_v33, %s4326_s28 }
 0x4ac   :  { %3985 = vrot.lane.b32.xlu0 %v6439_v52, %s4325_s27 }
 0x4b0   :  { %2462 = vrot.lane.b32.xlu1 %v4467_v33, %s4327_s29 }
 0x4b4   :  { %3995 = vrot.lane.b32.xlu0 %v3994_v11, %s4325_s27 }
 0x4b8   :  { %2464 = vrot.lane.b32.xlu1 %v4454_v28, %s4327_s29 }
 0x4bc   :  { %2507 = vrot.lane.b32.xlu0 %v4506_v44, %s4326_s28 }
 0x4c0   :  { %1371 = vadd.xlane.f32.xlu2 %v1370_v20  ;;  %2546 = vrot.lane.b32.xlu1 %v4457_v29, %s4326_s28 }
 0x4c8   :  { %2501 = vrot.lane.b32.xlu1 %v4479_v36, %s4327_s29 }
 0x4d2   :  { %v1342_v33 = vpop.xlane.xlu2 %1341 }
 0x4d3   :  { %4152 = vrcp.f32 %v1342_v33 }
 0x4d8   :  { %1970 = vrot.lane.b32.xlu2 %v4578_v58, %s4323_s21 }
 0x4d9   :  { %v4153_v23 = vpop.eup %4152 }
 0x4da   :  { %v1396_v32 = vmul.f32 %v4153_v23, %v5286_v49  ;;  %v1354_v14 = vpop.xlane.xlu2 %1353 }
 0x4db   :  { %4154 = vrcp.f32 %v1354_v14 }
 0x4dc   :  { %3730 = vmatmul.msk.f32.vlgmr.msrb.gmra.mxu2 %vm460_vm2, %v1396_v32  ;;  %4156 = vrcp.f32 %v1357_v0 }
 0x4dd   :  { %3752 = vmatpush.xpose.msk.msrb.mxu2 %vm169_vm1, %v5062_v59 }
 0x4e0   :  { %1964 = vrot.lane.b32.xlu2 %v4519_v48, %s4324_s22 }
 0x4e1   :  { %v4155_v31 = vpop.eup %4154  ;;  %3753 = vmatpush.xpose.msk.msrb.mxu2 %vm169_vm1, %v5172_v3 }
 0x4e2   :  { %v1400_v63 = vmul.f32 %v4155_v31, %v5291_v15  ;;  %v1351_v49 = vpop.xlane.xlu2 %1350  ;;  %v1360_v9 = vpop.xlane.xlu1 %1359 }
 0x4e3   :  { %4158 = vrcp.f32 %v1351_v49  ;;  %v4157_v59 = vpop.eup %4156  ;;  %v6444_v49 = vld [vmem:[#allocation33_spill] sm:$0xff] }
 0x4e4   :  { %4160 = vrcp.f32 %v1360_v9  ;;  %3734 = vmatmul.msk.f32.vlgmr.msra.gmra.mxu0 %vm460_vm2, %v1400_v63  ;;  %v1401_v40 = vmul.f32 %v4157_v59, %v5269_v55 }
 0x4e5   :  { %3760 = vmatpush.xpose.msk.msra.mxu0 %vm169_vm1, %v5070_v22  ;;  %v1928_v22 = vpop.permute.xlu0 %1927 }
 0x4e8   :  { %3965 = vrot.lane.b32.xlu2 %v4510_v45, %s4325_s27 }
 0x4e9   :  { %v4159_v24 = vpop.eup %4158  ;;  %3761 = vmatpush.xpose.msk.msra.mxu0 %vm169_vm1, %v5174_v37 }
 0x4ea   :  { %v4161_v3 = vpop.eup %4160  ;;  %v1345_v47 = vpop.xlane.xlu2 %1344  ;;  %v1399_v15 = vmul.f32 %v4159_v24, %v5297_v26 }
 0x4eb   :  { %v1402_v6 = vmul.f32 %v4161_v3, %v5301_v10  ;;  %v1363_v57 = vpop.xlane.xlu1 %1362  ;;  %4162 = vrcp.f32 %v1345_v47 }
 0x4ec   :  { %4164 = vrcp.f32 %v1363_v57  ;;  %3733 = vmatmul.msk.f32.gmra.mxu3 %vm460_vm2, %v1399_v15  ;;  %3735 = vmatmul.msk.f32.gmra.mxu0 %vm460_vm2, %v1401_v40 }
 0x4ed   :  { %3736 = vmatmul.msk.f32.vlgmr.msra.gmra.mxu1 %vm460_vm2, %v1402_v6 }
 0x4ee   :  { %3764 = vmatpush.xpose.msk.msra.mxu1 %vm169_vm1, %v5208_v39  ;;  %v1369_v39 = vpop.xlane.xlu0 %1368 }
 0x4f0   :  { %2468 = vrot.lane.b32.xlu2 %v4454_v28, %s4326_s28 }
 0x4f1   :  { %v4163_v37 = vpop.eup %4162 }
 0x4f2   :  { %v4165_v55 = vpop.eup %4164  ;;  %3765 = vmatpush.xpose.msk.msra.mxu1 %vm169_vm1, %v5229_v21  ;;  %v1366_v26 = vpop.xlane.xlu2 %1365  ;;  %v1397_v10 = vmul.f32 %v4163_v37, %v5307_v62 }
 0x4f3   :  { %4166 = vrcp.f32 %v1366_v26  ;;  %v1403_v46 = vmul.f32 %v4165_v55, %v5310_v30 }
 0x4f4   :  { %3731 = vmatmul.msk.f32.gmra.mxu2 %vm460_vm2, %v1397_v10  ;;  %3746 = vmatmul.msk.f32.vlgmr.msrb.gmra.mxu0 %vm169_vm1, %v5072_v1  ;;  %4168 = vrcp.f32 %v1369_v39  ;;  %v5488_v39 = vld [vmem:[%s6368_s3 + $0x20] sm:$0xff] }
 0x4f5   :  { %3737 = vmatmul.msk.f32.gmra.mxu1 %vm460_vm2, %v1403_v46 }
 0x4f6   :  { %v1375_v1 = vpop.xlane.xlu0 %1374 }
 0x4f8   :  { %3990 = vrot.lane.b32.xlu2 %v4944_v13, %s4325_s27 }
 0x4f9   :  { %v4167_v28 = vpop.eup %4166 }
 0x4fa   :  { %v1404_v21 = vmul.f32 %v4167_v28, %v5316_v5  ;;  %v4169_v62 = vpop.eup %4168  ;;  %v6440_v5 = vld [vmem:[#allocation27_spill] sm:$0xff] }
 0x4fb   :  { %v1405_v13 = vmul.f32 %v4169_v62, %v5281_v2  ;;  %v5462_v59 = vpop.f32.mrf.mxu0 }
 0x4fc   :  { %3738 = vmatmul.msk.f32.vlgmr.msra.gmra.mxu2 %vm460_vm2, %v1404_v21  ;;  %3747 = vmatmul.msk.f32.gmra.mxu0 %vm169_vm1, %v5068_v60 }
 0x4fd   :  { %3750 = vmatmul.msk.f32.vlgmr.msrb.gmra.mxu1 %vm169_vm1, %v5180_v54  ;;  %3768 = vmatpush.xpose.msk.msra.mxu2 %vm169_vm1, %v5197_v35  ;;  %v1887_v54 = vpop.permute.xlu2 %1886 }
 0x500   :  { %2505 = vrot.lane.b32.xlu2 %v4479_v36, %s4326_s28  ;;  %v6441_v36 = vld [vmem:[#allocation31_spill] sm:$0xff] }
 0x501   :  { %3769 = vmatpush.xpose.msk.msra.mxu2 %vm169_vm1, %v5227_v25 }
 0x502   :  { %v1889_v30 = vpop.permute.xlu1 %1888 }
 0x504   :  { %3739 = vmatmul.msk.f32.gmra.mxu2 %vm460_vm2, %v1405_v13  ;;  %3762 = vmatmul.msk.f32.vlgmr.msra.gmra.mxu0 %vm169_vm1, %v5184_v43 }
 0x505   :  { %3751 = vmatmul.msk.f32.gmra.mxu1 %vm169_vm1, %v5201_v18 }
 0x506   :  { %v1969_v60 = vpop.permute.xlu0 %1968 }
 0x50a   :  { %v5441_v35 = vpop.permute.xlu1 %1966 }
 0x50b   :  { %v5470_v47 = vpop.f32.mrf.mxu0 }
 0x50c   :  { %3754 = vmatmul.msk.f32.vlgmr.msrb.gmra.mxu2 %vm169_vm1, %v6440_v5  ;;  %3763 = vmatmul.msk.f32.gmra.mxu0 %vm169_vm1, %v6441_v36 }
 0x50d   :  { %3766 = vmatmul.msk.f32.vlgmr.msra.gmra.mxu1 %vm169_vm1, %v1887_v54 }
 0x50e   :  { %v3971_v25 = vpop.permute.xlu0 %3970 }
 0x50f   :  { %v3972_v2 = vunpack.i.l.bf16 %v3971_v25 }
 0x511   :  { %2240 = vmatpush.msrb.mxu1 %v3972_v2 }
 0x512   :  { %v3976_v53 = vpop.permute.xlu1 %3975 }
 0x513   :  { %v3977_v43 = vunpack.i.l.bf16 %v3976_v53  ;;  %v3978_v24 = vunpack.i.h.bf16 %v3976_v53 }
 0x514   :  { %3755 = vmatmul.msk.f32.gmra.mxu2 %vm169_vm1, %v6442_v7 }
 0x515   :  { %3767 = vmatmul.msk.f32.gmra.mxu1 %vm169_vm1, %v1889_v30  ;;  %v5502_v30 = vld [vmem:[%s6368_s3 + $0x28] sm:$0xff] }
 0x516   :  { %v3981_v18 = vpop.permute.xlu0 %3980  ;;  %2241 = vmatpush.msrb.mxu1 %v3977_v43 }
 0x517   :  { %v3982_v50 = vunpack.i.l.bf16 %v3981_v18  ;;  %v3983_v4 = vunpack.i.h.bf16 %v3981_v18 }
 0x519   :  { %2275 = vmatpush.msrb.mxu2 %v3982_v50 }
 0x51b   :  { %2276 = vmatpush.msrb.mxu2 %v3983_v4 }
 0x51c   :  { %3770 = vmatmul.msk.f32.vlgmr.msra.gmra.mxu2 %vm169_vm1, %v6443_v16 }
 0x51e   :  { %v3986_v12 = vpop.permute.xlu0 %3985 }
 0x51f   :  { %v3987_v27 = vunpack.i.l.bf16 %v3986_v12  ;;  %v3988_v51 = vunpack.i.h.bf16 %v3986_v12 }
 0x521   :  { %2380 = vmatpush.msra.mxu1 %v3987_v27 }
 0x523   :  { %2381 = vmatpush.msra.mxu1 %v3988_v51 }
 0x524   :  { %3771 = vmatmul.msk.f32.gmra.mxu2 %vm169_vm1, %v1928_v22 }
 0x526   :  { %v3996_v15 = vpop.permute.xlu0 %3995 }
 0x527   :  { %v3998_v22 = vunpack.i.h.bf16 %v3996_v15  ;;  %v3997_v37 = vunpack.i.l.bf16 %v3996_v15 }
 0x533   :  { %v1372_v11 = vpop.xlane.xlu2 %1371 }
 0x534   :  { %4170 = vrcp.f32 %v1372_v11 }
 0x535   :  { %4172 = vrcp.f32 %v1375_v1 }
 0x53a   :  { %v4171_v20 = vpop.eup %4170 }
 0x53b   :  { %v1406_v33 = vmul.f32 %v4171_v20, %v5373_v61  ;;  %v1971_v0 = vpop.permute.xlu2 %1970  ;;  %v4173_v23 = vpop.eup %4172  ;;  %v3973_v61 = vunpack.i.h.bf16 %v3971_v25 }
 0x53c   :  { %v1407_v14 = vmul.f32 %v4173_v23, %v5319_v8  ;;  %v5468_v8 = vpop.f32.mrf.mxu1 }
 0x53d   :  { %3740 = vmatmul.msk.f32.vlgmr.msra.gmra.mxu3 %vm460_vm2, %v1406_v33 }
 0x53e   :  { %3772 = vmatpush.xpose.msk.msra.mxu3 %vm169_vm1, %v1971_v0 }
 0x542   :  { %3773 = vmatpush.xpose.msk.msra.mxu3 %vm169_vm1, %v1969_v60 }
 0x543   :  { %v1965_v32 = vpop.permute.xlu2 %1964 }
 0x544   :  { %v5475_v26 = vpop.f32.mrf.mxu1 }
 0x545   :  { %3741 = vmatmul.msk.f32.gmra.mxu3 %vm460_vm2, %v1407_v14 }
 0x54b   :  { %v3966_v31 = vpop.permute.xlu2 %3965 }
 0x54c   :  { %v3967_v63 = vunpack.i.l.bf16 %v3966_v31  ;;  %v3968_v9 = vunpack.i.h.bf16 %v3966_v31 }
 0x54d   :  { %3758 = vmatmul.msk.f32.vlgmr.msrb.gmra.mxu3 %vm169_vm1, %v6444_v49 }
 0x54e   :  { %2205 = vmatpush.msrb.mxu0 %v3967_v63 }
 0x550   :  { %2206 = vmatpush.msrb.mxu0 %v3968_v9 }
 0x552   :  { %2345 = vmatpush.msra.mxu0 %v3973_v61 }
 0x553   :  { %v5464_v3 = vpop.permute.xlu2 %2468 }
 0x554   :  { %2346 = vmatpush.msra.mxu0 %v3978_v24  ;;  %v5553_v24 = vpop.f32.mrf.mxu3 }
 0x555   :  { %3759 = vmatmul.msk.f32.gmra.mxu3 %vm169_vm1, %v5386_v19 }
 0x55b   :  { %v3991_v40 = vpop.permute.xlu2 %3990 }
 0x55c   :  { %v3993_v6 = vunpack.i.h.bf16 %v3991_v40  ;;  %v3992_v57 = vunpack.i.l.bf16 %v3991_v40 }
 0x55d   :  { %3774 = vmatmul.msk.f32.vlgmr.msra.gmra.mxu3 %vm169_vm1, %v1965_v32 }
 0x55e   :  { %2310 = vmatpush.msrb.mxu3 %v3992_v57  ;;  %2415 = vmatpush.msra.mxu2 %v3993_v6  ;;  %v5559_v6 = vpop.permute.xlu1 %2466 }
 0x55f   :  { %v5483_v46 = vpop.f32.mrf.mxu2 }
 0x560   :  { %2311 = vmatpush.msrb.mxu3 %v3997_v37  ;;  %2416 = vmatpush.msra.mxu2 %v3998_v22 }
 0x561   :  { %v5473_v55 = vpop.f32.mrf.mxu0 }
 0x565   :  { %3775 = vmatmul.msk.f32.gmra.mxu3 %vm169_vm1, %v5441_v35 }
 0x566   :  { %v5563_v22 = vpop.permute.xlu1 %2462 }
 0x569   :  { %v5479_v19 = vpop.f32.mrf.mxu0 }
 0x56a   :  { %v5481_v10 = vpop.f32.mrf.mxu1 }
 0x56f   :  { %v5555_v15 = vpop.f32.mrf.mxu3 }
 0x571   :  { %v1724_v28 = vpop.f32.mrf.mxu0 }
 0x572   :  { %v5490_v21 = vpop.f32.mrf.mxu1  ;;  %v5493_v1 = vadd.f32 %v5488_v39, %v1724_v28 }
 0x574   :  { %v2003_v62 = vsel %vm460_vm2, %v5493_v1, -inf }
 0x575   :  { %2004 = vmax.xlane.f32.xlu0 %v2003_v62 }
 0x577   :  { %v5497_v13 = vpop.f32.mrf.mxu2 }
 0x579   :  { %v1727_v60 = vpop.f32.mrf.mxu0 }
 0x57a   :  { %v5505_v35 = vadd.f32 %v5502_v30, %v1727_v60  ;;  %v1763_v54 = vpop.f32.mrf.mxu1 }
 0x57b   :  { %v5508_v5 = vadd.f32 %v5488_v39, %v1763_v54  ;;  %v5570_v54 = vpop.permute.xlu1 %2464 }
 0x57c   :  { %v2006_v36 = vsel %vm460_vm2, %v5505_v35, -inf }
 0x57d   :  { %v2009_v25 = vsel %vm460_vm2, %v5508_v5, -inf  ;;  %2007 = vmax.xlane.f32.xlu2 %v2006_v36 }
 0x57e   :  { %2010 = vmax.xlane.f32.xlu1 %v2009_v25 }
 0x57f   :  { %v5514_v2 = vpop.f32.mrf.mxu2 }
 0x581   :  { %v1880_v53 = vpop.f32.mrf.mxu0 }
 0x582   :  { %v1766_v43 = vpop.f32.mrf.mxu1  ;;  %v5517_v7 = vadd.f32 %v5488_v39, %v1880_v53 }
 0x583   :  { %v5520_v18 = vadd.f32 %v5502_v30, %v1766_v43  ;;  %v5577_v43 = vpop.permute.xlu1 %2546 }
 0x584   :  { %v2027_v50 = vsel %vm460_vm2, %v5517_v7, -inf }
 0x585   :  { %v2012_v4 = vsel %vm460_vm2, %v5520_v18, -inf  ;;  %2028 = vmax.xlane.f32.xlu0 %v2027_v50 }
 0x586   :  { %2013 = vmax.xlane.f32.xlu1 %v2012_v4  ;;  %v5582_v4 = vpop.permute.xlu0 %2507 }
 0x587   :  { %v5526_v16 = vpop.f32.mrf.mxu2 }
 0x589   :  { %v1883_v60 = vpop.f32.mrf.mxu0 }
 0x58a   :  { %v1919_v12 = vpop.f32.mrf.mxu1  ;;  %v5573_v36 = vadd.f32 %v5502_v30, %v1883_v60 }
 0x58b   :  { %v5529_v27 = vadd.f32 %v5488_v39, %v1919_v12 }
 0x58c   :  { %v2030_v53 = vsel %vm460_vm2, %v5573_v36, -inf }
 0x58d   :  { %v2033_v51 = vsel %vm460_vm2, %v5529_v27, -inf }
 0x58e   :  { %2034 = vmax.xlane.f32.xlu1 %v2033_v51 }
 0x58f   :  { %v1802_v11 = vpop.f32.mrf.mxu2 }
 0x590   :  { %v5534_v20 = vadd.f32 %v5488_v39, %v1802_v11 }
 0x592   :  { %v2015_v33 = vsel %vm460_vm2, %v5534_v20, -inf }
 0x593   :  { %2016 = vmax.xlane.f32.xlu2 %v2015_v33 }
 0x597   :  { %v1805_v0 = vpop.f32.mrf.mxu2 }
 0x598   :  { %v5539_v23 = vadd.f32 %v5502_v30, %v1805_v0  ;;  %v1922_v0 = vpop.f32.mrf.mxu1 }
 0x59a   :  { %v2018_v32 = vsel %vm460_vm2, %v5539_v23, -inf }
 0x59b   :  { %2019 = vmax.xlane.f32.xlu2 %v2018_v32  ;;  %v5592_v32 = vadd.f32 %v5502_v30, %v1922_v0 }
 0x59f   :  { %v1958_v14 = vpop.f32.mrf.mxu2 }
 0x5a0   :  { %v5544_v31 = vadd.f32 %v5488_v39, %v1958_v14  ;;  %v5594_v14 = vpop.permute.xlu2 %2505 }
 0x5a2   :  { %v2039_v63 = vsel %vm460_vm2, %v5544_v31, -inf }
 0x5a3   :  { %2040 = vmax.xlane.f32.xlu2 %v2039_v63 }
 0x5a7   :  { %v1961_v49 = vpop.f32.mrf.mxu2 }
 0x5a8   :  { %v5549_v9 = vadd.f32 %v5502_v30, %v1961_v49  ;;  %v5596_v49 = vpop.permute.xlu1 %2501 }
 0x5aa   :  { %v2042_v61 = vsel %vm460_vm2, %v5549_v9, -inf }
 0x5ab   :  { %2043 = vmax.xlane.f32.xlu2 %v2042_v61 }
 0x5c0   :  { %v5557_v40 = vpop.f32.mrf.mxu3 }
 0x5c8   :  { %v5561_v57 = vpop.f32.mrf.mxu3 }
 0x5c9   :  { %6445 = vst [vmem:[#allocation8_spill] sm:$0xff] %v5561_v57 }
 0x5d0   :  { %v1841_v37 = vpop.f32.mrf.mxu3 }
 0x5d1   :  { %v5566_v28 = vadd.f32 %v5488_v39, %v1841_v37  ;;  %v2036_v37 = vsel %vm460_vm2, %v5592_v32, -inf }
 0x5d3   :  { %v2021_v62 = vsel %vm460_vm2, %v5566_v28, -inf }
 0x5d4   :  { %2022 = vmax.xlane.f32.xlu0 %v2021_v62 }
 0x5d8   :  { %v1844_v25 = vpop.f32.mrf.mxu3 }
 0x5d9   :  { %v5580_v50 = vadd.f32 %v5502_v30, %v1844_v25 }
 0x5db   :  { %v2024_v11 = vsel %vm460_vm2, %v5580_v50, -inf }
 0x5dc   :  { %2031 = vmax.xlane.f32.xlu0 %v2030_v53 }
 0x5e0   :  { %v1997_v12 = vpop.f32.mrf.mxu3 }
 0x5e1   :  { %v5585_v51 = vadd.f32 %v5488_v39, %v1997_v12 }
 0x5e3   :  { %v2045_v33 = vsel %vm460_vm2, %v5585_v51, -inf }
 0x5e4   :  { %2025 = vmax.xlane.f32.xlu0 %v2024_v11  ;;  %2046 = vmax.xlane.f32.xlu1 %v2045_v33 }
 0x5e8   :  { %v2005_v63 = vpop.xlane.xlu0 %2004  ;;  %v2000_v62 = vpop.f32.mrf.mxu3 }
 0x5e9   :  { %v2051_v39 = vsub.f32 %v5493_v1, %v2005_v63  ;;  %v5602_v60 = vadd.f32 %v5502_v30, %v2000_v62 }
 0x5eb   :  { %v2067_v61 = vmul.f32 1.442695, %v2051_v39  ;;  %v2048_v1 = vsel %vm460_vm2, %v5602_v60, -inf }
 0x5ec   :  { %2037 = vmax.xlane.f32.xlu1 %v2036_v37 }
 0x5ed   :  { %4174 = vpow2.f32 %v2067_v61 }
 0x5f0   :  { %v2008_v25 = vpop.xlane.xlu2 %2007 }
 0x5f1   :  { %v2011_v53 = vpop.xlane.xlu1 %2010  ;;  %v2052_v12 = vsub.f32 %v5505_v35, %v2008_v25 }
 0x5f2   :  { %v2053_v11 = vsub.f32 %v5508_v5, %v2011_v53 }
 0x5f3   :  { %v5606_v33 = vpop.eup %4174  ;;  %v2069_v0 = vmul.f32 1.442695, %v2052_v12 }
 0x5f4   :  { %v2071_v63 = vmul.f32 1.442695, %v2053_v11  ;;  %2049 = vmax.xlane.f32.xlu1 %v2048_v1  ;;  %v2099_v39 = vsel %vm460_vm2, %v5606_v33, 0.0 }
 0x5f5   :  { %4176 = vpow2.f32 %v2069_v0  ;;  %2100 = vadd.xlane.f32.xlu0 %v2099_v39 }
 0x5f6   :  { %4178 = vpow2.f32 %v2071_v63 }
 0x5f8   :  { %v2029_v30 = vpop.xlane.xlu0 %2028 }
 0x5f9   :  { %v2059_v61 = vsub.f32 %v5517_v7, %v2029_v30 }
 0x5fb   :  { %v5613_v35 = vpop.eup %4176  ;;  %v2083_v5 = vmul.f32 1.442695, %v2059_v61 }
 0x5fc   :  { %v5615_v37 = vpop.eup %4178  ;;  %v2102_v62 = vsel %vm460_vm2, %v5613_v35, 0.0 }
 0x5fd   :  { %4180 = vpow2.f32 %v2083_v5  ;;  %v2105_v25 = vsel %vm460_vm2, %v5615_v37, 0.0  ;;  %2103 = vadd.xlane.f32.xlu0 %v2102_v62 }
 0x5fe   :  { %2106 = vadd.xlane.f32.xlu1 %v2105_v25 }
 0x603   :  { %v5621_v53 = vpop.eup %4180 }
 0x604   :  { %v2123_v12 = vsel %vm460_vm2, %v5621_v53, 0.0 }
 0x605   :  { %2124 = vadd.xlane.f32.xlu0 %v2123_v12 }
 0x606   :  { %v2017_v7 = vpop.xlane.xlu2 %2016 }
 0x607   :  { %v2055_v11 = vsub.f32 %v5534_v20, %v2017_v7 }
 0x609   :  { %v2075_v0 = vmul.f32 1.442695, %v2055_v11  ;;  %v2014_v11 = vpop.xlane.xlu1 %2013 }
 0x60b   :  { %4182 = vpow2.f32 %v2075_v0 }
 0x60e   :  { %v2020_v1 = vpop.xlane.xlu2 %2019 }
 0x60f   :  { %v2056_v63 = vsub.f32 %v5539_v23, %v2020_v1 }
 0x611   :  { %v5627_v39 = vpop.eup %4182  ;;  %v2077_v30 = vmul.f32 1.442695, %v2056_v63 }
 0x612   :  { %v2111_v61 = vsel %vm460_vm2, %v5627_v39, 0.0 }
 0x613   :  { %4184 = vpow2.f32 %v2077_v30  ;;  %2112 = vadd.xlane.f32.xlu1 %v2111_v61  ;;  %v2035_v61 = vpop.xlane.xlu1 %2034 }
 0x616   :  { %v2041_v5 = vpop.xlane.xlu2 %2040 }
 0x617   :  { %v2063_v62 = vsub.f32 %v5544_v31, %v2041_v5  ;;  %v2054_v31 = vsub.f32 %v5520_v18, %v2014_v11 }
 0x619   :  { %v5632_v25 = vpop.eup %4184  ;;  %v2091_v12 = vmul.f32 1.442695, %v2063_v62  ;;  %v2073_v30 = vmul.f32 1.442695, %v2054_v31 }
 0x61a   :  { %v2114_v20 = vsel %vm460_vm2, %v5632_v25, 0.0 }
 0x61b   :  { %4186 = vpow2.f32 %v2091_v12  ;;  %2115 = vadd.xlane.f32.xlu0 %v2114_v20 }
 0x621   :  { %v5636_v23 = vpop.eup %4186 }
 0x622   :  { %v2135_v7 = vsel %vm460_vm2, %v5636_v23, 0.0 }
 0x623   :  { %2136 = vadd.xlane.f32.xlu0 %v2135_v7 }
 0x647   :  { %v2023_v0 = vpop.xlane.xlu0 %2022 }
 0x648   :  { %v2057_v1 = vsub.f32 %v5566_v28, %v2023_v0 }
 0x64a   :  { %v2079_v63 = vmul.f32 1.442695, %v2057_v1 }
 0x64c   :  { %4188 = vpow2.f32 %v2079_v63  ;;  %v2061_v63 = vsub.f32 %v5529_v27, %v2035_v61 }
 0x64d   :  { %4190 = vpow2.f32 %v2073_v30 }
 0x64f   :  { %v2032_v5 = vpop.xlane.xlu0 %2031 }
 0x650   :  { %v2060_v62 = vsub.f32 %v5573_v36, %v2032_v5 }
 0x652   :  { %v5643_v12 = vpop.eup %4188  ;;  %v2085_v20 = vmul.f32 1.442695, %v2060_v62  ;;  %v2087_v62 = vmul.f32 1.442695, %v2061_v63 }
 0x653   :  { %v2117_v7 = vsel %vm460_vm2, %v5643_v12, 0.0  ;;  %v5647_v0 = vpop.eup %4190 }
 0x654   :  { %4192 = vpow2.f32 %v2085_v20  ;;  %2118 = vadd.xlane.f32.xlu2 %v2117_v7  ;;  %v2108_v30 = vsel %vm460_vm2, %v5647_v0, 0.0 }
 0x657   :  { %v2047_v57 = vpop.xlane.xlu1 %2046  ;;  %v2026_v28 = vpop.xlane.xlu0 %2025 }
 0x658   :  { %v2065_v18 = vsub.f32 %v5585_v51, %v2047_v57  ;;  %v2058_v11 = vsub.f32 %v5580_v50, %v2026_v28 }
 0x65a   :  { %v5651_v1 = vpop.eup %4192  ;;  %v2095_v36 = vmul.f32 1.442695, %v2065_v18  ;;  %v2081_v31 = vmul.f32 1.442695, %v2058_v11 }
 0x65b   :  { %v2126_v5 = vsel %vm460_vm2, %v5651_v1, 0.0 }
 0x65c   :  { %4194 = vpow2.f32 %v2095_v36  ;;  %2109 = vadd.xlane.f32.xlu2 %v2108_v30  ;;  %2127 = vadd.xlane.f32.xlu1 %v2126_v5 }
 0x65d   :  { %4196 = vpow2.f32 %v2081_v31 }
 0x65e   :  { %4198 = vpow2.f32 %v2087_v62 }
 0x65f   :  { %v2038_v57 = vpop.xlane.xlu1 %2037 }
 0x660   :  { %v2062_v50 = vsub.f32 %v5592_v32, %v2038_v57  ;;  %v6446_v57 = vld [vmem:[#allocation2_spill] sm:$0xff] }
 0x662   :  { %v5659_v51 = vpop.eup %4194  ;;  %v2089_v20 = vmul.f32 1.442695, %v2062_v50 }
 0x663   :  { %v5661_v7 = vpop.eup %4196  ;;  %v2141_v27 = vsel %vm460_vm2, %v5659_v51, 0.0 }
 0x664   :  { %4200 = vpow2.f32 %v2089_v20  ;;  %2142 = vadd.xlane.f32.xlu0 %v2141_v27  ;;  %v2120_v61 = vsel %vm460_vm2, %v5661_v7, 0.0  ;;  %v5667_v11 = vpop.eup %4198 }
 0x665   :  { %2121 = vadd.xlane.f32.xlu1 %v2120_v61  ;;  %v2129_v31 = vsel %vm460_vm2, %v5667_v11, 0.0 }
 0x667   :  { %v2050_v28 = vpop.xlane.xlu1 %2049 }
 0x668   :  { %v2101_v18 = vpop.xlane.xlu0 %2100 }
 0x669   :  { %4202 = vrcp.f32 %v2101_v18 }
 0x66a   :  { %v5669_v32 = vpop.eup %4200 }
 0x66b   :  { %v2132_v36 = vsel %vm460_vm2, %v5669_v32, 0.0 }
 0x66c   :  { %2133 = vadd.xlane.f32.xlu0 %v2132_v36 }
 0x66d   :  { %2130 = vadd.xlane.f32.xlu1 %v2129_v31 }
 0x66f   :  { %v4203_v63 = vpop.eup %4202 }
 0x670   :  { %v2163_v30 = vmul.f32 %v4203_v63, %v5606_v33  ;;  %v2104_v5 = vpop.xlane.xlu0 %2103 }
 0x671   :  { %v2107_v62 = vpop.xlane.xlu1 %2106  ;;  %4204 = vrcp.f32 %v2104_v5 }
 0x672   :  { %4206 = vrcp.f32 %v2107_v62  ;;  %3776 = vmatmul.msk.f32.vlgmr.msrb.gmra.mxu0 %vm460_vm2, %v2163_v30 }
 0x673   :  { %3794 = vmatpush.xpose.msk.msrb.mxu0 %vm169_vm1, %v5464_v3 }
 0x674   :  { %2544 = vrot.lane.b32.xlu2 %v6446_v57, %s4326_s28 }
 0x677   :  { %v4205_v50 = vpop.eup %4204  ;;  %3795 = vmatpush.xpose.msk.msrb.mxu0 %vm169_vm1, %v5559_v6  ;;  %v6447_v6 = vld [vmem:[#allocation13_spill] sm:$0xff] }
 0x678   :  { %v4207_v20 = vpop.eup %4206  ;;  %v2125_v27 = vpop.xlane.xlu0 %2124  ;;  %v2164_v33 = vmul.f32 %v4205_v50, %v5613_v35 }
 0x679   :  { %v2165_v61 = vmul.f32 %v4207_v20, %v5615_v37  ;;  %4208 = vrcp.f32 %v2125_v27  ;;  %v2044_v37 = vpop.xlane.xlu2 %2043  ;;  %v6450_v27 = vld [vmem:[#allocation3_spill] sm:$0xff] }
 0x67a   :  { %3777 = vmatmul.msk.f32.gmra.mxu0 %vm460_vm2, %v2164_v33 }
 0x67b   :  { %3778 = vmatmul.msk.f32.vlgmr.msrb.gmra.mxu1 %vm460_vm2, %v2165_v61 }
 0x67c   :  { %3798 = vmatpush.xpose.msk.msrb.mxu1 %vm169_vm1, %v5582_v4  ;;  %v2064_v4 = vsub.f32 %v5549_v9, %v2044_v37  ;;  %v6449_v9 = vld [vmem:[#allocation4_spill] sm:$0xff] }
 0x67e   :  { %v2093_v31 = vmul.f32 1.442695, %v2064_v4 }
 0x67f   :  { %v4209_v3 = vpop.eup %4208 }
 0x680   :  { %v2171_v18 = vmul.f32 %v4209_v3, %v5621_v53  ;;  %3799 = vmatpush.xpose.msk.msrb.mxu1 %vm169_vm1, %v5594_v14  ;;  %2503 = vrot.lane.b32.xlu0 %v4506_v44, %s4327_s29  ;;  %v6448_v44 = vld [vmem:[#allocation5_spill] sm:$0xff] }
 0x682   :  { %3784 = vmatmul.msk.f32.vlgmr.msra.gmra.mxu0 %vm460_vm2, %v2171_v18 }
 0x686   :  { %4000 = vrot.lane.b32.xlu1 %v6447_v6, %s4325_s27  ;;  %v2113_v35 = vpop.xlane.xlu1 %2112 }
 0x687   :  { %4210 = vrcp.f32 %v2113_v35 }
 0x688   :  { %2583 = vrot.lane.b32.xlu0 %v4482_v38, %s4326_s28 }
 0x68d   :  { %v4211_v53 = vpop.eup %4210 }
 0x68e   :  { %v2167_v36 = vmul.f32 %v4211_v53, %v5627_v39  ;;  %v2116_v14 = vpop.xlane.xlu0 %2115 }
 0x68f   :  { %4212 = vrcp.f32 %v2116_v14 }
 0x690   :  { %2581 = vrot.lane.b32.xlu0 %v6448_v44, %s4327_s29  ;;  %3780 = vmatmul.msk.f32.vlgmr.msrb.gmra.mxu2 %vm460_vm2, %v2167_v36  ;;  %4214 = vpow2.f32 %v2093_v31 }
 0x691   :  { %3802 = vmatpush.xpose.msk.msrb.mxu2 %vm169_vm1, %v5577_v43  ;;  %v2066_v43 = vsub.f32 %v5602_v60, %v2050_v28 }
 0x695   :  { %v4213_v63 = vpop.eup %4212 }
 0x696   :  { %v2137_v30 = vpop.xlane.xlu0 %2136  ;;  %v2168_v5 = vmul.f32 %v4213_v63, %v5632_v25  ;;  %v5710_v39 = vpop.eup %4214  ;;  %v2097_v25 = vmul.f32 1.442695, %v2066_v43 }
 0x697   :  { %4216 = vrcp.f32 %v2137_v30  ;;  %v2138_v62 = vsel %vm460_vm2, %v5710_v39, 0.0 }
 0x698   :  { %2622 = vrot.lane.b32.xlu0 %v6449_v9, %s4326_s28  ;;  %3781 = vmatmul.msk.f32.gmra.mxu2 %vm460_vm2, %v2168_v5  ;;  %4218 = vpow2.f32 %v2097_v25 }
 0x69d   :  { %v4217_v50 = vpop.eup %4216  ;;  %2139 = vadd.xlane.f32.xlu2 %v2138_v62 }
 0x69e   :  { %v2175_v20 = vmul.f32 %v4217_v50, %v5636_v23  ;;  %v5721_v33 = vpop.eup %4218 }
 0x69f   :  { %v2144_v61 = vsel %vm460_vm2, %v5721_v33, 0.0 }
 0x6a0   :  { %2663 = vrot.lane.b32.xlu0 %v4569_v56, %s4326_s28  ;;  %3788 = vmatmul.msk.f32.vlgmr.msra.gmra.mxu2 %vm460_vm2, %v2175_v20 }
 0x6a8   :  { %2702 = vrot.lane.b32.xlu0 %v6450_v27, %s4326_s28 }
 0x6b0   :  { %2145 = vadd.xlane.f32.xlu1 %v2144_v61  ;;  %2700 = vrot.lane.b32.xlu0 %v4494_v41, %s4326_s28 }
 0x6b5   :  { %2540 = vrot.lane.b32.xlu2 %v6446_v57, %s4327_s29 }
 0x6b8   :  { %2698 = vrot.lane.b32.xlu0 %v6450_v27, %s4327_s29 }
 0x6bd   :  { %2542 = vrot.lane.b32.xlu2 %v4457_v29, %s4327_s29 }
 0x6c0   :  { %2735 = vrot.lane.b32.xlu0 %v4519_v48, %s4327_s29 }
 0x6c5   :  { %2585 = vrot.lane.b32.xlu2 %v6448_v44, %s4326_s28 }
 0x6c7   :  { %v2119_v60 = vpop.xlane.xlu2 %2118 }
 0x6c8   :  { %4220 = vrcp.f32 %v2119_v60  ;;  %4015 = vrot.lane.b32.xlu0 %v6438_v17, %s4328_s10 }
 0x6c9   :  { %2618 = vrot.lane.b32.xlu1 %v6449_v9, %s4327_s29 }
 0x6cd   :  { %2579 = vrot.lane.b32.xlu2 %v4482_v38, %s4327_s29 }
 0x6ce   :  { %v4221_v23 = vpop.eup %4220 }
 0x6cf   :  { %v2169_v29 = vmul.f32 %v4221_v23, %v5643_v12  ;;  %v2110_v28 = vpop.xlane.xlu2 %2109  ;;  %v2128_v57 = vpop.xlane.xlu1 %2127 }
 0x6d0   :  { %4222 = vrcp.f32 %v2110_v28 }
 0x6d1   :  { %4224 = vrcp.f32 %v2128_v57  ;;  %2659 = vrot.lane.b32.xlu1 %v4569_v56, %s4327_s29  ;;  %3782 = vmatmul.msk.f32.vlgmr.msrb.gmra.mxu3 %vm460_vm2, %v2169_v29 }
 0x6d5   :  { %2624 = vrot.lane.b32.xlu2 %v4470_v34, %s4326_s28 }
 0x6d6   :  { %v4223_v17 = vpop.eup %4222 }
 0x6d7   :  { %v4225_v3 = vpop.eup %4224  ;;  %v2545_v18 = vpop.permute.xlu2 %2544  ;;  %v2166_v38 = vmul.f32 %v4223_v17, %v5647_v0 }
 0x6d8   :  { %v2122_v35 = vpop.xlane.xlu1 %2121  ;;  %3803 = vmatpush.xpose.msk.msrb.mxu2 %vm169_vm1, %v2545_v18  ;;  %v2172_v12 = vmul.f32 %v4225_v3, %v5651_v1  ;;  %v2143_v56 = vpop.xlane.xlu0 %2142 }
 0x6d9   :  { %4226 = vrcp.f32 %v2122_v35  ;;  %2739 = vrot.lane.b32.xlu1 %v4519_v48, %s4326_s28  ;;  %3779 = vmatmul.msk.f32.gmra.mxu1 %vm460_vm2, %v2166_v38 }
 0x6da   :  { %3785 = vmatmul.msk.f32.gmra.mxu0 %vm460_vm2, %v2172_v12 }
 0x6dd   :  { %2620 = vrot.lane.b32.xlu2 %v4470_v34, %s4327_s29 }
 0x6df   :  { %v4227_v37 = vpop.eup %4226 }
 0x6e0   :  { %v2131_v4 = vpop.xlane.xlu1 %2130  ;;  %v2170_v0 = vmul.f32 %v4227_v37, %v5661_v7  ;;  %v2134_v48 = vpop.xlane.xlu0 %2133 }
 0x6e1   :  { %4228 = vrcp.f32 %v2131_v4  ;;  %4005 = vrot.lane.b32.xlu1 %v4510_v45, %s4328_s10 }
 0x6e2   :  { %3783 = vmatmul.msk.f32.gmra.mxu3 %vm460_vm2, %v2170_v0  ;;  %3796 = vmatmul.msk.f32.vlgmr.msrb.gmra.mxu0 %vm169_vm1, %v5563_v22  ;;  %4230 = vrcp.f32 %v2134_v48 }
 0x6e3   :  { %4232 = vrcp.f32 %v2143_v56 }
 0x6e5   :  { %2661 = vrot.lane.b32.xlu2 %v4497_v42, %s4326_s28 }
 0x6e7   :  { %v4229_v1 = vpop.eup %4228 }
 0x6e8   :  { %v2173_v34 = vmul.f32 %v4229_v1, %v5667_v11  ;;  %v4231_v7 = vpop.eup %4230 }
 0x6e9   :  { %v2174_v45 = vmul.f32 %v4231_v7, %v5669_v32  ;;  %v4233_v11 = vpop.eup %4232 }
 0x6ea   :  { %3786 = vmatmul.msk.f32.vlgmr.msra.gmra.mxu1 %vm460_vm2, %v2173_v34  ;;  %3797 = vmatmul.msk.f32.gmra.mxu0 %vm169_vm1, %v5570_v54  ;;  %v5821_v34 = vld [vmem:[%s6368_s3 + $0x30] sm:$0xff] }
 0x6ed   :  { %2657 = vrot.lane.b32.xlu2 %v4497_v42, %s4327_s29  ;;  %v2177_v42 = vmul.f32 %v4233_v11, %v5659_v51 }
 0x6ef   :  { %v5800_v23 = vpop.f32.mrf.mxu0 }
 0x6f2   :  { %3787 = vmatmul.msk.f32.gmra.mxu1 %vm460_vm2, %v2174_v45  ;;  %v2504_v22 = vpop.permute.xlu0 %2503 }
 0x6f5   :  { %2696 = vrot.lane.b32.xlu2 %v4494_v41, %s4327_s29 }
 0x6f7   :  { %v5805_v3 = vpop.f32.mrf.mxu0 }
 0x6f8   :  { %v4001_v53 = vpop.permute.xlu1 %4000  ;;  %v5812_v0 = vpop.f32.mrf.mxu1 }
 0x6f9   :  { %v4002_v36 = vunpack.i.l.bf16 %v4001_v53  ;;  %v4003_v14 = vunpack.i.h.bf16 %v4001_v53 }
 0x6fa   :  { %3800 = vmatmul.msk.f32.vlgmr.msrb.gmra.mxu1 %vm169_vm1, %v5596_v49  ;;  %v2584_v54 = vpop.permute.xlu0 %2583  ;;  %v6451_v49 = vld [vmem:[#allocation9_spill] sm:$0xff] }
 0x6fb   :  { %2450 = vmatpush.msra.mxu3 %v4002_v36  ;;  %v5836_v36 = vld [vmem:[%s6368_s3 + $0x38] sm:$0xff]  ;;  %s4329_s3 = smov 16  }
 0x6fd   :  { %2451 = vmatpush.msra.mxu3 %v4003_v14  ;;  %2741 = vrot.lane.b32.xlu2 %v4578_v58, %s4326_s28 }
 0x6fe   :  { %3790 = vmatmul.msk.f32.vlgmr.msra.gmra.mxu3 %vm460_vm2, %v2177_v42 }
 0x6ff   :  { %v5809_v35 = vpop.f32.mrf.mxu0 }
 0x702   :  { %3801 = vmatmul.msk.f32.gmra.mxu1 %vm169_vm1, %v2504_v22  ;;  %v2582_v41 = vpop.permute.xlu0 %2581 }
 0x705   :  { %2737 = vrot.lane.b32.xlu2 %v4578_v58, %s4327_s29 }
 0x70a   :  { %v2623_v32 = vpop.permute.xlu0 %2622 }
 0x70d   :  { %4010 = vrot.lane.b32.xlu2 %v6451_v49, %s4328_s10 }
 0x710   :  { %v2140_v31 = vpop.xlane.xlu2 %2139 }
 0x711   :  { %4234 = vrcp.f32 %v2140_v31 }
 0x712   :  { %v2664_v44 = vpop.permute.xlu0 %2663 }
 0x713   :  { %3814 = vmatpush.xpose.msk.msra.mxu1 %vm169_vm1, %v2664_v44 }
 0x717   :  { %v4235_v51 = vpop.eup %4234 }
 0x718   :  { %v2541_v63 = vpop.permute.xlu2 %2540  ;;  %v2176_v30 = vmul.f32 %v4235_v51, %v5710_v39 }
 0x71a   :  { %v2703_v5 = vpop.permute.xlu0 %2702  ;;  %3789 = vmatmul.msk.f32.gmra.mxu2 %vm460_vm2, %v2176_v30 }
 0x71b   :  { %3818 = vmatpush.xpose.msk.msra.mxu2 %vm169_vm1, %v2703_v5 }
 0x720   :  { %v2543_v9 = vpop.permute.xlu2 %2542 }
 0x722   :  { %v2701_v58 = vpop.permute.xlu0 %2700  ;;  %3804 = vmatmul.msk.f32.vlgmr.msrb.gmra.mxu2 %vm169_vm1, %v2541_v63 }
 0x723   :  { %v2146_v62 = vpop.xlane.xlu1 %2145  ;;  %3819 = vmatpush.xpose.msk.msra.mxu2 %vm169_vm1, %v2701_v58 }
 0x724   :  { %4236 = vrcp.f32 %v2146_v62  ;;  %v5857_v62 = vpop.f32.mrf.mxu2 }
 0x728   :  { %v2586_v50 = vpop.permute.xlu2 %2585 }
 0x729   :  { %3806 = vmatpush.xpose.msk.msrb.mxu3 %vm169_vm1, %v2586_v50 }
 0x72a   :  { %v4237_v43 = vpop.eup %4236  ;;  %v2699_v20 = vpop.permute.xlu0 %2698  ;;  %3805 = vmatmul.msk.f32.gmra.mxu2 %vm169_vm1, %v2543_v9 }
 0x72b   :  { %v2178_v39 = vmul.f32 %v4237_v43, %v5721_v33 }
 0x72c   :  { %v5861_v43 = vpop.f32.mrf.mxu2 }
 0x72d   :  { %3791 = vmatmul.msk.f32.gmra.mxu3 %vm460_vm2, %v2178_v39 }
 0x72e   :  { %3807 = vmatpush.xpose.msk.msrb.mxu3 %vm169_vm1, %v2584_v54 }
 0x730   :  { %v2580_v25 = vpop.permute.xlu2 %2579 }
 0x732   :  { %v2736_v27 = vpop.permute.xlu0 %2735 }
 0x735   :  { %3808 = vmatmul.msk.f32.vlgmr.msrb.gmra.mxu3 %vm169_vm1, %v2580_v25 }
 0x738   :  { %v2625_v61 = vpop.permute.xlu2 %2624 }
 0x739   :  { %3810 = vmatpush.xpose.msk.msra.mxu0 %vm169_vm1, %v2625_v61 }
 0x73a   :  { %v4016_v60 = vpop.permute.xlu0 %4015 }
 0x73b   :  { %v2619_v29 = vpop.permute.xlu1 %2618  ;;  %v4017_v28 = vunpack.i.l.bf16 %v4016_v60  ;;  %v4018_v33 = vunpack.i.h.bf16 %v4016_v60 }
 0x73d   :  { %3809 = vmatmul.msk.f32.gmra.mxu3 %vm169_vm1, %v2582_v41  ;;  %3811 = vmatpush.xpose.msk.msra.mxu0 %vm169_vm1, %v2623_v32 }
 0x73e   :  { %3046 = vmatpush.msrb.mxu2 %v4017_v28 }
 0x740   :  { %3047 = vmatpush.msrb.mxu2 %v4018_v33  ;;  %v2621_v57 = vpop.permute.xlu2 %2620  ;;  %3812 = vmatmul.msk.f32.vlgmr.msra.gmra.mxu0 %vm169_vm1, %v2619_v29 }
 0x743   :  { %v2660_v17 = vpop.permute.xlu1 %2659 }
 0x748   :  { %v2662_v18 = vpop.permute.xlu2 %2661  ;;  %3813 = vmatmul.msk.f32.gmra.mxu0 %vm169_vm1, %v2621_v57 }
 0x749   :  { %3815 = vmatpush.xpose.msk.msra.mxu1 %vm169_vm1, %v2662_v18 }
 0x74b   :  { %v2740_v38 = vpop.permute.xlu1 %2739 }
 0x750   :  { %v2658_v12 = vpop.permute.xlu2 %2657 }
 0x751   :  { %3816 = vmatmul.msk.f32.vlgmr.msra.gmra.mxu1 %vm169_vm1, %v2658_v12 }
 0x753   :  { %v4006_v56 = vpop.permute.xlu1 %4005 }
 0x754   :  { %v4007_v37 = vunpack.i.l.bf16 %v4006_v56  ;;  %v4008_v4 = vunpack.i.h.bf16 %v4006_v56  ;;  %v5865_v39 = vpop.f32.mrf.mxu3 }
 0x756   :  { %2976 = vmatpush.msrb.mxu0 %v4007_v37  ;;  %v5823_v7 = vpop.f32.mrf.mxu1 }
 0x757   :  { %v5814_v48 = vpop.f32.mrf.mxu0 }
 0x758   :  { %2977 = vmatpush.msrb.mxu0 %v4008_v4  ;;  %v2697_v1 = vpop.permute.xlu2 %2696 }
 0x759   :  { %3817 = vmatmul.msk.f32.gmra.mxu1 %vm169_vm1, %v2660_v17  ;;  %3820 = vmatmul.msk.f32.vlgmr.msra.gmra.mxu2 %vm169_vm1, %v2697_v1 }
 0x75f   :  { %v2495_v45 = vpop.f32.mrf.mxu0 }
 0x760   :  { %v5826_v22 = vadd.f32 %v5821_v34, %v2495_v45  ;;  %v2742_v53 = vpop.permute.xlu2 %2741 }
 0x761   :  { %3821 = vmatmul.msk.f32.gmra.mxu2 %vm169_vm1, %v2699_v20  ;;  %3822 = vmatpush.xpose.msk.msra.mxu3 %vm169_vm1, %v2742_v53  ;;  %v5863_v20 = vpop.f32.mrf.mxu2 }
 0x762   :  { %v2774_v11 = vsel %vm460_vm2, %v5826_v22, -inf }
 0x763   :  { %2775 = vmax.xlane.f32.xlu1 %v2774_v11 }
 0x765   :  { %3823 = vmatpush.xpose.msk.msra.mxu3 %vm169_vm1, %v2740_v38 }
 0x767   :  { %v5838_v54 = vpop.f32.mrf.mxu1  ;;  %v2498_v14 = vpop.f32.mrf.mxu0 }
 0x768   :  { %v5841_v42 = vadd.f32 %v5836_v36, %v2498_v14  ;;  %v2738_v41 = vpop.permute.xlu2 %2737  ;;  %3824 = vmatmul.msk.f32.vlgmr.msra.gmra.mxu3 %vm169_vm1, %v2736_v27  ;;  %v5869_v27 = vpop.f32.mrf.mxu3 }
 0x76a   :  { %v2777_v32 = vsel %vm460_vm2, %v5841_v42, -inf }
 0x76b   :  { %2778 = vmax.xlane.f32.xlu0 %v2777_v32 }
 0x76f   :  { %v5846_v49 = vpop.f32.mrf.mxu1 }
 0x770   :  { %v4011_v31 = vpop.permute.xlu2 %4010  ;;  %3825 = vmatmul.msk.f32.gmra.mxu3 %vm169_vm1, %v2738_v41 }
 0x771   :  { %v4012_v44 = vunpack.i.l.bf16 %v4011_v31  ;;  %v4013_v51 = vunpack.i.h.bf16 %v4011_v31 }
 0x773   :  { %3011 = vmatpush.msrb.mxu1 %v4012_v44 }
 0x775   :  { %3012 = vmatpush.msrb.mxu1 %v4013_v51 }
 0x777   :  { %v2534_v63 = vpop.f32.mrf.mxu1 }
 0x778   :  { %v5850_v30 = vadd.f32 %v5821_v34, %v2534_v63 }
 0x77a   :  { %v2780_v5 = vsel %vm460_vm2, %v5850_v30, -inf }
 0x77b   :  { %2781 = vmax.xlane.f32.xlu2 %v2780_v5 }
 0x77f   :  { %v2537_v9 = vpop.f32.mrf.mxu1 }
 0x780   :  { %v5855_v58 = vadd.f32 %v5836_v36, %v2537_v9 }
 0x781   :  { %v5874_v29 = vpop.f32.mrf.mxu3 }
 0x782   :  { %v2783_v50 = vsel %vm460_vm2, %v5855_v58, -inf }
 0x783   :  { %2784 = vmax.xlane.f32.xlu1 %v2783_v50 }
 0x79d   :  { %v5867_v25 = vpop.f32.mrf.mxu2 }
 0x7a5   :  { %v2573_v61 = vpop.f32.mrf.mxu2 }
 0x7a6   :  { %v5872_v60 = vadd.f32 %v5821_v34, %v2573_v61 }
 0x7a8   :  { %v2786_v28 = vsel %vm460_vm2, %v5872_v60, -inf }
 0x7a9   :  { %2787 = vmax.xlane.f32.xlu2 %v2786_v28 }
 0x7ad   :  { %v2576_v31 = vpop.f32.mrf.mxu2 }
 0x7ae   :  { %v5906_v44 = vadd.f32 %v5836_v36, %v2576_v31 }
 0x7b0   :  { %v5878_v33 = vpop.f32.mrf.mxu3  ;;  %v2789_v5 = vsel %vm460_vm2, %v5906_v44, -inf }
 0x7b8   :  { %v2612_v57 = vpop.f32.mrf.mxu3 }
 0x7b9   :  { %v5881_v17 = vadd.f32 %v5821_v34, %v2612_v57 }
 0x7bb   :  { %v2792_v18 = vsel %vm460_vm2, %v5881_v17, -inf }
 0x7bc   :  { %2793 = vmax.xlane.f32.xlu1 %v2792_v18 }
 0x7bd   :  { %v2651_v38 = vpop.f32.mrf.mxu0 }
 0x7be   :  { %v5886_v12 = vadd.f32 %v5821_v34, %v2651_v38 }
 0x7c0   :  { %v2615_v56 = vpop.f32.mrf.mxu3  ;;  %v2798_v37 = vsel %vm460_vm2, %v5886_v12, -inf }
 0x7c1   :  { %v5891_v4 = vadd.f32 %v5836_v36, %v2615_v56  ;;  %2799 = vmax.xlane.f32.xlu0 %v2798_v37 }
 0x7c3   :  { %v2795_v1 = vsel %vm460_vm2, %v5891_v4, -inf }
 0x7c4   :  { %2796 = vmax.xlane.f32.xlu2 %v2795_v1 }
 0x7c5   :  { %v2654_v45 = vpop.f32.mrf.mxu0 }
 0x7c6   :  { %v5896_v53 = vadd.f32 %v5836_v36, %v2654_v45 }
 0x7c8   :  { %v2801_v11 = vsel %vm460_vm2, %v5896_v53, -inf }
 0x7c9   :  { %2802 = vmax.xlane.f32.xlu0 %v2801_v11 }
 0x7ce   :  { %v2690_v14 = vpop.f32.mrf.mxu1 }
 0x7cf   :  { %v5901_v41 = vadd.f32 %v5821_v34, %v2690_v14 }
 0x7d1   :  { %v2804_v32 = vsel %vm460_vm2, %v5901_v41, -inf }
 0x7d2   :  { %2805 = vmax.xlane.f32.xlu0 %v2804_v32 }
 0x7d6   :  { %v2776_v51 = vpop.xlane.xlu1 %2775  ;;  %v2693_v9 = vpop.f32.mrf.mxu1 }
 0x7d7   :  { %v2822_v63 = vsub.f32 %v5826_v22, %v2776_v51  ;;  %v5912_v28 = vadd.f32 %v5836_v36, %v2693_v9 }
 0x7d9   :  { %v2838_v50 = vmul.f32 1.442695, %v2822_v63  ;;  %v2807_v37 = vsel %vm460_vm2, %v5912_v28, -inf }
 0x7da   :  { %2790 = vmax.xlane.f32.xlu0 %v2789_v5 }
 0x7db   :  { %4238 = vpow2.f32 %v2838_v50 }
 0x7dc   :  { %v2729_v61 = vpop.f32.mrf.mxu2 }
 0x7dd   :  { %v5915_v57 = vadd.f32 %v5821_v34, %v2729_v61 }
 0x7de   :  { %v2779_v18 = vpop.xlane.xlu0 %2778 }
 0x7df   :  { %v2823_v38 = vsub.f32 %v5841_v42, %v2779_v18  ;;  %v2810_v56 = vsel %vm460_vm2, %v5915_v57, -inf }
 0x7e0   :  { %2811 = vmax.xlane.f32.xlu1 %v2810_v56 }
 0x7e1   :  { %v2840_v22 = vmul.f32 1.442695, %v2823_v38  ;;  %v5925_v11 = vpop.eup %4238 }
 0x7e2   :  { %2808 = vmax.xlane.f32.xlu0 %v2807_v37  ;;  %v2870_v32 = vsel %vm460_vm2, %v5925_v11, 0.0 }
 0x7e3   :  { %4240 = vpow2.f32 %v2840_v22 }
 0x7e4   :  { %v2732_v1 = vpop.f32.mrf.mxu2 }
 0x7e5   :  { %v5923_v45 = vadd.f32 %v5836_v36, %v2732_v1 }
 0x7e7   :  { %v2813_v42 = vsel %vm460_vm2, %v5923_v45, -inf }
 0x7e8   :  { %2814 = vmax.xlane.f32.xlu1 %v2813_v42 }
 0x7e9   :  { %v5929_v14 = vpop.eup %4240 }
 0x7ea   :  { %2871 = vadd.xlane.f32.xlu0 %v2870_v32  ;;  %v2873_v31 = vsel %vm460_vm2, %v5929_v14, 0.0  ;;  %v6452_v32 = vld [vmem:[#allocation7_spill] sm:$0xff] }
 0x7eb   :  { %2874 = vadd.xlane.f32.xlu2 %v2873_v31  ;;  %v2768_v51 = vpop.f32.mrf.mxu3 }
 0x7ec   :  { %v5936_v63 = vadd.f32 %v5821_v34, %v2768_v51 }
 0x7ee   :  { %v2782_v5 = vpop.xlane.xlu2 %2781  ;;  %v2816_v9 = vsel %vm460_vm2, %v5936_v63, -inf }
 0x7ef   :  { %v2824_v50 = vsub.f32 %v5850_v30, %v2782_v5 }
 0x7f0   :  { %2817 = vmax.xlane.f32.xlu1 %v2816_v9 }
 0x7f1   :  { %v2842_v61 = vmul.f32 1.442695, %v2824_v50 }
 0x7f3   :  { %4242 = vpow2.f32 %v2842_v61  ;;  %v2771_v18 = vpop.f32.mrf.mxu3 }
 0x7f4   :  { %v5942_v38 = vadd.f32 %v5836_v36, %v2771_v18 }
 0x7f6   :  { %v2785_v56 = vpop.xlane.xlu1 %2784  ;;  %v2819_v22 = vsel %vm460_vm2, %v5942_v38, -inf }
 0x7f7   :  { %v2825_v34 = vsub.f32 %v5855_v58, %v2785_v56  ;;  %2820 = vmax.xlane.f32.xlu0 %v2819_v22  ;;  %v6453_v58 = vld [vmem:[#allocation10_spill] sm:$0xff] }
 0x7f9   :  { %v5947_v37 = vpop.eup %4242  ;;  %v2844_v1 = vmul.f32 1.442695, %v2825_v34 }
 0x7fa   :  { %v2876_v30 = vsel %vm460_vm2, %v5947_v37, 0.0 }
 0x7fb   :  { %4244 = vpow2.f32 %v2844_v1  ;;  %2877 = vadd.xlane.f32.xlu2 %v2876_v30 }
 0x801   :  { %v5951_v42 = vpop.eup %4244 }
 0x802   :  { %v2879_v36 = vsel %vm460_vm2, %v5951_v42, 0.0 }
 0x803   :  { %2880 = vadd.xlane.f32.xlu0 %v2879_v36 }
 0x813   :  { %4020 = vrot.lane.b32.xlu2 %v6452_v32, %s4328_s10 }
 0x817   :  { %4025 = vrot.lane.b32.xlu0 %v6453_v58, %s4328_s10 }
 0x81c   :  { %v2788_v31 = vpop.xlane.xlu2 %2787 }
 0x81d   :  { %v2826_v9 = vsub.f32 %v5872_v60, %v2788_v31 }
 0x81f   :  { %v2846_v61 = vmul.f32 1.442695, %v2826_v9 }
 0x82f   :  { %v2794_v18 = vpop.xlane.xlu1 %2793 }
 0x830   :  { %v2828_v34 = vsub.f32 %v5881_v17, %v2794_v18 }
 0x832   :  { %v2850_v30 = vmul.f32 1.442695, %v2828_v34 }
 0x834   :  { %v2800_v51 = vpop.xlane.xlu0 %2799 }
 0x835   :  { %v2830_v5 = vsub.f32 %v5886_v12, %v2800_v51 }
 0x837   :  { %v2854_v50 = vmul.f32 1.442695, %v2830_v5  ;;  %v2797_v31 = vpop.xlane.xlu2 %2796 }
 0x838   :  { %v2829_v9 = vsub.f32 %v5891_v4, %v2797_v31 }
 0x839   :  { %4246 = vpow2.f32 %v2854_v50 }
 0x83a   :  { %4248 = vpow2.f32 %v2846_v61  ;;  %v2852_v18 = vmul.f32 1.442695, %v2829_v9 }
 0x83b   :  { %4250 = vpow2.f32 %v2850_v30 }
 0x83c   :  { %v2803_v56 = vpop.xlane.xlu0 %2802 }
 0x83d   :  { %v2831_v50 = vsub.f32 %v5896_v53, %v2803_v56 }
 0x83f   :  { %v5961_v22 = vpop.eup %4246 }
 0x840   :  { %v2894_v1 = vsel %vm460_vm2, %v5961_v22, 0.0  ;;  %v5966_v36 = vpop.eup %4248 }
 0x841   :  { %2895 = vadd.xlane.f32.xlu1 %v2894_v1  ;;  %v2882_v32 = vsel %vm460_vm2, %v5966_v36, 0.0  ;;  %v5971_v51 = vpop.eup %4250  ;;  %v2856_v1 = vmul.f32 1.442695, %v2831_v50 }
 0x845   :  { %v2806_v12 = vpop.xlane.xlu0 %2805 }
 0x846   :  { %v2832_v60 = vsub.f32 %v5901_v41, %v2806_v12  ;;  %v2888_v41 = vsel %vm460_vm2, %v5971_v51, 0.0 }
 0x848   :  { %v2858_v58 = vmul.f32 1.442695, %v2832_v60 }
 0x849   :  { %2883 = vadd.xlane.f32.xlu1 %v2882_v32 }
 0x84a   :  { %4252 = vpow2.f32 %v2858_v58 }
 0x84d   :  { %v2791_v17 = vpop.xlane.xlu0 %2790 }
 0x84e   :  { %v2827_v5 = vsub.f32 %v5906_v44, %v2791_v17 }
 0x850   :  { %v2848_v61 = vmul.f32 1.442695, %v2827_v5  ;;  %v5980_v30 = vpop.eup %4252 }
 0x851   :  { %2889 = vadd.xlane.f32.xlu1 %v2888_v41  ;;  %v2900_v56 = vsel %vm460_vm2, %v5980_v30, 0.0 }
 0x852   :  { %4254 = vpow2.f32 %v2848_v61 }
 0x853   :  { %v5978_v34 = vpop.xlane.xlu1 %2811  ;;  %4256 = vpow2.f32 %v2852_v18 }
 0x854   :  { %4258 = vpow2.f32 %v2856_v1 }
 0x855   :  { %v2809_v12 = vpop.xlane.xlu0 %2808 }
 0x856   :  { %v2833_v44 = vsub.f32 %v5912_v28, %v2809_v12 }
 0x858   :  { %v5983_v4 = vpop.eup %4254  ;;  %v2860_v53 = vmul.f32 1.442695, %v2833_v44 }
 0x859   :  { %2901 = vadd.xlane.f32.xlu1 %v2900_v56  ;;  %v2885_v60 = vsel %vm460_vm2, %v5983_v4, 0.0  ;;  %v5990_v31 = vpop.eup %4256 }
 0x85a   :  { %4260 = vpow2.f32 %v2860_v53  ;;  %2886 = vadd.xlane.f32.xlu2 %v2885_v60  ;;  %v5992_v17 = vpop.eup %4258  ;;  %v2891_v50 = vsel %vm460_vm2, %v5990_v31, 0.0 }
 0x85b   :  { %v2815_v32 = vpop.xlane.xlu1 %2814 }
 0x85c   :  { %v2835_v58 = vsub.f32 %v5923_v45, %v2815_v32  ;;  %v2897_v45 = vsel %vm460_vm2, %v5992_v17, 0.0 }
 0x85d   :  { %v2872_v28 = vpop.xlane.xlu0 %2871 }
 0x85e   :  { %v2864_v5 = vmul.f32 1.442695, %v2835_v58  ;;  %4262 = vrcp.f32 %v2872_v28  ;;  %v2875_v61 = vpop.xlane.xlu2 %2874 }
 0x860   :  { %v5994_v9 = vpop.eup %4260  ;;  %4264 = vpow2.f32 %v2864_v5 }
 0x861   :  { %2892 = vadd.xlane.f32.xlu1 %v2891_v50  ;;  %v2903_v41 = vsel %vm460_vm2, %v5994_v9, 0.0  ;;  %4266 = vrcp.f32 %v2875_v61 }
 0x862   :  { %2904 = vadd.xlane.f32.xlu0 %v2903_v41  ;;  %2898 = vadd.xlane.f32.xlu2 %v2897_v45  ;;  %v6454_v41 = vld [vmem:[#allocation6_spill] sm:$0xff] }
 0x864   :  { %v4263_v18 = vpop.eup %4262 }
 0x865   :  { %v2934_v1 = vmul.f32 %v4263_v18, %v5925_v11 }
 0x866   :  { %v6003_v12 = vpop.eup %4264 }
 0x867   :  { %3826 = vmatmul.msk.f32.vlgmr.msrb.gmra.mxu0 %vm460_vm2, %v2934_v1  ;;  %v2909_v44 = vsel %vm460_vm2, %v6003_v12, 0.0  ;;  %v4267_v53 = vpop.eup %4266 }
 0x868   :  { %v2935_v56 = vmul.f32 %v4267_v53, %v5929_v14 }
 0x86a   :  { %2910 = vadd.xlane.f32.xlu0 %v2909_v44  ;;  %v2821_v60 = vpop.xlane.xlu0 %2820  ;;  %v2818_v44 = vpop.xlane.xlu1 %2817 }
 0x86e   :  { %v2878_v32 = vpop.xlane.xlu2 %2877 }
 0x86f   :  { %3827 = vmatmul.msk.f32.gmra.mxu0 %vm460_vm2, %v2935_v56  ;;  %4268 = vrcp.f32 %v2878_v32 }
 0x875   :  { %v4269_v58 = vpop.eup %4268 }
 0x876   :  { %v2881_v28 = vpop.xlane.xlu0 %2880  ;;  %v4021_v5 = vpop.permute.xlu2 %4020  ;;  %v2936_v11 = vmul.f32 %v4269_v58, %v5947_v37 }
 0x877   :  { %4270 = vrcp.f32 %v2881_v28  ;;  %v4022_v50 = vunpack.i.l.bf16 %v4021_v5  ;;  %v4023_v61 = vunpack.i.h.bf16 %v4021_v5 }
 0x878   :  { %3828 = vmatmul.msk.f32.vlgmr.msrb.gmra.mxu1 %vm460_vm2, %v2936_v11 }
 0x879   :  { %3081 = vmatpush.msrb.mxu3 %v4022_v50 }
 0x87a   :  { %4035 = vrot.lane.b32.xlu2 %v6454_v41, %s4328_s10  ;;  %4030 = vrot.lane.b32.xlu1 %v6439_v52, %s4328_s10  ;;  %v2836_v52 = vsub.f32 %v5936_v63, %v2818_v44 }
 0x87b   :  { %3082 = vmatpush.msrb.mxu3 %v4023_v61 }
 0x87d   :  { %v4271_v14 = vpop.eup %4270 }
 0x87e   :  { %4040 = vrot.lane.b32.xlu0 %v6447_v6, %s4328_s10  ;;  %v2937_v45 = vmul.f32 %v4271_v14, %v5951_v42  ;;  %v2834_v6 = vsub.f32 %v5915_v57, %v5978_v34  ;;  %v2866_v42 = vmul.f32 1.442695, %v2836_v52 }
 0x880   :  { %3829 = vmatmul.msk.f32.gmra.mxu1 %vm460_vm2, %v2937_v45  ;;  %v2862_v53 = vmul.f32 1.442695, %v2834_v6  ;;  %4272 = vpow2.f32 %v2866_v42 }
 0x882   :  { %4274 = vpow2.f32 %v2862_v53 }
 0x886   :  { %3310 = vrot.lane.b32.xlu0 %v5800_v23, %s4329_s3  ;;  %v2837_v23 = vsub.f32 %v5942_v38, %v2821_v60  ;;  %v6028_v32 = vpop.eup %4272 }
 0x888   :  { %v2868_v56 = vmul.f32 1.442695, %v2837_v23  ;;  %v6030_v58 = vpop.eup %4274 }
 0x889   :  { %v4026_v37 = vpop.permute.xlu0 %4025  ;;  %v2906_v63 = vsel %vm460_vm2, %v6030_v58, 0.0 }
 0x88a   :  { %v4027_v18 = vunpack.i.l.bf16 %v4026_v37  ;;  %v4028_v1 = vunpack.i.h.bf16 %v4026_v37  ;;  %4276 = vpow2.f32 %v2868_v56 }
 0x88c   :  { %3116 = vmatpush.msra.mxu0 %v4027_v18 }
 0x88e   :  { %3117 = vmatpush.msra.mxu0 %v4028_v1  ;;  %3248 = vrot.lane.b32.xlu0 %v5470_v47, %s4330_s2  ;;  %v2912_v47 = vsel %vm460_vm2, %v6028_v32, 0.0 }
 0x890   :  { %v6036_v57 = vpop.eup %4276 }
 0x891   :  { %v2915_v34 = vsel %vm460_vm2, %v6036_v57, 0.0 }
 0x8a3   :  { %2913 = vadd.xlane.f32.xlu2 %v2912_v47 }
 0x8a4   :  { %2907 = vadd.xlane.f32.xlu1 %v2906_v63 }
 0x8ac   :  { %2916 = vadd.xlane.f32.xlu1 %v2915_v34 }
 0x8b4   :  { %v2896_v38 = vpop.xlane.xlu1 %2895 }
 0x8b5   :  { %4278 = vrcp.f32 %v2896_v38 }
 0x8bb   :  { %v4279_v60 = vpop.eup %4278  ;;  %3312 = vrot.lane.b32.xlu2 %v5805_v3, %s4329_s3 }
 0x8bc   :  { %v2942_v28 = vmul.f32 %v4279_v60, %v5961_v22  ;;  %v2884_v5 = vpop.xlane.xlu1 %2883 }
 0x8bd   :  { %4280 = vrcp.f32 %v2884_v5 }
 0x8be   :  { %3834 = vmatmul.msk.f32.vlgmr.msra.gmra.mxu0 %vm460_vm2, %v2942_v28 }
 0x8c3   :  { %v4281_v11 = vpop.eup %4280 }
 0x8c4   :  { %v2938_v50 = vmul.f32 %v4281_v11, %v5966_v36  ;;  %v2890_v61 = vpop.xlane.xlu1 %2889 }
 0x8c5   :  { %4282 = vrcp.f32 %v2890_v61  ;;  %3246 = vrot.lane.b32.xlu1 %v5462_v59, %s4330_s2 }
 0x8c6   :  { %3830 = vmatmul.msk.f32.vlgmr.msrb.gmra.mxu2 %vm460_vm2, %v2938_v50 }
 0x8cb   :  { %v4283_v41 = vpop.eup %4282 }
 0x8cc   :  { %v2940_v14 = vmul.f32 %v4283_v41, %v5971_v51  ;;  %v2902_v3 = vpop.xlane.xlu1 %2901 }
 0x8cd   :  { %3250 = vrot.lane.b32.xlu1 %v5468_v8, %s4330_s2  ;;  %v2887_v22 = vpop.xlane.xlu2 %2886 }
 0x8ce   :  { %4284 = vrcp.f32 %v2887_v22  ;;  %3832 = vmatmul.msk.f32.vlgmr.msrb.gmra.mxu3 %vm460_vm2, %v2940_v14 }
 0x8d4   :  { %v4285_v45 = vpop.eup %4284  ;;  %v2893_v36 = vpop.xlane.xlu1 %2892 }
 0x8d5   :  { %4286 = vrcp.f32 %v2893_v36  ;;  %v2899_v37 = vpop.xlane.xlu2 %2898  ;;  %v2939_v18 = vmul.f32 %v4285_v45, %v5983_v4  ;;  %v2905_v52 = vpop.xlane.xlu0 %2904 }
 0x8d6   :  { %4288 = vrcp.f32 %v2899_v37 }
 0x8d7   :  { %3831 = vmatmul.msk.f32.gmra.mxu2 %vm460_vm2, %v2939_v18  ;;  %4290 = vrcp.f32 %v2902_v3  ;;  %v6458_v3 = vld [vmem:[#allocation23_spill] sm:$0xff] }
 0x8d8   :  { %4292 = vrcp.f32 %v2905_v52 }
 0x8db   :  { %v4287_v59 = vpop.eup %4286 }
 0x8dc   :  { %v2941_v51 = vmul.f32 %v4287_v59, %v5990_v31  ;;  %v4289_v1 = vpop.eup %4288 }
 0x8dd   :  { %v4036_v44 = vpop.permute.xlu2 %4035  ;;  %v2943_v6 = vmul.f32 %v4289_v1, %v5992_v17  ;;  %v2911_v53 = vpop.xlane.xlu0 %2910 }
 0x8de   :  { %v4037_v8 = vunpack.i.l.bf16 %v4036_v44  ;;  %3833 = vmatmul.msk.f32.gmra.mxu3 %vm460_vm2, %v2941_v51  ;;  %v4038_v42 = vunpack.i.h.bf16 %v4036_v44  ;;  %v4291_v56 = vpop.eup %4290  ;;  %v6459_v51 = vld [vmem:[#allocation24_spill] sm:$0xff] }
 0x8df   :  { %3835 = vmatmul.msk.f32.gmra.mxu0 %vm460_vm2, %v2943_v6  ;;  %v2944_v17 = vmul.f32 %v4291_v56, %v5980_v30  ;;  %v4293_v28 = vpop.eup %4292 }
 0x8e0   :  { %3186 = vmatpush.msra.mxu2 %v4037_v8  ;;  %v2945_v11 = vmul.f32 %v4293_v28, %v5994_v9 }
 0x8e2   :  { %3187 = vmatpush.msra.mxu2 %v4038_v42 }
 0x8e4   :  { %v2979_v4 = vpop.f32.mrf.mxu0 }
 0x8e5   :  { %3374 = vrot.lane.b32.xlu0 %v2979_v4, %s4331_s14 }
 0x8ec   :  { %v4031_v31 = vpop.permute.xlu1 %4030  ;;  %v2982_v23 = vpop.f32.mrf.mxu0 }
 0x8ed   :  { %v4032_v47 = vunpack.i.l.bf16 %v4031_v31  ;;  %3376 = vrot.lane.b32.xlu0 %v2982_v23, %s4331_s14  ;;  %v4033_v63 = vunpack.i.h.bf16 %v4031_v31 }
 0x8ef   :  { %3151 = vmatpush.msra.mxu1 %v4032_v47  ;;  %v6460_v47 = vld [vmem:[#allocation14_spill] sm:$0xff] }
 0x8f0   :  { %v4041_v34 = vpop.permute.xlu0 %4040 }
 0x8f1   :  { %v4042_v38 = vunpack.i.l.bf16 %v4041_v34  ;;  %3152 = vmatpush.msra.mxu1 %v4033_v63  ;;  %v4043_v60 = vunpack.i.h.bf16 %v4041_v34 }
 0x8f2   :  { %3836 = vmatmul.msk.f32.vlgmr.msra.gmra.mxu1 %vm460_vm2, %v2944_v17 }
 0x8f3   :  { %3221 = vmatpush.msra.mxu3 %v4042_v38 }
 0x8f5   :  { %3314 = vrot.lane.b32.xlu0 %v5812_v0, %s4329_s3  ;;  %3222 = vmatpush.msra.mxu3 %v4043_v60  ;;  %v3014_v5 = vpop.f32.mrf.mxu1 }
 0x8f6   :  { %3378 = vrot.lane.b32.xlu1 %v3014_v5, %s4331_s14 }
 0x8fa   :  { %3837 = vmatmul.msk.f32.gmra.mxu1 %vm460_vm2, %v2945_v11 }
 0x8fd   :  { %3252 = vrot.lane.b32.xlu0 %v5475_v26, %s4330_s2  ;;  %v3017_v30 = vpop.f32.mrf.mxu1 }
 0x8fe   :  { %3316 = vrot.lane.b32.xlu1 %v5823_v7, %s4329_s3  ;;  %3380 = vrot.lane.b32.xlu2 %v3017_v30, %s4331_s14 }
 0x905   :  { %3254 = vrot.lane.b32.xlu0 %v5483_v46, %s4330_s2 }
 0x906   :  { %3318 = vrot.lane.b32.xlu1 %v5857_v62, %s4329_s3 }
 0x90d   :  { %3256 = vrot.lane.b32.xlu0 %v5497_v13, %s4330_s2 }
 0x90e   :  { %3320 = vrot.lane.b32.xlu1 %v5861_v43, %s4329_s3 }
 0x915   :  { %3258 = vrot.lane.b32.xlu0 %v5553_v24, %s4330_s2 }
 0x916   :  { %v2914_v26 = vpop.xlane.xlu2 %2913  ;;  %3322 = vrot.lane.b32.xlu1 %v5865_v39, %s4329_s3 }
 0x917   :  { %4294 = vrcp.f32 %v2914_v26  ;;  %v2908_v0 = vpop.xlane.xlu1 %2907 }
 0x918   :  { %4296 = vrcp.f32 %v2908_v0  ;;  %v6461_v0 = vld [vmem:[#allocation12_spill] sm:$0xff] }
 0x919   :  { %4298 = vrcp.f32 %v2911_v53 }
 0x91d   :  { %v4295_v46 = vpop.eup %4294  ;;  %3260 = vrot.lane.b32.xlu0 %v5555_v15, %s4330_s2 }
 0x91e   :  { %v4297_v7 = vpop.eup %4296  ;;  %v2948_v13 = vmul.f32 %v4295_v46, %v6028_v32  ;;  %3324 = vrot.lane.b32.xlu1 %v5869_v27, %s4329_s3 }
 0x91f   :  { %v2946_v62 = vmul.f32 %v4297_v7, %v6030_v58  ;;  %v2917_v24 = vpop.xlane.xlu1 %2916  ;;  %v4299_v43 = vpop.eup %4298  ;;  %v6456_v58 = vld [vmem:[#allocation8_spill] sm:$0xff] }
 0x920   :  { %4300 = vrcp.f32 %v2917_v24  ;;  %3840 = vmatmul.msk.f32.vlgmr.msra.gmra.mxu3 %vm460_vm2, %v2948_v13  ;;  %v2947_v39 = vmul.f32 %v4299_v43, %v6003_v12  ;;  %v6455_v12 = vld [vmem:[#allocation17_spill] sm:$0xff] }
 0x921   :  { %3838 = vmatmul.msk.f32.vlgmr.msra.gmra.mxu2 %vm460_vm2, %v2946_v62 }
 0x925   :  { %3262 = vrot.lane.b32.xlu0 %v5473_v55, %s4330_s2  ;;  %v3474_v55 = vld [vmem:[%s6369_s4 + $0x18] sm:$0xff] }
 0x926   :  { %v4301_v15 = vpop.eup %4300  ;;  %3326 = vrot.lane.b32.xlu1 %v5809_v35, %s4329_s3  ;;  %v3473_v35 = vld [vmem:[%s6369_s4 + $0x10] sm:$0xff]  ;;  %3539 = vmatpush.msrb.mxu0 %v3474_v55 }
 0x927   :  { %v2949_v9 = vmul.f32 %v4301_v15, %v6036_v57  ;;  %v6457_v57 = vld [vmem:[#allocation16_spill] sm:$0xff]  ;;  %v6462_v15 = vld [vmem:[#allocation18_spill] sm:$0xff] }
 0x928   :  { %3540 = vmatpush.msrb.mxu0 %v3473_v35 }
 0x929   :  { %3839 = vmatmul.msk.f32.gmra.mxu2 %vm460_vm2, %v2947_v39  ;;  %3841 = vmatmul.msk.f32.gmra.mxu3 %vm460_vm2, %v2949_v9 }
 0x92d   :  { %3264 = vrot.lane.b32.xlu0 %v5479_v19, %s4330_s2  ;;  %v3472_v19 = vld [vmem:[%s6369_s4 + $0x8] sm:$0xff] }
 0x92e   :  { %3328 = vrot.lane.b32.xlu1 %v5814_v48, %s4329_s3  ;;  %3541 = vmatpush.msrb.mxu0 %v3472_v19  ;;  %v3471_v48 = vld [vmem:[%s6369_s4] sm:$0xff] }
 0x930   :  { %3542 = vmatpush.msrb.mxu0 %v3471_v48 }
 0x935   :  { %3266 = vrot.lane.b32.xlu0 %v5481_v10, %s4330_s2  ;;  %v3311_v10 = vpop.permute.xlu0 %3310 }
 0x936   :  { %3330 = vrot.lane.b32.xlu1 %v5838_v54, %s4329_s3 }
 0x93b   :  { %v3119_v52 = vpop.f32.mrf.mxu0 }
 0x93d   :  { %3268 = vrot.lane.b32.xlu0 %v5490_v21, %s4330_s2  ;;  %v3249_v27 = vpop.permute.xlu0 %3248  ;;  %v3247_v21 = vpop.permute.xlu1 %3246 }
 0x93e   :  { %3332 = vrot.lane.b32.xlu1 %v5846_v49, %s4329_s3  ;;  %v3422_v49 = vsel %vm169_vm1, %v6455_v12, %v3247_v21 }
 0x945   :  { %3270 = vrot.lane.b32.xlu0 %v5514_v2, %s4330_s2  ;;  %v3251_v41 = vpop.permute.xlu1 %3250 }
 0x946   :  { %3334 = vrot.lane.b32.xlu1 %v5863_v20, %s4329_s3  ;;  %v3438_v20 = vsel %vm460_vm2, %v3422_v49, %v3311_v10  ;;  %v3424_v22 = vsel %vm169_vm1, %v6458_v3, %v3251_v41 }
 0x949   :  { %v3049_v54 = vpop.f32.mrf.mxu2 }
 0x94a   :  { %3382 = vrot.lane.b32.xlu2 %v3049_v54, %s4331_s14  ;;  %v6463_v54 = vld [vmem:[#allocation19_spill] sm:$0xff] }
 0x94d   :  { %3272 = vrot.lane.b32.xlu0 %v5526_v16, %s4330_s2 }
 0x94e   :  { %3336 = vrot.lane.b32.xlu1 %v5867_v25, %s4329_s3  ;;  %v3313_v25 = vpop.permute.xlu2 %3312 }
 0x951   :  { %v3084_v14 = vpop.f32.mrf.mxu3 }
 0x955   :  { %3274 = vrot.lane.b32.xlu0 %v5557_v40, %s4330_s2  ;;  %v3423_v40 = vsel %vm169_vm1, %v6457_v57, %v3249_v27 }
 0x956   :  { %3338 = vrot.lane.b32.xlu1 %v5874_v29, %s4329_s3  ;;  %v3439_v50 = vsel %vm460_vm2, %v3423_v40, %v3313_v25 }
 0x957   :  { %v3375_v2 = vpop.permute.xlu0 %3374 }
 0x958   :  { %v3455_v16 = vsel %vm3454_vm3, %v3438_v20, %v3375_v2  ;;  %v3381_v8 = vpop.permute.xlu2 %3380  ;;  %v6464_v20 = vld [vmem:[#allocation25_spill] sm:$0xff] }
 0x959   :  { %3842 = vmatmul.msk.f32.vlgmr.msrb.gmra.mxu0 %vm47_vm0, %v3455_v16 }
 0x95a   :  { %v3052_v32 = vpop.f32.mrf.mxu2 }
 0x95b   :  { %3384 = vrot.lane.b32.xlu2 %v3052_v32, %s4331_s14 }
 0x95c   :  { %v3122_v4 = vpop.f32.mrf.mxu0 }
 0x95d   :  { %3276 = vrot.lane.b32.xlu0 %v6456_v58, %s4330_s2 }
 0x95e   :  { %3340 = vrot.lane.b32.xlu1 %v5878_v33, %s4329_s3 }
 0x95f   :  { %v3377_v29 = vpop.permute.xlu0 %3376 }
 0x960   :  { %v3456_v61 = vsel %vm3454_vm3, %v3439_v50, %v3377_v29  ;;  %v6465_v50 = vld [vmem:[#allocation26_spill] sm:$0xff] }
 0x961   :  { %3843 = vmatmul.msk.f32.gmra.mxu0 %vm47_vm0, %v3456_v61  ;;  %v3087_v18 = vpop.f32.mrf.mxu3  ;;  %v6202_v61 = vld [vmem:[%s6370_s5] ss:$0 sm:$0xff] }
 0x963   :  { %3386 = vrot.lane.b32.xlu2 %v3084_v14, %s4331_s14 }
 0x967   :  { %v3315_v45 = vpop.permute.xlu0 %3314 }
 0x968   :  { %v3440_v36 = vsel %vm460_vm2, %v3424_v22, %v3315_v45  ;;  %v3379_v37 = vpop.permute.xlu1 %3378 }
 0x969   :  { %v3457_v59 = vsel %vm3454_vm3, %v3440_v36, %v3379_v37 }
 0x96a   :  { %3844 = vmatmul.msk.f32.gmra.mxu0 %vm47_vm0, %v3457_v59 }
 0x96b   :  { %3388 = vrot.lane.b32.xlu2 %v3087_v18, %s4331_s14  ;;  %v4302_v18 = vld [vmem:[%s6366_s0] sm:$0xff] }
 0x96f   :  { %v3253_v33 = vpop.permute.xlu0 %3252  ;;  %v3154_v53 = vpop.f32.mrf.mxu1 }
 0x970   :  { %v3425_v1 = vsel %vm169_vm1, %v6459_v51, %v3253_v33  ;;  %v3317_v44 = vpop.permute.xlu1 %3316  ;;  %v6466_v33 = vld [vmem:[#allocation20_spill] sm:$0xff] }
 0x971   :  { %v3441_v6 = vsel %vm460_vm2, %v3425_v1, %v3317_v44 }
 0x972   :  { %v3458_v42 = vsel %vm3454_vm3, %v3441_v6, %v3381_v8 }
 0x973   :  { %3390 = vrot.lane.b32.xlu2 %v3119_v52, %s4331_s14  ;;  %3845 = vmatmul.msk.f32.gmra.mxu0 %vm47_vm0, %v3458_v42 }
 0x977   :  { %v3157_v31 = vpop.f32.mrf.mxu1  ;;  %v3255_v23 = vpop.permute.xlu0 %3254 }
 0x978   :  { %v3319_v56 = vpop.permute.xlu1 %3318  ;;  %v3426_v63 = vsel %vm169_vm1, %v6460_v47, %v3255_v23 }
 0x979   :  { %v3442_v34 = vsel %vm460_vm2, %v3426_v63, %v3319_v56 }
 0x97b   :  { %3392 = vrot.lane.b32.xlu2 %v3122_v4, %s4331_s14  ;;  %v4303_v4 = vld [vmem:[%s6366_s0 + $0x8] sm:$0xff] }
 0x97f   :  { %v3257_v17 = vpop.permute.xlu0 %3256 }
 0x980   :  { %v3321_v5 = vpop.permute.xlu1 %3320  ;;  %v3427_v46 = vsel %vm169_vm1, %v6461_v0, %v3257_v17 }
 0x981   :  { %v3443_v13 = vsel %vm460_vm2, %v3427_v46, %v3321_v5 }
 0x983   :  { %3394 = vrot.lane.b32.xlu2 %v3154_v53, %s4331_s14 }
 0x987   :  { %v3259_v30 = vpop.permute.xlu0 %3258 }
 0x988   :  { %v3323_v26 = vpop.permute.xlu1 %3322  ;;  %v3428_v39 = vsel %vm169_vm1, %v6462_v15, %v3259_v30 }
 0x989   :  { %v3444_v35 = vsel %vm460_vm2, %v3428_v39, %v3323_v26  ;;  %v4305_v26 = vld [vmem:[%s6366_s0 + $0x18] sm:$0xff] }
 0x98b   :  { %3396 = vrot.lane.b32.xlu2 %v3157_v31, %s4331_s14  ;;  %v6467_v31 = vld [vmem:[#allocation21_spill] sm:$0xff] }
 0x98f   :  { %v3261_v43 = vpop.permute.xlu0 %3260 }
 0x990   :  { %v3325_v9 = vpop.permute.xlu1 %3324  ;;  %v3429_v27 = vsel %vm169_vm1, %v6463_v54, %v3261_v43 }
 0x991   :  { %v3445_v12 = vsel %vm460_vm2, %v3429_v27, %v3325_v9  ;;  %v6469_v9 = vld [vmem:[#allocation22_spill] sm:$0xff]  ;;  %v6470_v27 = vld [vmem:[#allocation28_spill] sm:$0xff] }
 0x997   :  { %v3263_v10 = vpop.permute.xlu0 %3262 }
 0x998   :  { %v3327_v21 = vpop.permute.xlu1 %3326  ;;  %v3430_v16 = vsel %vm169_vm1, %v6464_v20, %v3263_v10 }
 0x999   :  { %v3446_v25 = vsel %vm460_vm2, %v3430_v16, %v3327_v21  ;;  %v6471_v16 = vld [vmem:[#allocation29_spill] sm:$0xff] }
 0x99f   :  { %v3265_v32 = vpop.permute.xlu0 %3264 }
 0x9a0   :  { %v3329_v57 = vpop.permute.xlu1 %3328  ;;  %v3431_v29 = vsel %vm169_vm1, %v6465_v50, %v3265_v32 }
 0x9a1   :  { %v3447_v41 = vsel %vm460_vm2, %v3431_v29, %v3329_v57 }
 0x9a3   :  { %v3224_v7 = vpop.f32.mrf.mxu3 }
 0x9a4   :  { %v3383_v38 = vpop.permute.xlu2 %3382  ;;  %v3189_v60 = vpop.f32.mrf.mxu2 }
 0x9a5   :  { %v3459_v28 = vsel %vm3454_vm3, %v3442_v34, %v3383_v38  ;;  %3398 = vrot.lane.b32.xlu2 %v3189_v60, %s4331_s14  ;;  %v4304_v60 = vld [vmem:[%s6366_s0 + $0x10] sm:$0xff] }
 0x9a6   :  { %3846 = vmatmul.msk.f32.gmra.mxu0 %vm47_vm0, %v3459_v28 }
 0x9a7   :  { %v3267_v14 = vpop.permute.xlu0 %3266 }
 0x9a8   :  { %v3331_v37 = vpop.permute.xlu1 %3330  ;;  %v3432_v51 = vsel %vm169_vm1, %v6466_v33, %v3267_v14 }
 0x9a9   :  { %v3448_v1 = vsel %vm460_vm2, %v3432_v51, %v3331_v37 }
 0x9ac   :  { %v3192_v11 = vpop.f32.mrf.mxu2  ;;  %v3227_v55 = vpop.f32.mrf.mxu3 }
 0x9ad   :  { %3400 = vrot.lane.b32.xlu2 %v3192_v11, %s4331_s14 }
 0x9af   :  { %v3269_v6 = vpop.permute.xlu0 %3268 }
 0x9b0   :  { %v3433_v23 = vsel %vm169_vm1, %v6467_v31, %v3269_v6  ;;  %v3333_v56 = vpop.permute.xlu1 %3332 }
 0x9b1   :  { %v3449_v47 = vsel %vm460_vm2, %v3433_v23, %v3333_v56  ;;  %v4311_v23 = vld [vmem:[%s6366_s0 + $0x48] sm:$0xff] }
 0x9b5   :  { %v3385_v62 = vpop.permute.xlu2 %3384  ;;  %3402 = vrot.lane.b32.xlu2 %v3224_v7, %s4331_s14  ;;  %v6468_v7 = vld [vmem:[#allocation15_spill] sm:$0xff] }
 0x9b6   :  { %v3460_v24 = vsel %vm3454_vm3, %v3443_v13, %v3385_v62 }
 0x9b7   :  { %3847 = vmatmul.msk.f32.gmra.mxu0 %vm47_vm0, %v3460_v24  ;;  %v3271_v30 = vpop.permute.xlu0 %3270 }
 0x9b8   :  { %v3335_v46 = vpop.permute.xlu1 %3334  ;;  %v3434_v13 = vsel %vm169_vm1, %v6468_v7, %v3271_v30 }
 0x9b9   :  { %v3450_v24 = vsel %vm460_vm2, %v3434_v13, %v3335_v46  ;;  %v4315_v13 = vld [vmem:[%s6366_s0 + $0x68] sm:$0xff] }
 0x9bd   :  { %v3387_v19 = vpop.permute.xlu2 %3386  ;;  %3404 = vrot.lane.b32.xlu2 %v3227_v55, %s4331_s14 }
 0x9be   :  { %v3461_v48 = vsel %vm3454_vm3, %v3444_v35, %v3387_v19 }
 0x9bf   :  { %3848 = vmatmul.msk.f32.gmra.mxu0 %vm47_vm0, %v3461_v48  ;;  %v3273_v62 = vpop.permute.xlu0 %3272 }
 0x9c0   :  { %v3337_v15 = vpop.permute.xlu1 %3336  ;;  %v3435_v55 = vsel %vm169_vm1, %v6469_v9, %v3273_v62 }
 0x9c1   :  { %v3451_v35 = vsel %vm460_vm2, %v3435_v55, %v3337_v15  ;;  %v4316_v15 = vld [vmem:[%s6366_s0 + $0x70] sm:$0xff] }
 0x9c5   :  { %v3389_v49 = vpop.permute.xlu2 %3388 }
 0x9c6   :  { %v3462_v2 = vsel %vm3454_vm3, %v3445_v12, %v3389_v49 }
 0x9c7   :  { %3849 = vmatmul.msk.f32.gmra.mxu0 %vm47_vm0, %v3462_v2  ;;  %v3275_v19 = vpop.permute.xlu0 %3274 }
 0x9c8   :  { %v3339_v54 = vpop.permute.xlu1 %3338  ;;  %v3436_v21 = vsel %vm169_vm1, %v6470_v27, %v3275_v19 }
 0x9c9   :  { %v3452_v12 = vsel %vm460_vm2, %v3436_v21, %v3339_v54 }
 0x9cd   :  { %v3391_v58 = vpop.permute.xlu2 %3390 }
 0x9ce   :  { %v3463_v40 = vsel %vm3454_vm3, %v3446_v25, %v3391_v58 }
 0x9cf   :  { %3850 = vmatmul.msk.f32.gmra.mxu0 %vm47_vm0, %v3463_v40  ;;  %v3277_v20 = vpop.permute.xlu0 %3276 }
 0x9d0   :  { %v3437_v32 = vsel %vm169_vm1, %v6471_v16, %v3277_v20  ;;  %v3341_v25 = vpop.permute.xlu1 %3340 }
 0x9d1   :  { %v3453_v58 = vsel %vm460_vm2, %v3437_v32, %v3341_v25 }
 0x9d5   :  { %v3393_v3 = vpop.permute.xlu2 %3392 }
 0x9d6   :  { %v3464_v22 = vsel %vm3454_vm3, %v3447_v41, %v3393_v3  ;;  %v3544_v45 = vpop.f32.mrf.mxu0  ;;  %v4306_v41 = vld [vmem:[%s6366_s0 + $0x20] sm:$0xff] }
 0x9d7   :  { %v3545_v36 = vadd.f32 %v6202_v61, %v3544_v45  ;;  %3851 = vmatmul.msk.f32.gmra.mxu0 %vm47_vm0, %v3464_v22  ;;  %v4307_v45 = vld [vmem:[%s6366_s0 + $0x28] sm:$0xff] }
 0x9d9   :  { %v3592_v59 = vadd.f32 %v4302_v18, %v3545_v36 }
 0x9db   :  { %3608 = vst.msk [vmem:[%s6371_s6] sm:$0xff] %vm47_vm0, %v3592_v59  ;;  %v4308_v59 = vld [vmem:[%s6366_s0 + $0x30] sm:$0xff] }
 0x9dd   :  { %v3395_v44 = vpop.permute.xlu2 %3394 }
 0x9de   :  { %v3465_v52 = vsel %vm3454_vm3, %v3448_v1, %v3395_v44  ;;  %v3547_v8 = vpop.f32.mrf.mxu0  ;;  %v4309_v44 = vld [vmem:[%s6366_s0 + $0x38] sm:$0xff] }
 0x9df   :  { %v3548_v42 = vadd.f32 %v6202_v61, %v3547_v8  ;;  %3852 = vmatmul.msk.f32.gmra.mxu0 %vm47_vm0, %v3465_v52 }
 0x9e1   :  { %v3593_v53 = vadd.f32 %v4303_v4, %v3548_v42  ;;  %v4310_v42 = vld [vmem:[%s6366_s0 + $0x40] sm:$0xff] }
 0x9e3   :  { %3609 = vst.msk [vmem:[%s6371_s6 + $0x8] sm:$0xff] %vm47_vm0, %v3593_v53 }
 0x9e5   :  { %v3397_v63 = vpop.permute.xlu2 %3396 }
 0x9e6   :  { %v3466_v17 = vsel %vm3454_vm3, %v3449_v47, %v3397_v63 }
 0x9e7   :  { %3853 = vmatmul.msk.f32.gmra.mxu0 %vm47_vm0, %v3466_v17  ;;  %v3550_v34 = vpop.f32.mrf.mxu0  ;;  %v4312_v17 = vld [vmem:[%s6366_s0 + $0x50] sm:$0xff] }
 0x9e8   :  { %v3551_v38 = vadd.f32 %v6202_v61, %v3550_v34 }
 0x9ea   :  { %v3594_v28 = vadd.f32 %v4304_v60, %v3551_v38 }
 0x9ec   :  { %3610 = vst.msk [vmem:[%s6371_s6 + $0x10] sm:$0xff] %vm47_vm0, %v3594_v28  ;;  %v4313_v28 = vld [vmem:[%s6366_s0 + $0x58] sm:$0xff] }
 0x9f0   :  { %v3553_v5 = vpop.f32.mrf.mxu0 }
 0x9f1   :  { %v3554_v11 = vadd.f32 %v6202_v61, %v3553_v5 }
 0x9f3   :  { %v3595_v0 = vadd.f32 %v4305_v26, %v3554_v11  ;;  %v4314_v26 = vld [vmem:[%s6366_s0 + $0x60] sm:$0xff] }
 0x9f5   :  { %3611 = vst.msk [vmem:[%s6371_s6 + $0x18] sm:$0xff] %vm47_vm0, %v3595_v0 }
 0x9ff   :  { %v3399_v43 = vpop.permute.xlu2 %3398 }
 0xa00   :  { %v3467_v39 = vsel %vm3454_vm3, %v3450_v24, %v3399_v43 }
 0xa01   :  { %3854 = vmatmul.msk.f32.gmra.mxu0 %vm47_vm0, %v3467_v39 }
 0xa07   :  { %v3401_v48 = vpop.permute.xlu2 %3400 }
 0xa08   :  { %v3468_v10 = vsel %vm3454_vm3, %v3451_v35, %v3401_v48  ;;  %v4317_v35 = vld [vmem:[%s6366_s0 + $0x78] sm:$0xff] }
 0xa09   :  { %3855 = vmatmul.msk.f32.gmra.mxu0 %vm47_vm0, %v3468_v10 }
 0xa0f   :  { %v3403_v49 = vpop.permute.xlu2 %3402 }
 0xa10   :  { %v3469_v2 = vsel %vm3454_vm3, %v3452_v12, %v3403_v49 }
 0xa11   :  { %3856 = vmatmul.msk.f32.gmra.mxu0 %vm47_vm0, %v3469_v2 }
 0xa17   :  { %v3405_v57 = vpop.permute.xlu2 %3404 }
 0xa18   :  { %v3470_v40 = vsel %vm3454_vm3, %v3453_v58, %v3405_v57 }
 0xa19   :  { %3857 = vmatmul.msk.f32.gmra.mxu0 %vm47_vm0, %v3470_v40 }
 0xa23   :  { %v3556_v50 = vpop.f32.mrf.mxu0 }
 0xa24   :  { %v3557_v29 = vadd.f32 %v6202_v61, %v3556_v50 }
 0xa26   :  { %v3596_v14 = vadd.f32 %v4306_v41, %v3557_v29 }
 0xa28   :  { %3612 = vst.msk [vmem:[%s6371_s6 + $0x20] sm:$0xff] %vm47_vm0, %v3596_v14 }
 0xa34   :  { %v3559_v3 = vpop.f32.mrf.mxu0 }
 0xa35   :  { %v3560_v22 = vadd.f32 %v6202_v61, %v3559_v3 }
 0xa37   :  { %v3597_v36 = vadd.f32 %v4307_v45, %v3560_v22 }
 0xa39   :  { %3613 = vst.msk [vmem:[%s6371_s6 + $0x28] sm:$0xff] %vm47_vm0, %v3597_v36 }
 0xa3c   :  { %v3562_v37 = vpop.f32.mrf.mxu0 }
 0xa3d   :  { %v3563_v18 = vadd.f32 %v6202_v61, %v3562_v37 }
 0xa3f   :  { %v3598_v33 = vadd.f32 %v4308_v59, %v3563_v18 }
 0xa41   :  { %3614 = vst.msk [vmem:[%s6371_s6 + $0x30] sm:$0xff] %vm47_vm0, %v3598_v33 }
 0xa44   :  { %v3565_v51 = vpop.f32.mrf.mxu0 }
 0xa45   :  { %v3566_v1 = vadd.f32 %v6202_v61, %v3565_v51 }
 0xa47   :  { %v3599_v52 = vadd.f32 %v4309_v44, %v3566_v1 }
 0xa49   :  { %3615 = vst.msk [vmem:[%s6371_s6 + $0x38] sm:$0xff] %vm47_vm0, %v3599_v52 }
 0xa4c   :  { %v3568_v8 = vpop.f32.mrf.mxu0 }
 0xa4d   :  { %v3569_v6 = vadd.f32 %v6202_v61, %v3568_v8 }
 0xa4f   :  { %v3600_v4 = vadd.f32 %v4310_v42, %v3569_v6 }
 0xa51   :  { %3616 = vst.msk [vmem:[%s6371_s6 + $0x40] sm:$0xff] %vm47_vm0, %v3600_v4 }
 0xa54   :  { %v3571_v53 = vpop.f32.mrf.mxu0 }
 0xa55   :  { %v3572_v31 = vadd.f32 %v6202_v61, %v3571_v53 }
 0xa57   :  { %v3601_v56 = vadd.f32 %v4311_v23, %v3572_v31 }
 0xa59   :  { %3617 = vst.msk [vmem:[%s6371_s6 + $0x48] sm:$0xff] %vm47_vm0, %v3601_v56 }
 0xa5c   :  { %v3574_v47 = vpop.f32.mrf.mxu0 }
 0xa5d   :  { %v3575_v63 = vadd.f32 %v6202_v61, %v3574_v47 }
 0xa5f   :  { %v3602_v34 = vadd.f32 %v4312_v17, %v3575_v63 }
 0xa61   :  { %3618 = vst.msk [vmem:[%s6371_s6 + $0x50] sm:$0xff] %vm47_vm0, %v3602_v34 }
 0xa64   :  { %v3577_v38 = vpop.f32.mrf.mxu0 }
 0xa65   :  { %v3578_v60 = vadd.f32 %v6202_v61, %v3577_v38 }
 0xa67   :  { %v3603_v5 = vadd.f32 %v4313_v28, %v3578_v60 }
 0xa69   :  { %3619 = vst.msk [vmem:[%s6371_s6 + $0x58] sm:$0xff] %vm47_vm0, %v3603_v5 }
 0xa7e   :  { %v3580_v11 = vpop.f32.mrf.mxu0 }
 0xa7f   :  { %v3581_v30 = vadd.f32 %v6202_v61, %v3580_v11 }
 0xa81   :  { %v3604_v0 = vadd.f32 %v4314_v26, %v3581_v30 }
 0xa83   :  { %3620 = vst.msk [vmem:[%s6371_s6 + $0x60] sm:$0xff] %vm47_vm0, %v3604_v0 }
 0xa86   :  { %v3583_v46 = vpop.f32.mrf.mxu0 }
 0xa87   :  { %v3584_v7 = vadd.f32 %v6202_v61, %v3583_v46 }
 0xa89   :  { %v3605_v62 = vadd.f32 %v4315_v13, %v3584_v7 }
 0xa8b   :  { %3621 = vst.msk [vmem:[%s6371_s6 + $0x68] sm:$0xff] %vm47_vm0, %v3605_v62 }
 0xa8e   :  { %v3586_v24 = vpop.f32.mrf.mxu0 }
 0xa8f   :  { %v3587_v43 = vadd.f32 %v6202_v61, %v3586_v24 }
 0xa91   :  { %v3606_v39 = vadd.f32 %v4316_v15, %v3587_v43 }
 0xa93   :  { %3622 = vst.msk [vmem:[%s6371_s6 + $0x70] sm:$0xff] %vm47_vm0, %v3606_v39 }
 0xa96   :  { %v3589_v9 = vpop.f32.mrf.mxu0 }
 0xa97   :  { %v3590_v55 = vadd.f32 %v6202_v61, %v3589_v9 }
 0xa99   :  { %v3607_v19 = vadd.f32 %v4317_v35, %v3590_v55 }
 0xa9b   :  { %3623 = vst.msk [vmem:[%s6371_s6 + $0x78] sm:$0xff] %vm47_vm0, %v3607_v19 }

</bundles_post_ra>
